<compile_context>
chip_gen: v7x
topology: tpu7x:2x2x1
jax: 0.10.0
libtpu: 0.0.40
codegen_flags: <defaults>
</compile_context>

<pallas_src>
import functools

import jax
import jax.numpy as jnp
from jax.experimental import pallas as pl
from jax.experimental.pallas import tpu as pltpu

DILATIONS = (2, 3, 4, 5)
P = max(DILATIONS)          # one spatial zero-pad large enough for every tap
LANE = 128

# Tap offsets grouped by their column shift dw: each group is served by a single
# lane roll of the band slab (dw == 0 needs none); within a group the row shift
# dh is an aligned (multiple-of-Wpad) column window.  Group 0 also carries the
# constant-ones row used to fold the biases into the fused matmul.
DW_GROUPS = ((0, (0, -2, 2, -3, 3, -4, 4, -5, 5)),) + tuple(
    (sgn * d, (-d, 0, d)) for d in DILATIONS for sgn in (1, -1))


def _imcol_layout(cin):
    """Row layout of the im2col slab: offset (dh, dw) -> first row, ones row, K."""
    rows = {}
    r = 0
    ones_row = None
    for gi, (dw, dhs) in enumerate(DW_GROUPS):
        for dh in dhs:
            rows[(dh, dw)] = r
            r += cin
        if gi == 0:
            ones_row = r
            r += 1
    return rows, ones_row, r            # r == 33*cin + 1


def _aspp_kernel(x_ref, wpack_ref, gvec_ref, out_ref, imcol_ref, *,
                 cin, cout, wpad, block_h):
    # x_ref:     (1, Cin, Hp*Wpad)          bf16  zero-padded, channel-major, flat
    # wpack_ref: (5*Cout, 33*Cin+1)         bf16  packed weights+biases, branches 1-5
    # gvec_ref:  (1, Cout, 1)               f32   precomputed global-pool branch
    # out_ref:   (1, 6*Cout, block_h*Wpad)  f32   one spatial row band
    # imcol_ref: (33*Cin+1, block_h*Wpad)   bf16  scratch im2col slab (band only)
    rows, ones_row, _ = _imcol_layout(cin)
    band = pl.program_id(1)
    slab_len = (block_h + 2 * P) * wpad
    band_len = block_h * wpad

    # Band rows [band*block_h, (band+1)*block_h) plus a P-row halo on each side;
    # the lane start is a multiple of 128 because Wpad is.
    start = pl.multiple_of(band * band_len, LANE)
    slab_bf = x_ref[0, :, pl.ds(start, slab_len)]             # (Cin, slab_len) bf16
    # TODO(synk): roll slab_bf directly in bf16 on v6e/v7x (halves roll + cast
    # traffic) once packed-lane rotates are confirmed to lower on the target.
    slab_f32 = slab_bf.astype(jnp.float32)

    # ---- im2col over the band's center columns only ---------------------------
    for gi, (dw, dhs) in enumerate(DW_GROUPS):
        if dw == 0:
            src = slab_bf                                     # aligned, no shift
        else:
            # pltpu.roll == jnp.roll: rolled[:, j] = slab[:, (j + dw) % slab_len].
            src = pltpu.roll(slab_f32, (-dw) % slab_len, 1).astype(jnp.bfloat16)
        for dh in dhs:
            c0 = (P + dh) * wpad                              # multiple of 128
            r0 = rows[(dh, dw)]
            imcol_ref[r0:r0 + cin, :] = src[:, c0:c0 + band_len]
        # TODO(synk): group 4 offsets (16 rows) per store so these writes become
        # full bf16 sublane tiles instead of masked partial-tile stores.
    imcol_ref[ones_row:ones_row + 1, :] = jnp.ones((1, band_len), jnp.bfloat16)

    # ---- branches 1..5 (+ bias): one fused bf16 MXU matmul, K = 33*Cin+1 ------
    y = jnp.dot(wpack_ref[...], imcol_ref[...],
                preferred_element_type=jnp.float32)           # (5*Cout, band_len)
    out_ref[0, 0:5 * cout, :] = y

    # ---- branch 6: precomputed global-pool value, broadcast at store ----------
    out_ref[0, 5 * cout:6 * cout, :] = jnp.broadcast_to(gvec_ref[0],
                                                        (cout, band_len))


def _pack_weights(w1, b1, w3, b3, cin, cout):
    """Packed (5*Cout, 33*Cin+1) bf16 weight (biases folded into the ones column)
    whose column layout matches _imcol_layout."""
    rows, ones_row, k_tot = _imcol_layout(cin)
    wpack = jnp.zeros((5 * cout, k_tot), jnp.float32)
    c0 = rows[(0, 0)]
    wpack = wpack.at[0:cout, c0:c0 + cin].set(w1.T)           # 1x1 branch
    wpack = wpack.at[0:cout, ones_row].set(b1.reshape(cout))
    for di, d in enumerate(DILATIONS):
        r0 = (1 + di) * cout
        for kh in range(3):
            for kw in range(3):
                c = rows[(d * (kh - 1), d * (kw - 1))]
                wpack = wpack.at[r0:r0 + cout, c:c + cin].set(w3[di, kh, kw].T)
        wpack = wpack.at[r0:r0 + cout, ones_row].set(b3[di].reshape(cout))
    return wpack.astype(jnp.bfloat16)


def aspp_forward(x_nchw, params, *, block_h=None):
    """ASPPBlock.forward.  x_nchw: (N, Cin, H, W) -> (N, 6*Cout, H, W)."""
    w1, b1, w3, b3, wg, bg = (params["w1"], params["b1"], params["w3"],
                              params["b3"], params["wg"], params["bg"])
    N, Cin, H, W = x_nchw.shape
    Cout = w1.shape[1]

    Hp = H + 2 * P
    Wpad = -(-(W + 2 * P) // LANE) * LANE                 # lane-dense padded width

    if block_h is None:
        # Largest row band (fewer, fatter grid steps; amortizes the 2P-row halo
        # and per-step overhead) that divides H and keeps the per-band working
        # set comfortably inside a v7x-sized VMEM budget.
        block_h = 1
        for cand in (64, 32, 16, 8, 4, 2, 1):
            if H % cand == 0 and cand * Wpad <= 32 * 1024:
                block_h = cand
                break
    assert H % block_h == 0, (H, block_h)
    n_bands = H // block_h

    # Channel-major, spatially zero-padded, W padded to a lane multiple, flat.
    xp = jnp.pad(x_nchw.astype(jnp.bfloat16),
                 ((0, 0), (0, 0), (P, P), (P, Wpad - W - P)))
    x_flat = xp.reshape(N, Cin, Hp * Wpad)

    wpack = _pack_weights(w1, b1, w3, b3, Cin, Cout)      # (5*Cout, 33*Cin+1)
    K = wpack.shape[1]

    # Global-average-pool branch, hoisted out of the kernel: one tiny per-image
    # f32 matvec; the kernel only broadcasts + stores it per band.
    gmean = jnp.mean(x_nchw.astype(jnp.float32), axis=(2, 3))          # (N, Cin)
    gvec = (gmean @ wg + bg.reshape(1, Cout)).reshape(N, Cout, 1)
    gvec = gvec.astype(jnp.float32)

    kernel = functools.partial(_aspp_kernel, cin=Cin, cout=Cout,
                               wpad=Wpad, block_h=block_h)

    out_flat = pl.pallas_call(
        kernel,
        out_shape=jax.ShapeDtypeStruct((N, 6 * Cout, H * Wpad), jnp.float32),
        grid=(N, n_bands),
        in_specs=[
            # Full padded image per batch element; the block index ignores the
            # band axis, so it is fetched once per image.
            pl.BlockSpec((1, Cin, Hp * Wpad), lambda n, b: (n, 0, 0)),
            # Grid-invariant packed weights: fetched once.
            pl.BlockSpec(wpack.shape, lambda n, b: (0, 0)),
            pl.BlockSpec((1, Cout, 1), lambda n, b: (n, 0, 0)),
        ],
        out_specs=pl.BlockSpec((1, 6 * Cout, block_h * Wpad),
                               lambda n, b: (n, 0, b)),
        scratch_shapes=[pltpu.VMEM((K, block_h * Wpad), jnp.bfloat16)],
        compiler_params=pltpu.CompilerParams(
            dimension_semantics=("parallel", "parallel"),
            # Keep headroom under v7x's 64 MiB per-TC VMEM (128 MiB on v5e/v6e).
            vmem_limit_bytes=48 * 1024 * 1024),
    )(x_flat, wpack, gvec)
    # TODO(synk): single-buffer the band-invariant operands (pipeline_mode=
    # pl.Buffered(1)) and, for very large images, stream halo'd row bands from
    # HBM (memory_space=pl.ANY + pltpu.make_async_copy) instead of keeping the
    # whole padded image resident in VMEM.

    # out_flat's padded columns (outside [P, P+W)) are don't-care values (the
    # circular dw rolls wrap into them); they are sliced off here.  The reshape
    # is free; the width slice is one extra cheap pass.
    return out_flat.reshape(N, 6 * Cout, H, Wpad)[:, :, :, P:P + W]


def _reference(x_nchw, params):
    """Pure-JAX reference (lax.conv_general_dilated) for verification."""
    w1, b1, w3, b3, wg, bg = (params["w1"], params["b1"], params["w3"],
                              params["b3"], params["wg"], params["bg"])
    N, Cin, H, W = x_nchw.shape
    Cout = w1.shape[1]
    x = jnp.transpose(x_nchw, (0, 2, 3, 1)).astype(jnp.float32)

    def conv(inp, w_hwio, pad, dil):
        return jax.lax.conv_general_dilated(
            inp, w_hwio, window_strides=(1, 1),
            padding=((pad, pad), (pad, pad)),
            rhs_dilation=(dil, dil),
            dimension_numbers=("NHWC", "HWIO", "NHWC"))

    outs = [conv(x, w1.reshape(1, 1, Cin, Cout), 0, 1) + b1.reshape(1, 1, 1, Cout)]
    for di, d in enumerate(DILATIONS):
        outs.append(conv(x, w3[di], d, d) + b3[di].reshape(1, 1, 1, Cout))
    gm = jnp.mean(x, axis=(1, 2), keepdims=True)                     # (N,1,1,Cin)
    g = jnp.einsum("nhwc,cd->nhwd", gm, wg) + bg.reshape(1, 1, 1, Cout)
    outs.append(jnp.broadcast_to(g, (N, H, W, Cout)))
    out = jnp.concatenate(outs, axis=-1)
    return jnp.transpose(out, (0, 3, 1, 2))


def make_params(key, in_channels, out_channels):
    ks = jax.random.split(key, 6)
    s = 0.1
    return {
        "w1": s * jax.random.normal(ks[0], (in_channels, out_channels), jnp.float32),
        "b1": s * jax.random.normal(ks[1], (1, out_channels), jnp.float32),
        "w3": s * jax.random.normal(ks[2], (4, 3, 3, in_channels, out_channels), jnp.float32),
        "b3": s * jax.random.normal(ks[3], (4, 1, out_channels), jnp.float32),
        "wg": s * jax.random.normal(ks[4], (in_channels, out_channels), jnp.float32),
        "bg": s * jax.random.normal(ks[5], (1, out_channels), jnp.float32),
    }


if __name__ == "__main__":
    key = jax.random.PRNGKey(0)
    k_x, k_p = jax.random.split(key)

    N, Cin, H, W = 2, 4, 16, 16
    Cout = 8
    x = jax.random.uniform(k_x, (N, Cin, H, W), jnp.float32)
    params = make_params(k_p, Cin, Cout)

    out = jax.block_until_ready(aspp_forward(x, params))
    assert out.shape == (N, 6 * Cout, H, W), out.shape

    ref = jax.block_until_ready(_reference(x, params))
    max_err = float(jnp.max(jnp.abs(out - ref)))
    # bf16 matmul inputs with f32 accumulation -> looser tolerance than pure f32.
    assert jnp.allclose(out, ref, rtol=2e-2, atol=2e-2), max_err

    print("KERNEL_OK")
</pallas_src>

<mosaic_0001>
module attributes {stable_mosaic.version = 11 : i64} {
  func.func @_aspp_kernel(%arg0: i32, %arg1: i32, %arg2: memref<1x4x3328xbf16, #tpu.memory_space<vmem>>, %arg3: memref<40x133xbf16, #tpu.memory_space<vmem>>, %arg4: memref<1x8x1xf32, #tpu.memory_space<vmem>>, %arg5: memref<1x48x2048xf32, #tpu.memory_space<vmem>>, %arg6: memref<133x2048xbf16, #tpu.memory_space<vmem>>) attributes {dimension_semantics = [#tpu.dimension_semantics<parallel>, #tpu.dimension_semantics<parallel>], iteration_bounds = array<i64: 2, 1>, scalar_prefetch = 0 : i64, scratch_operands = 1 : i64, tpu.core_type = #tpu.core_type<tc>, window_params = [{transform_indices = @transform_0, window_bounds = array<i64: 1, 4, 3328>}, {pipeline_mode = #tpu.pipeline_mode<synchronous>, transform_indices = @transform_1, window_bounds = array<i64: 40, 133>}, {transform_indices = @transform_2, window_bounds = array<i64: 1, 8, 1>}, {transform_indices = @transform_3, window_bounds = array<i64: 1, 48, 2048>}]} {
    %c2048_i32 = arith.constant 2048 : i32
    %0 = arith.muli %arg1, %c2048_i32 : i32
    %1 = tpu.assume_multiple %0, 128 : i32
    %c0 = arith.constant 0 : index
    %c0_0 = arith.constant 0 : index
    %2 = arith.index_cast %1 : i32 to index
    %3 = vector.load %arg2[%c0, %c0_0, %2] : memref<1x4x3328xbf16, #tpu.memory_space<vmem>>, vector<1x4x3328xbf16>
    %4 = vector.shape_cast %3 : vector<1x4x3328xbf16> to vector<4x3328xbf16>
    %5 = arith.extf %4 : vector<4x3328xbf16> to vector<4x3328xf32>
    %6 = vector.extract_strided_slice %4 {offsets = [0, 640], sizes = [4, 2048], strides = [1, 1]} : vector<4x3328xbf16> to vector<4x2048xbf16>
    %c0_1 = arith.constant 0 : index
    %c0_2 = arith.constant 0 : index
    %7 = vector.load %arg6[%c0_1, %c0_2] : memref<133x2048xbf16, #tpu.memory_space<vmem>>, vector<4x2048xbf16>
    tpu.vector_store %arg6[%c0_1, %c0_2], %6 {strides = array<i32>} : memref<133x2048xbf16, #tpu.memory_space<vmem>>, vector<4x2048xbf16>,
    %8 = vector.extract_strided_slice %4 {offsets = [0, 384], sizes = [4, 2048], strides = [1, 1]} : vector<4x3328xbf16> to vector<4x2048xbf16>
    %c4 = arith.constant 4 : index
    %c0_3 = arith.constant 0 : index
    %9 = vector.load %arg6[%c4, %c0_3] : memref<133x2048xbf16, #tpu.memory_space<vmem>>, vector<4x2048xbf16>
    tpu.vector_store %arg6[%c4, %c0_3], %8 {strides = array<i32>} : memref<133x2048xbf16, #tpu.memory_space<vmem>>, vector<4x2048xbf16>,
    %10 = vector.extract_strided_slice %4 {offsets = [0, 896], sizes = [4, 2048], strides = [1, 1]} : vector<4x3328xbf16> to vector<4x2048xbf16>
    %c8 = arith.constant 8 : index
    %c0_4 = arith.constant 0 : index
    %11 = vector.load %arg6[%c8, %c0_4] : memref<133x2048xbf16, #tpu.memory_space<vmem>>, vector<4x2048xbf16>
    tpu.vector_store %arg6[%c8, %c0_4], %10 {strides = array<i32>} : memref<133x2048xbf16, #tpu.memory_space<vmem>>, vector<4x2048xbf16>,
    %12 = vector.extract_strided_slice %4 {offsets = [0, 256], sizes = [4, 2048], strides = [1, 1]} : vector<4x3328xbf16> to vector<4x2048xbf16>
    %c12 = arith.constant 12 : index
    %c0_5 = arith.constant 0 : index
    %13 = vector.load %arg6[%c12, %c0_5] : memref<133x2048xbf16, #tpu.memory_space<vmem>>, vector<4x2048xbf16>
    tpu.vector_store %arg6[%c12, %c0_5], %12 {strides = array<i32>} : memref<133x2048xbf16, #tpu.memory_space<vmem>>, vector<4x2048xbf16>,
    %14 = vector.extract_strided_slice %4 {offsets = [0, 1024], sizes = [4, 2048], strides = [1, 1]} : vector<4x3328xbf16> to vector<4x2048xbf16>
    %c16 = arith.constant 16 : index
    %c0_6 = arith.constant 0 : index
    %15 = vector.load %arg6[%c16, %c0_6] : memref<133x2048xbf16, #tpu.memory_space<vmem>>, vector<4x2048xbf16>
    tpu.vector_store %arg6[%c16, %c0_6], %14 {strides = array<i32>} : memref<133x2048xbf16, #tpu.memory_space<vmem>>, vector<4x2048xbf16>,
    %16 = vector.extract_strided_slice %4 {offsets = [0, 128], sizes = [4, 2048], strides = [1, 1]} : vector<4x3328xbf16> to vector<4x2048xbf16>
    %c20 = arith.constant 20 : index
    %c0_7 = arith.constant 0 : index
    %17 = vector.load %arg6[%c20, %c0_7] : memref<133x2048xbf16, #tpu.memory_space<vmem>>, vector<4x2048xbf16>
    tpu.vector_store %arg6[%c20, %c0_7], %16 {strides = array<i32>} : memref<133x2048xbf16, #tpu.memory_space<vmem>>, vector<4x2048xbf16>,
    %18 = vector.extract_strided_slice %4 {offsets = [0, 1152], sizes = [4, 2048], strides = [1, 1]} : vector<4x3328xbf16> to vector<4x2048xbf16>
    %c24 = arith.constant 24 : index
    %c0_8 = arith.constant 0 : index
    %19 = vector.load %arg6[%c24, %c0_8] : memref<133x2048xbf16, #tpu.memory_space<vmem>>, vector<4x2048xbf16>
    tpu.vector_store %arg6[%c24, %c0_8], %18 {strides = array<i32>} : memref<133x2048xbf16, #tpu.memory_space<vmem>>, vector<4x2048xbf16>,
    %20 = vector.extract_strided_slice %4 {offsets = [0, 0], sizes = [4, 2048], strides = [1, 1]} : vector<4x3328xbf16> to vector<4x2048xbf16>
    %c28 = arith.constant 28 : index
    %c0_9 = arith.constant 0 : index
    %21 = vector.load %arg6[%c28, %c0_9] : memref<133x2048xbf16, #tpu.memory_space<vmem>>, vector<4x2048xbf16>
    tpu.vector_store %arg6[%c28, %c0_9], %20 {strides = array<i32>} : memref<133x2048xbf16, #tpu.memory_space<vmem>>, vector<4x2048xbf16>,
    %22 = vector.extract_strided_slice %4 {offsets = [0, 1280], sizes = [4, 2048], strides = [1, 1]} : vector<4x3328xbf16> to vector<4x2048xbf16>
    %c32 = arith.constant 32 : index
    %c0_10 = arith.constant 0 : index
    %23 = vector.load %arg6[%c32, %c0_10] : memref<133x2048xbf16, #tpu.memory_space<vmem>>, vector<4x2048xbf16>
    tpu.vector_store %arg6[%c32, %c0_10], %22 {strides = array<i32>} : memref<133x2048xbf16, #tpu.memory_space<vmem>>, vector<4x2048xbf16>,
    %c3326_i32 = arith.constant 3326 : i32
    %24 = tpu.dynamic_rotate %5 by %c3326_i32 dim 1 : vector<4x3328xf32>, i32 -> vector<4x3328xf32>
    %25 = arith.truncf %24 : vector<4x3328xf32> to vector<4x3328xbf16>
    %26 = vector.extract_strided_slice %25 {offsets = [0, 384], sizes = [4, 2048], strides = [1, 1]} : vector<4x3328xbf16> to vector<4x2048xbf16>
    %c37 = arith.constant 37 : index
    %c0_11 = arith.constant 0 : index
    %27 = vector.load %arg6[%c37, %c0_11] : memref<133x2048xbf16, #tpu.memory_space<vmem>>, vector<4x2048xbf16>
    tpu.vector_store %arg6[%c37, %c0_11], %26 {strides = array<i32>} : memref<133x2048xbf16, #tpu.memory_space<vmem>>, vector<4x2048xbf16>,
    %28 = vector.extract_strided_slice %25 {offsets = [0, 640], sizes = [4, 2048], strides = [1, 1]} : vector<4x3328xbf16> to vector<4x2048xbf16>
    %c41 = arith.constant 41 : index
    %c0_12 = arith.constant 0 : index
    %29 = vector.load %arg6[%c41, %c0_12] : memref<133x2048xbf16, #tpu.memory_space<vmem>>, vector<4x2048xbf16>
    tpu.vector_store %arg6[%c41, %c0_12], %28 {strides = array<i32>} : memref<133x2048xbf16, #tpu.memory_space<vmem>>, vector<4x2048xbf16>,
    %30 = vector.extract_strided_slice %25 {offsets = [0, 896], sizes = [4, 2048], strides = [1, 1]} : vector<4x3328xbf16> to vector<4x2048xbf16>
    %c45 = arith.constant 45 : index
    %c0_13 = arith.constant 0 : index
    %31 = vector.load %arg6[%c45, %c0_13] : memref<133x2048xbf16, #tpu.memory_space<vmem>>, vector<4x2048xbf16>
    tpu.vector_store %arg6[%c45, %c0_13], %30 {strides = array<i32>} : memref<133x2048xbf16, #tpu.memory_space<vmem>>, vector<4x2048xbf16>,
    %c2_i32 = arith.constant 2 : i32
    %32 = tpu.dynamic_rotate %5 by %c2_i32 dim 1 : vector<4x3328xf32>, i32 -> vector<4x3328xf32>
    %33 = arith.truncf %32 : vector<4x3328xf32> to vector<4x3328xbf16>
    %34 = vector.extract_strided_slice %33 {offsets = [0, 384], sizes = [4, 2048], strides = [1, 1]} : vector<4x3328xbf16> to vector<4x2048xbf16>
    %c49 = arith.constant 49 : index
    %c0_14 = arith.constant 0 : index
    %35 = vector.load %arg6[%c49, %c0_14] : memref<133x2048xbf16, #tpu.memory_space<vmem>>, vector<4x2048xbf16>
    tpu.vector_store %arg6[%c49, %c0_14], %34 {strides = array<i32>} : memref<133x2048xbf16, #tpu.memory_space<vmem>>, vector<4x2048xbf16>,
    %36 = vector.extract_strided_slice %33 {offsets = [0, 640], sizes = [4, 2048], strides = [1, 1]} : vector<4x3328xbf16> to vector<4x2048xbf16>
    %c53 = arith.constant 53 : index
    %c0_15 = arith.constant 0 : index
    %37 = vector.load %arg6[%c53, %c0_15] : memref<133x2048xbf16, #tpu.memory_space<vmem>>, vector<4x2048xbf16>
    tpu.vector_store %arg6[%c53, %c0_15], %36 {strides = array<i32>} : memref<133x2048xbf16, #tpu.memory_space<vmem>>, vector<4x2048xbf16>,
    %38 = vector.extract_strided_slice %33 {offsets = [0, 896], sizes = [4, 2048], strides = [1, 1]} : vector<4x3328xbf16> to vector<4x2048xbf16>
    %c57 = arith.constant 57 : index
    %c0_16 = arith.constant 0 : index
    %39 = vector.load %arg6[%c57, %c0_16] : memref<133x2048xbf16, #tpu.memory_space<vmem>>, vector<4x2048xbf16>
    tpu.vector_store %arg6[%c57, %c0_16], %38 {strides = array<i32>} : memref<133x2048xbf16, #tpu.memory_space<vmem>>, vector<4x2048xbf16>,
    %c3325_i32 = arith.constant 3325 : i32
    %40 = tpu.dynamic_rotate %5 by %c3325_i32 dim 1 : vector<4x3328xf32>, i32 -> vector<4x3328xf32>
    %41 = arith.truncf %40 : vector<4x3328xf32> to vector<4x3328xbf16>
    %42 = vector.extract_strided_slice %41 {offsets = [0, 256], sizes = [4, 2048], strides = [1, 1]} : vector<4x3328xbf16> to vector<4x2048xbf16>
    %c61 = arith.constant 61 : index
    %c0_17 = arith.constant 0 : index
    %43 = vector.load %arg6[%c61, %c0_17] : memref<133x2048xbf16, #tpu.memory_space<vmem>>, vector<4x2048xbf16>
    tpu.vector_store %arg6[%c61, %c0_17], %42 {strides = array<i32>} : memref<133x2048xbf16, #tpu.memory_space<vmem>>, vector<4x2048xbf16>,
    %44 = vector.extract_strided_slice %41 {offsets = [0, 640], sizes = [4, 2048], strides = [1, 1]} : vector<4x3328xbf16> to vector<4x2048xbf16>
    %c65 = arith.constant 65 : index
    %c0_18 = arith.constant 0 : index
    %45 = vector.load %arg6[%c65, %c0_18] : memref<133x2048xbf16, #tpu.memory_space<vmem>>, vector<4x2048xbf16>
    tpu.vector_store %arg6[%c65, %c0_18], %44 {strides = array<i32>} : memref<133x2048xbf16, #tpu.memory_space<vmem>>, vector<4x2048xbf16>,
    %46 = vector.extract_strided_slice %41 {offsets = [0, 1024], sizes = [4, 2048], strides = [1, 1]} : vector<4x3328xbf16> to vector<4x2048xbf16>
    %c69 = arith.constant 69 : index
    %c0_19 = arith.constant 0 : index
    %47 = vector.load %arg6[%c69, %c0_19] : memref<133x2048xbf16, #tpu.memory_space<vmem>>, vector<4x2048xbf16>
    tpu.vector_store %arg6[%c69, %c0_19], %46 {strides = array<i32>} : memref<133x2048xbf16, #tpu.memory_space<vmem>>, vector<4x2048xbf16>,
    %c3_i32 = arith.constant 3 : i32
    %48 = tpu.dynamic_rotate %5 by %c3_i32 dim 1 : vector<4x3328xf32>, i32 -> vector<4x3328xf32>
    %49 = arith.truncf %48 : vector<4x3328xf32> to vector<4x3328xbf16>
    %50 = vector.extract_strided_slice %49 {offsets = [0, 256], sizes = [4, 2048], strides = [1, 1]} : vector<4x3328xbf16> to vector<4x2048xbf16>
    %c73 = arith.constant 73 : index
    %c0_20 = arith.constant 0 : index
    %51 = vector.load %arg6[%c73, %c0_20] : memref<133x2048xbf16, #tpu.memory_space<vmem>>, vector<4x2048xbf16>
    tpu.vector_store %arg6[%c73, %c0_20], %50 {strides = array<i32>} : memref<133x2048xbf16, #tpu.memory_space<vmem>>, vector<4x2048xbf16>,
    %52 = vector.extract_strided_slice %49 {offsets = [0, 640], sizes = [4, 2048], strides = [1, 1]} : vector<4x3328xbf16> to vector<4x2048xbf16>
    %c77 = arith.constant 77 : index
    %c0_21 = arith.constant 0 : index
    %53 = vector.load %arg6[%c77, %c0_21] : memref<133x2048xbf16, #tpu.memory_space<vmem>>, vector<4x2048xbf16>
    tpu.vector_store %arg6[%c77, %c0_21], %52 {strides = array<i32>} : memref<133x2048xbf16, #tpu.memory_space<vmem>>, vector<4x2048xbf16>,
    %54 = vector.extract_strided_slice %49 {offsets = [0, 1024], sizes = [4, 2048], strides = [1, 1]} : vector<4x3328xbf16> to vector<4x2048xbf16>
    %c81 = arith.constant 81 : index
    %c0_22 = arith.constant 0 : index
    %55 = vector.load %arg6[%c81, %c0_22] : memref<133x2048xbf16, #tpu.memory_space<vmem>>, vector<4x2048xbf16>
    tpu.vector_store %arg6[%c81, %c0_22], %54 {strides = array<i32>} : memref<133x2048xbf16, #tpu.memory_space<vmem>>, vector<4x2048xbf16>,
    %c3324_i32 = arith.constant 3324 : i32
    %56 = tpu.dynamic_rotate %5 by %c3324_i32 dim 1 : vector<4x3328xf32>, i32 -> vector<4x3328xf32>
    %57 = arith.truncf %56 : vector<4x3328xf32> to vector<4x3328xbf16>
    %58 = vector.extract_strided_slice %57 {offsets = [0, 128], sizes = [4, 2048], strides = [1, 1]} : vector<4x3328xbf16> to vector<4x2048xbf16>
    %c85 = arith.constant 85 : index
    %c0_23 = arith.constant 0 : index
    %59 = vector.load %arg6[%c85, %c0_23] : memref<133x2048xbf16, #tpu.memory_space<vmem>>, vector<4x2048xbf16>
    tpu.vector_store %arg6[%c85, %c0_23], %58 {strides = array<i32>} : memref<133x2048xbf16, #tpu.memory_space<vmem>>, vector<4x2048xbf16>,
    %60 = vector.extract_strided_slice %57 {offsets = [0, 640], sizes = [4, 2048], strides = [1, 1]} : vector<4x3328xbf16> to vector<4x2048xbf16>
    %c89 = arith.constant 89 : index
    %c0_24 = arith.constant 0 : index
    %61 = vector.load %arg6[%c89, %c0_24] : memref<133x2048xbf16, #tpu.memory_space<vmem>>, vector<4x2048xbf16>
    tpu.vector_store %arg6[%c89, %c0_24], %60 {strides = array<i32>} : memref<133x2048xbf16, #tpu.memory_space<vmem>>, vector<4x2048xbf16>,
    %62 = vector.extract_strided_slice %57 {offsets = [0, 1152], sizes = [4, 2048], strides = [1, 1]} : vector<4x3328xbf16> to vector<4x2048xbf16>
    %c93 = arith.constant 93 : index
    %c0_25 = arith.constant 0 : index
    %63 = vector.load %arg6[%c93, %c0_25] : memref<133x2048xbf16, #tpu.memory_space<vmem>>, vector<4x2048xbf16>
    tpu.vector_store %arg6[%c93, %c0_25], %62 {strides = array<i32>} : memref<133x2048xbf16, #tpu.memory_space<vmem>>, vector<4x2048xbf16>,
    %c4_i32 = arith.constant 4 : i32
    %64 = tpu.dynamic_rotate %5 by %c4_i32 dim 1 : vector<4x3328xf32>, i32 -> vector<4x3328xf32>
    %65 = arith.truncf %64 : vector<4x3328xf32> to vector<4x3328xbf16>
    %66 = vector.extract_strided_slice %65 {offsets = [0, 128], sizes = [4, 2048], strides = [1, 1]} : vector<4x3328xbf16> to vector<4x2048xbf16>
    %c97 = arith.constant 97 : index
    %c0_26 = arith.constant 0 : index
    %67 = vector.load %arg6[%c97, %c0_26] : memref<133x2048xbf16, #tpu.memory_space<vmem>>, vector<4x2048xbf16>
    tpu.vector_store %arg6[%c97, %c0_26], %66 {strides = array<i32>} : memref<133x2048xbf16, #tpu.memory_space<vmem>>, vector<4x2048xbf16>,
    %68 = vector.extract_strided_slice %65 {offsets = [0, 640], sizes = [4, 2048], strides = [1, 1]} : vector<4x3328xbf16> to vector<4x2048xbf16>
    %c101 = arith.constant 101 : index
    %c0_27 = arith.constant 0 : index
    %69 = vector.load %arg6[%c101, %c0_27] : memref<133x2048xbf16, #tpu.memory_space<vmem>>, vector<4x2048xbf16>
    tpu.vector_store %arg6[%c101, %c0_27], %68 {strides = array<i32>} : memref<133x2048xbf16, #tpu.memory_space<vmem>>, vector<4x2048xbf16>,
    %70 = vector.extract_strided_slice %65 {offsets = [0, 1152], sizes = [4, 2048], strides = [1, 1]} : vector<4x3328xbf16> to vector<4x2048xbf16>
    %c105 = arith.constant 105 : index
    %c0_28 = arith.constant 0 : index
    %71 = vector.load %arg6[%c105, %c0_28] : memref<133x2048xbf16, #tpu.memory_space<vmem>>, vector<4x2048xbf16>
    tpu.vector_store %arg6[%c105, %c0_28], %70 {strides = array<i32>} : memref<133x2048xbf16, #tpu.memory_space<vmem>>, vector<4x2048xbf16>,
    %c3323_i32 = arith.constant 3323 : i32
    %72 = tpu.dynamic_rotate %5 by %c3323_i32 dim 1 : vector<4x3328xf32>, i32 -> vector<4x3328xf32>
    %73 = arith.truncf %72 : vector<4x3328xf32> to vector<4x3328xbf16>
    %74 = vector.extract_strided_slice %73 {offsets = [0, 0], sizes = [4, 2048], strides = [1, 1]} : vector<4x3328xbf16> to vector<4x2048xbf16>
    %c109 = arith.constant 109 : index
    %c0_29 = arith.constant 0 : index
    %75 = vector.load %arg6[%c109, %c0_29] : memref<133x2048xbf16, #tpu.memory_space<vmem>>, vector<4x2048xbf16>
    tpu.vector_store %arg6[%c109, %c0_29], %74 {strides = array<i32>} : memref<133x2048xbf16, #tpu.memory_space<vmem>>, vector<4x2048xbf16>,
    %76 = vector.extract_strided_slice %73 {offsets = [0, 640], sizes = [4, 2048], strides = [1, 1]} : vector<4x3328xbf16> to vector<4x2048xbf16>
    %c113 = arith.constant 113 : index
    %c0_30 = arith.constant 0 : index
    %77 = vector.load %arg6[%c113, %c0_30] : memref<133x2048xbf16, #tpu.memory_space<vmem>>, vector<4x2048xbf16>
    tpu.vector_store %arg6[%c113, %c0_30], %76 {strides = array<i32>} : memref<133x2048xbf16, #tpu.memory_space<vmem>>, vector<4x2048xbf16>,
    %78 = vector.extract_strided_slice %73 {offsets = [0, 1280], sizes = [4, 2048], strides = [1, 1]} : vector<4x3328xbf16> to vector<4x2048xbf16>
    %c117 = arith.constant 117 : index
    %c0_31 = arith.constant 0 : index
    %79 = vector.load %arg6[%c117, %c0_31] : memref<133x2048xbf16, #tpu.memory_space<vmem>>, vector<4x2048xbf16>
    tpu.vector_store %arg6[%c117, %c0_31], %78 {strides = array<i32>} : memref<133x2048xbf16, #tpu.memory_space<vmem>>, vector<4x2048xbf16>,
    %c5_i32 = arith.constant 5 : i32
    %80 = tpu.dynamic_rotate %5 by %c5_i32 dim 1 : vector<4x3328xf32>, i32 -> vector<4x3328xf32>
    %81 = arith.truncf %80 : vector<4x3328xf32> to vector<4x3328xbf16>
    %82 = vector.extract_strided_slice %81 {offsets = [0, 0], sizes = [4, 2048], strides = [1, 1]} : vector<4x3328xbf16> to vector<4x2048xbf16>
    %c121 = arith.constant 121 : index
    %c0_32 = arith.constant 0 : index
    %83 = vector.load %arg6[%c121, %c0_32] : memref<133x2048xbf16, #tpu.memory_space<vmem>>, vector<4x2048xbf16>
    tpu.vector_store %arg6[%c121, %c0_32], %82 {strides = array<i32>} : memref<133x2048xbf16, #tpu.memory_space<vmem>>, vector<4x2048xbf16>,
    %84 = vector.extract_strided_slice %81 {offsets = [0, 640], sizes = [4, 2048], strides = [1, 1]} : vector<4x3328xbf16> to vector<4x2048xbf16>
    %c125 = arith.constant 125 : index
    %c0_33 = arith.constant 0 : index
    %85 = vector.load %arg6[%c125, %c0_33] : memref<133x2048xbf16, #tpu.memory_space<vmem>>, vector<4x2048xbf16>
    tpu.vector_store %arg6[%c125, %c0_33], %84 {strides = array<i32>} : memref<133x2048xbf16, #tpu.memory_space<vmem>>, vector<4x2048xbf16>,
    %86 = vector.extract_strided_slice %81 {offsets = [0, 1280], sizes = [4, 2048], strides = [1, 1]} : vector<4x3328xbf16> to vector<4x2048xbf16>
    %c129 = arith.constant 129 : index
    %c0_34 = arith.constant 0 : index
    %87 = vector.load %arg6[%c129, %c0_34] : memref<133x2048xbf16, #tpu.memory_space<vmem>>, vector<4x2048xbf16>
    tpu.vector_store %arg6[%c129, %c0_34], %86 {strides = array<i32>} : memref<133x2048xbf16, #tpu.memory_space<vmem>>, vector<4x2048xbf16>,
    %cst = arith.constant 1.000000e+00 : bf16
    %88 = vector.broadcast %cst : bf16 to vector<1x2048xbf16>
    %c36 = arith.constant 36 : index
    %c0_35 = arith.constant 0 : index
    %89 = vector.load %arg6[%c36, %c0_35] : memref<133x2048xbf16, #tpu.memory_space<vmem>>, vector<1x2048xbf16>
    tpu.vector_store %arg6[%c36, %c0_35], %88 {strides = array<i32>} : memref<133x2048xbf16, #tpu.memory_space<vmem>>, vector<1x2048xbf16>,
    %c0_36 = arith.constant 0 : index
    %c0_37 = arith.constant 0 : index
    %90 = vector.load %arg3[%c0_36, %c0_37] : memref<40x133xbf16, #tpu.memory_space<vmem>>, vector<40x133xbf16>
    %c0_38 = arith.constant 0 : index
    %c0_39 = arith.constant 0 : index
    %91 = vector.load %arg6[%c0_38, %c0_39] : memref<133x2048xbf16, #tpu.memory_space<vmem>>, vector<133x2048xbf16>
    %cst_40 = arith.constant dense<0.000000e+00> : vector<40x2048xf32>
    %92 = tpu.matmul %90, %91, %cst_40 {dimension_numbers = #tpu.dot_dimension_numbers<[1], [0], [0], [1], [0, 0, 1, 1], [], []>} : vector<40x133xbf16>, vector<133x2048xbf16>, vector<40x2048xf32> -> vector<40x2048xf32>
    %c0_41 = arith.constant 0 : index
    %c0_42 = arith.constant 0 : index
    %c0_43 = arith.constant 0 : index
    %93 = vector.load %arg5[%c0_41, %c0_42, %c0_43] : memref<1x48x2048xf32, #tpu.memory_space<vmem>>, vector<1x40x2048xf32>
    %94 = vector.shape_cast %93 : vector<1x40x2048xf32> to vector<40x2048xf32>
    %95 = vector.shape_cast %92 : vector<40x2048xf32> to vector<1x40x2048xf32>
    tpu.vector_store %arg5[%c0_41, %c0_42, %c0_43], %95 {strides = array<i32>} : memref<1x48x2048xf32, #tpu.memory_space<vmem>>, vector<1x40x2048xf32>,
    %c0_44 = arith.constant 0 : index
    %c0_45 = arith.constant 0 : index
    %c0_46 = arith.constant 0 : index
    %96 = vector.load %arg4[%c0_44, %c0_45, %c0_46] : memref<1x8x1xf32, #tpu.memory_space<vmem>>, vector<1x8x1xf32>
    %97 = vector.shape_cast %96 : vector<1x8x1xf32> to vector<8x1xf32>
    %98 = vector.shape_cast %97 : vector<8x1xf32> to vector<8x1xf32>
    %99 = vector.broadcast %98 : vector<8x1xf32> to vector<8x2048xf32>
    %c0_47 = arith.constant 0 : index
    %c40 = arith.constant 40 : index
    %c0_48 = arith.constant 0 : index
    %100 = vector.load %arg5[%c0_47, %c40, %c0_48] : memref<1x48x2048xf32, #tpu.memory_space<vmem>>, vector<1x8x2048xf32>
    %101 = vector.shape_cast %100 : vector<1x8x2048xf32> to vector<8x2048xf32>
    %102 = vector.shape_cast %99 : vector<8x2048xf32> to vector<1x8x2048xf32>
    tpu.vector_store %arg5[%c0_47, %c40, %c0_48], %102 {strides = array<i32>} : memref<1x48x2048xf32, #tpu.memory_space<vmem>>, vector<1x8x2048xf32>,
    return
  }
  func.func @transform_0(%arg0: i32, %arg1: i32) -> (i32, i32, i32) {
    %c0_i32 = arith.constant 0 : i32
    %c0_i32_0 = arith.constant 0 : i32
    %c0_i32_1 = arith.constant 0 : i32
    return %arg0, %c0_i32, %c0_i32_0 : i32, i32, i32
  }
  func.func @transform_1(%arg0: i32, %arg1: i32) -> (i32, i32) {
    %c0_i32 = arith.constant 0 : i32
    %c0_i32_0 = arith.constant 0 : i32
    %c0_i32_1 = arith.constant 0 : i32
    return %c0_i32, %c0_i32_0 : i32, i32
  }
  func.func @transform_2(%arg0: i32, %arg1: i32) -> (i32, i32, i32) {
    %c0_i32 = arith.constant 0 : i32
    %c0_i32_0 = arith.constant 0 : i32
    %c0_i32_1 = arith.constant 0 : i32
    return %arg0, %c0_i32, %c0_i32_0 : i32, i32, i32
  }
  func.func @transform_3(%arg0: i32, %arg1: i32) -> (i32, i32, i32) {
    %c0_i32 = arith.constant 0 : i32
    %c0_i32_0 = arith.constant 0 : i32
    return %arg0, %c0_i32, %arg1 : i32, i32, i32
  }
}

</mosaic_0001>

<bundles_post_ra>
// kernel: tpu_custom_call.1
= control target key start
LH: loop header
LB: loop body
LE: loop exit
PB: predicated region body
PF: predicated region fallthrough
CT: control target
= control target key end

     0   :  { %8 = vsyncpa [#allocation4], 0  ;;  %s10420_s0 = inlined_call_operand.hbm [shape: bf16[2,4,3328], index: 0, kind: input, shape index: {}]   ;;  %s10421_s1 = inlined_call_operand.hbm [shape: bf16[40,133], index: 1, kind: input, shape index: {}]   ;;  %s10422_s2 = inlined_call_operand.vmem [shape: f32[2,8,1], index: 2, kind: input, shape index: {}]   ;;  %s10423_s3 = inlined_call_operand.hbm [shape: f32[2,48,2048], index: 3, kind: output, shape index: {}]  }
   0x1   :  { %10 = vsyncpa [#allocation4 + $0x1], 0 }
   0x2   :  { %11 = vsyncpa [#allocation7], 0 }
   0x3   :  { %12 = vsyncpa [#allocation5], 0 }
   0x4   :  { %14 = vsyncpa [#allocation5 + $0x1], 0  ;;  %s6912_s12 = smov 0   ;;  %s6914_s13 = smov 0  }
   0x5   :  { %s6916_s14 = smov 0   ;;  %s6918_s15 = smov 0  }
   0x6   :  { %s6920_s16 = smov 0   ;;  %s6922_s17 = smov 0  }
   0x7 LB: > { %s5689_s18 = sadd.s32 4294967295, %s6872_s17   ;;  %s5690_s19 = sadd.s32 4294967294, %s6872_s17   ;;  %s6872_s17 = sphi %s6922_s17, %s20_s17   ;;  %s6868_s16 = sphi %s6920_s16, %s10875_s16   ;;  %s6864_s15 = sphi %s6918_s15, %s10874_s15   ;;  %s6860_s14 = sphi %s6916_s14, %s10873_s14   ;;  %s6856_s13 = sphi %s6914_s13, %s10872_s13   ;;  %s6852_s12 = sphi %s6912_s12, %s10871_s12  }
   0x8   : > { %p52_p0 = scmp.ne.s32.totalorder %s6856_s13, %s6852_s12  ;;  %p6946_p1 = scmp.eq.s32.totalorder %s5689_s18, 0 }
   0x9   : > { %p6950_p2 = scmp.eq.s32.totalorder %s5689_s18, 1  ;;  %p131_p3 = scmp.eq.s32.totalorder %s5690_s19, 1 }
   0xa   : > { %s10538_s20 = scalar_select %p6946_p1, 1, 0 }
   0xb   : > { %s10539_s21 = scalar_select %p6950_p2, 1, 0 }
   0xc   : > { %p6956_p4 = por %p6946_p1, %p52_p0  ;;  %p5691_p5 = scmp.ge.s32.totalorder %s6872_s17, 1 }
   0xd   : > { %p6961_p6 = por %p131_p3, %p52_p0  ;;  %p138_p7 = scmp.lt.s32.totalorder %s6872_s17, 3 }
   0xe   : > { %s10540_s22 = scalar_select %p6956_p4, 1, 0 }
   0xf   : > { %s10541_s23 = scalar_select %p6961_p6, 1, 0 }
  0x10   : > { %p6966_p8 = pnand %p5691_p5, %p138_p7  ;;  %s6874_s25 = smov [#allocation6]  }
  0x11   : > { %s150_s26 = sshll.u32 %s6874_s25, 4  ;;  %s32_s28 = sadd.s32 1, %s6868_s16  ;;  %s151_s26 = int_to_ptr.vmem [resolvable:$true] %s150_s26 }
  0x12   : > { %s10542_s24 = scalar_select %p6966_p8, 1, 0 }
  0x13   : > { %p6168_p9 = pneg %p6966_p8  ;;  %s6728_s4 = scalar_lea.hbm %s10421_s1, 640 }
  0x14   : > { %p6729_p12 = scmp.ne.s32.totalorder %s10421_s1, %s6728_s4  ;;  %p6735_p5 = scmp.lt.u32.totalorder %s6728_s4, %s10421_s1 }
  0x15   : > { %p6975_p11 = pnand %p6168_p9, %p6946_p1 }
  0x17   : > { %p6730_p13 = pneg %p6975_p11 }
  0x19   : > { %p6731_p0 = pnand %p6730_p13, %p6729_p12 }
  0x1b   : > { %p6732_p3 = pneg %p6731_p0 }
  0x1d   : > { %p6737_p7 = pnand %p6735_p5, %p6732_p3 }
  0x1f   : > { %6740 = shalt.err (!%p6737_p7)
}
  0x20   : > { %s6741_s9 = scalar_lea.vmem %s151_s26, 640  ;;  %p6749_p1 = scmp.lt.s32.totalorder %s151_s26, %s151_s26 }
  0x21   : > { %p6742_p9 = scmp.ne.s32.totalorder %s151_s26, %s6741_s9  ;;  %p6750_p4 = scmp.lt.s32.totalorder %s6741_s9, %s6741_s9 }
  0x23   : > { %p6744_p10 = pnand %p6742_p9, %p6730_p13  ;;  %p6751_p8 = por %p6750_p4, %p6749_p1 }
  0x25   : > { %p6745_p6 = pneg %p6744_p10 }
  0x27   : > { %p6752_p2 = pnand %p6751_p8, %p6745_p6 }
  0x29   : > { %6755 = shalt.err (!%p6752_p2)
}
  0x2a   : > { %s6875_s10 = smov 128   ;;  %s6876_s11 = smov 8  }
  0x2b   : > { %6171 = dma.hbm_to_vmem [thread:$0]  (!%p6975_p11), %s10421_s1, 640, %s151_s26, [#allocation7], %s6875_s10, %s6875_s10, %s6876_s11  }
  0x2c   : > { %p34_p1 = scmp.ge.s32.totalorder %s32_s28, 2  ;;  %s39_s25 = sadd.s32 1, %s6860_s14 }
  0x2d   : > { %p46_p2 = scmp.ne.s32.totalorder %s6860_s14, %s6856_s13  ;;  %p47_p4 = scmp.eq.s32.totalorder %s6872_s17, 0 }
  0x2e   : > { %s10877_s28 = smov (%p34_p1, %s32_s28), 0  ;;  %p10544_p8 = scmp.ne.s32.totalorder %s10539_s21, 0 }
  0x2f   : > { %p48_p6 = por %p47_p4, %p46_p2  ;;  %s36_s30 = ssub.s32 %s6868_s16, %s10877_s28 }
  0x30   : > { %p7004_p10 = por %p10544_p8, %p46_p2  ;;  %p6181_p12 = scmp.lt.s32.totalorder %s6872_s17, 2 }
  0x31   : > { %p37_p13 = scmp.eq.s32.totalorder %s36_s30, 0  ;;  %s164_s27 = sand.u32 1, %s6860_s14  }
  0x32   : > { %s6155_s4 = smul.u32 52, %s164_s27  ;;  %p7016_p11 = pnand %p6181_p12, %p48_p6 }
  0x33   : > { %s7013_s5 = scalar_select %p37_p13, %s6860_s14, %s39_s25  }
  0x34   : > { %s6156_s26 = smul.u32 832, %s6868_s16  ;;  %s168_s6 = scalar_lea.vmem [#allocation3], %s6155_s4 }
  0x35   : > { %s176_s7 = sshll.u32 %s168_s6, 4  ;;  %s165_s11 = scalar_lea.sflag [#allocation4], %s164_s27  ;;  %s7025_s7 = int_to_ptr.vmem [resolvable:$true] %s176_s7 }
  0x36   : > { %s7023_s10 = scalar_lea.hbm %s10420_s0, %s6156_s26  ;;  %p6758_p3 = pneg %p7016_p11 }
  0x37   : > { %s6756_s18 = scalar_lea.hbm %s7023_s10, 832  ;;  %s6761_s30 = scalar_lea.hbm %s10420_s0, 1664 }
  0x38   : > { %p6757_p0 = scmp.ne.s32.totalorder %s7023_s10, %s6756_s18  ;;  %p6762_p9 = scmp.lt.u32.totalorder %s7023_s10, %s10420_s0 }
  0x39   : > { %p6763_p1 = scmp.lt.u32.totalorder %s6761_s30, %s6756_s18  ;;  %p6765_p4 = scmp.lt.u32.totalorder %s6756_s18, %s7023_s10 }
  0x3a   : > { %p6759_p5 = pnand %p6758_p3, %p6757_p0 }
  0x3b   : > { %p6764_p2 = por %p6763_p1, %p6762_p9 }
  0x3c   : > { %p6760_p7 = pneg %p6759_p5 }
  0x3d   : > { %p6766_p6 = por %p6765_p4, %p6764_p2 }
  0x3f   : > { %p6767_p8 = pnand %p6766_p6, %p6760_p7 }
  0x41   : > { %6770 = shalt.err (!%p6767_p8)
}
  0x42   : > { %s6771_s27 = scalar_lea.vmem %s7025_s7, 832  ;;  %s6877_s6 = smov [#allocation3]  }
  0x43   : > { %p6772_p12 = scmp.ne.s32.totalorder %s7025_s7, %s6771_s27  ;;  %s6776_s9 = sshll.u32 %s6877_s6, 4  ;;  %s6777_s9 = int_to_ptr.vmem [resolvable:$false] %s6776_s9 }
  0x44   : > { %s6778_s21 = scalar_lea.vmem %s6777_s9, 1664  ;;  %p6779_p5 = scmp.lt.s32.totalorder %s7025_s7, %s6777_s9 }
  0x45   : > { %p6774_p13 = pnand %p6772_p12, %p6758_p3  ;;  %p6780_p9 = scmp.lt.s32.totalorder %s6778_s21, %s6771_s27 }
  0x47   : > { %p6775_p0 = pneg %p6774_p13  ;;  %p6781_p1 = por %p6780_p9, %p6779_p5 }
  0x49   : > { %p6782_p2 = pnand %p6781_p1, %p6775_p0 }
  0x4b   : > { %6785 = shalt.err (!%p6782_p2)
}
  0x4c   : > { %6175 = dma.hbm_to_vmem [thread:$0]  (!%p7016_p11), %s7023_s10, 832, %s7025_s7, %s165_s11  }
  0x4d   : > { %p10547_p7 = scmp.ne.s32.totalorder %s10542_s24, 0 }
  0x4f   : > { %192 = sbr.rel (%p10547_p7) target bundleno = 976 (0x3d0), region = 32 }
  0x56   : > { %s7055_s18 = sand.u32 1, %s6856_s13   ;;  %p10548_p3 = scmp.ne.s32.totalorder %s10540_s22, 0 }
  0x57   : > { %s6157_s19 = smul.u32 52, %s7055_s18  ;;  %s195_s25 = scalar_lea.sflag [#allocation4], %s7055_s18 }
  0x59   : > { %s198_s30 = scalar_lea.vmem [#allocation3], %s6157_s19 }
  0x5a   : > { %6839 = dma.done.wait (%p10548_p3), %s195_s25, 832  }
  0x5b   : > { %6841 = vsyncadd (%p10548_p3), %s195_s25, 4294966464  ;;  %p10549_p4 = scmp.ne.s32.totalorder %s10538_s20, 0 }
  0x5d   : > { %6843 = dma.done.wait (%p10549_p4), [#allocation7], 640  }
  0x5e   : > { %6845 = vsyncadd (%p10549_p4), [#allocation7], 4294966656  ;;  %v7067_v0 = vld [vmem:[%s198_s30] sm:$0xff]  ;;  %v7069_v1 = vld [vmem:[%s198_s30 + $0x10] sm:$0xff]  ;;  %s6878_s20 = smov 2   ;;  %s6879_s22 = smov 126   ;;  %v270_v25 = vlaneseq }
  0x5f   : > { %10550 = vst [vmem:[#allocation12_spill] sm:$0xff] %v7069_v1  ;;  %v7071_v2 = vld [vmem:[%s198_s30 + $0x8] sm:$0xff]  ;;  %v7074_v3 = vunpack.c.h.bf16 %v7067_v0  ;;  %v7077_v4 = vunpack.c.l.bf16 %v7069_v1  ;;  %5698 = vst.sshfl [vmem:[#allocation2 + $0x40] sm:$0xf0 pattern:$0x76325410] %v7067_v0  ;;  %v7099_v10 = vunpack.c.h.bf16 %v7069_v1  ;;  %v7193_v40 = vunpack.c.l.bf16 %v7067_v0 }
  0x60   : > { %5702 = vst.sshfl [vmem:[#allocation2 + $0x60] sm:$0xf0 pattern:$0x76325410] %v7069_v1  ;;  %v7085_v5 = vunpack.c.l.bf16 %v7071_v2  ;;  %v7088_v6 = vunpack.c.h.bf16 %v7071_v2  ;;  %v7092_v7 = vld [vmem:[%s198_s30 + $0x18] sm:$0xff]  ;;  %v7094_v8 = vld [vmem:[%s198_s30 + $0x28] sm:$0xff]  ;;  %v266_v45 = vcombine.high %v7071_v2, %v7071_v2  ;;  %v375_v46 = vcombine.low %v7071_v2, %v7071_v2 }
  0x61   : > { %5706 = vst.sshfl [vmem:[#allocation2 + $0x80] sm:$0xf pattern:$0x76325410] %v7069_v1  ;;  %10551 = vst [vmem:[#allocation13_spill] sm:$0xff] %v7092_v7  ;;  %v7108_v11 = vld [vmem:[%s198_s30 + $0x20] sm:$0xff]  ;;  %v6248_v12 = vpack.i.bf16 %v7074_v3, %v7077_v4  ;;  %v554_v13 = vcombine.high %v7074_v3, %v7074_v3  ;;  %v7132_v18 = vcombine.high %v7077_v4, %v7077_v4  ;;  %v7140_v20 = vunpack.c.l.bf16 %v7092_v7 }
  0x62   : > { %5715 = vst.sshfl [vmem:[#allocation2 + $0xc8] sm:$0xf0 pattern:$0x76325410] %v7067_v0  ;;  %10552 = vst [vmem:[#allocation14_spill] sm:$0xff] %v7094_v8  ;;  %v7116_v14 = vcombine.high %v7088_v6, %v7088_v6  ;;  %v7120_v15 = vcombine.high %v7085_v5, %v7085_v5  ;;  %v558_v21 = vcombine.high %v7099_v10, %v7099_v10  ;;  %v271_v28 = vshrl.u32 %v270_v25, 7 }
  0x63   : > { %5719 = vst.sshfl [vmem:[#allocation2 + $0xe8] sm:$0xf0 pattern:$0x76325410] %v7069_v1  ;;  %v7096_v9 = vld [vmem:[%s198_s30 + $0x30] sm:$0xf]  ;;  %6249 = vrot.lane.b32.xlu1 %v6248_v12, %s6878_s20  ;;  %v6253_v16 = vpack.i.bf16 %v7085_v5, %v554_v13  ;;  %v7148_v24 = vpack.i.bf16 %v7099_v10, %v7132_v18  ;;  %v7170_v32 = vpack.i.bf16 %v7132_v18, %v554_v13 }
  0x64   : > { %5700 = vst.sshfl [vmem:[#allocation2 + $0x50] sm:$0xf0 pattern:$0x76325410] %v7071_v2  ;;  %10553 = vst [vmem:[#allocation15_spill] sm:$0xff] %v7108_v11  ;;  %v7128_v17 = vpack.i.bf16 %v7077_v4, %v7116_v14  ;;  %v7137_v19 = vpack.i.bf16 %v7088_v6, %v7120_v15  ;;  %v7153_v26 = vpack.i.bf16 %v7140_v20, %v558_v21  ;;  %s6881_s24 = smov 125  }
  0x65   : > { %5717 = vst.sshfl [vmem:[#allocation2 + $0xd8] sm:$0xf0 pattern:$0x76325410] %v7071_v2  ;;  %6254 = vrot.lane.b32.xlu0 %v6253_v16, %s6879_s22  ;;  %v6880_v22 = vmov 1983009808   ;;  %v7160_v29 = vpack.i.bf16 %v7120_v15, %v7085_v5  ;;  %v7164_v30 = vpack.i.bf16 %v7116_v14, %v7088_v6  ;;  %v7167_v31 = vpack.i.bf16 %v558_v21, %v7099_v10 }
  0x66   : > { %5704 = vst.sshfl [vmem:[#allocation2 + $0x70] sm:$0xf0 pattern:$0x76325410] %v7092_v7  ;;  %v268_v23 = vunpack.c.l.s4 %v6880_v22  ;;  %v7175_v33 = vpack.i.bf16 %v554_v13, %v7074_v3  ;;  %v436_v35 = vcombine.high %v7094_v8, %v7094_v8  ;;  %vm10428_vm0 = vcmask 1043456   ;;  %s6882_s7 = smov 3  }
  0x67   : > { %5708 = vst.sshfl [vmem:[#allocation2 + $0x90] sm:$0xf pattern:$0x76325410] %v7092_v7  ;;  %6264 = vrot.lane.b32.xlu1 %v7128_v17, %s6879_s22  ;;  %v6298_v42 = vpack.i.bf16 %v7077_v4, %v7088_v6  ;;  %v7205_v43 = vcombine.high %v7193_v40, %v7193_v40  ;;  %v281_v47 = vcombine.high %v7069_v1, %v7069_v1  ;;  %s6883_s8 = smov 124   ;;  %s6884_s10 = smov 4  }
  0x68   : > { %5721 = vst.sshfl [vmem:[#allocation2 + $0xf8] sm:$0xf0 pattern:$0x76325410] %v7092_v7  ;;  %v269_v27 = vunpack.c.0.s8 %v268_v23  ;;  %v485_v58 = vcombine.low %v7067_v0, %v7067_v0  ;;  %v6338_v59 = vpack.i.bf16 %v7132_v18, %v7120_v15  ;;  %v559_v21 = vcombine.high %v7140_v20, %v7140_v20  ;;  %s6885_s11 = smov 123   ;;  %s6886_s4 = smov 5  }
  0x69   : > { %5723 = vst.sshfl [vmem:[#allocation2 + $0x108] sm:$0xf pattern:$0x76325410] %v7092_v7  ;;  %6259 = vrot.lane.b32.xlu0 %v7137_v19, %s6879_s22  ;;  %v6323_v44 = vpack.i.bf16 %v7205_v43, %v7077_v4  ;;  %v7225_v48 = vpack.i.bf16 %v7074_v3, %v7205_v43  ;;  %vm789_vm2 = vcmask 1043458   ;;  %vm792_vm4 = vcmask 1047558  }
  0x6a   : > { %5729 = vst.sshfl [vmem:[#allocation2 + $0x138] sm:$0xf pattern:$0x76325410] %v7096_v9  ;;  %v7177_v34 = vsub.s32 %v269_v27, %v271_v28  ;;  %v7274_v27 = vpack.i.bf16 %v559_v21, %v7140_v20  ;;  %vm790_vm3 = vsmask.f32 7946 }
  0x6b   : > { %5712 = vst.sshfl [vmem:[#allocation2 + $0xb0] sm:$0xf pattern:$0x76325410] %v7094_v8  ;;  %6269 = vrot.lane.b32.xlu1 %v7148_v24, %s6879_s22  ;;  %vm793_vm5 = vsmask.f32 7962  ;;  %vm7442_vm14 = vmand %vm789_vm2, %vm790_vm3 }
  0x6c   : > { %5727 = vst.sshfl [vmem:[#allocation2 + $0x128] sm:$0xf pattern:$0x76325410] %v7094_v8  ;;  %10554 = vst [vmem:[#allocation16_spill] sm:$0xff] %v7177_v34  ;;  %v511_v36 = vrot.slane %v7096_v9, %v7177_v34  ;;  %v443_v37 = vrot.slane %v436_v35, %v7177_v34  ;;  %v273_v49 = vrot.slane %v7071_v2, %v7177_v34  ;;  %vm820_vm6 = vcmask 1040384  }
  0x6d   : > { %5710 = vst.sshfl [vmem:[#allocation2 + $0xa0] sm:$0xf pattern:$0x76325410] %v7108_v11  ;;  %6274 = vrot.lane.b32.xlu0 %v7153_v26, %s6879_s22  ;;  %v280_v50 = vrot.slane %v266_v45, %v7177_v34  ;;  %v288_v51 = vrot.slane %v7069_v1, %v7177_v34  ;;  %v374_v52 = vrot.slane %v7067_v0, %v7177_v34  ;;  %vm821_vm7 = vsmask.f32 256  ;;  %vm7454_vm12 = vmand %vm792_vm4, %vm793_vm5 }
  0x6e   : > { %5725 = vst.sshfl [vmem:[#allocation2 + $0x118] sm:$0xf pattern:$0x76325410] %v7108_v11  ;;  %v512_v38 = vrot.slane %v511_v36, 4  ;;  %v7188_v39 = vrot.slane %v443_v37, 4  ;;  %v382_v53 = vrot.slane %v375_v46, %v7177_v34  ;;  %v295_v54 = vrot.slane %v281_v47, %v7177_v34  ;;  %vm7468_vm4 = vmand %vm820_vm6, %vm821_vm7 }
  0x6f   : > { %6279 = vrot.lane.b32.xlu1 %v7160_v29, %s6878_s20  ;;  %5713 = vst.sshfl [vmem:[#allocation2 + $0xb8] sm:$0xf pattern:$0x76325410] %v436_v35  ;;  %v7237_v55 = vrot.slane %v273_v49, 4  ;;  %v334_v56 = vrot.slane %v280_v50, 4  ;;  %v492_v3 = vrot.slane %v485_v58, %v7177_v34  ;;  %v303_v0 = vrot.slane %v7092_v7, %v7177_v34  ;;  %vm7503_vm6 = vmor %vm7454_vm12, %vm7442_vm14 }
  0x70   : > { %5728 = vst.sshfl [vmem:[#allocation2 + $0x130] sm:$0xf pattern:$0x76325410] %v436_v35  ;;  %10555 = vst [vmem:[#allocation17_spill] sm:$0xff] %v7188_v39  ;;  %v513_v41 = vsel %vm10428_vm0, %v7188_v39, %v512_v38  ;;  %v7239_v57 = vrot.slane %v288_v51, 4  ;;  %v6373_v35 = vpack.i.bf16 %v7193_v40, %v7077_v4 }
  0x71   : > { %6284 = vrot.lane.b32.xlu0 %v7164_v30, %s6878_s20  ;;  %522 = vst [vmem:[#allocation2 + $0xf8] sm:$0x33] %v513_v41  ;;  %5699 = vst.sshfl [vmem:[#allocation2 + $0x48] sm:$0xf0 pattern:$0x76325410] %v375_v46  ;;  %v343_v63 = vsel %vm10428_vm0, %v7237_v55, %v334_v56 }
  0x72   : > { %5716 = vst.sshfl [vmem:[#allocation2 + $0xd0] sm:$0xf0 pattern:$0x76325410] %v375_v46  ;;  %10556 = vst [vmem:[#allocation18_spill] sm:$0xff] %v7237_v55  ;;  %v407_v60 = vrot.slane %v374_v52, 4  ;;  %v344_v2 = vsel %vm10428_vm0, %v334_v56, %v7239_v57  ;;  %v255_v56 = vunpack.c.h.bf16 %v7092_v7 }
  0x73   : > { %6294 = vrot.lane.b32.xlu1 %v7160_v29, %s6881_s24  ;;  %5707 = vst.sshfl [vmem:[#allocation2 + $0x88] sm:$0xf pattern:$0x76325410] %v281_v47  ;;  %10557 = vst [vmem:[#allocation19_spill] sm:$0xff] %v7239_v57  ;;  %v408_v61 = vrot.slane %v382_v53, 4  ;;  %v6378_v53 = vpack.i.bf16 %v559_v21, %v7116_v14  ;;  %v6398_v14 = vpack.i.bf16 %v7099_v10, %v7085_v5 }
  0x74   : > { %5722 = vst.sshfl [vmem:[#allocation2 + $0x100] sm:$0xf pattern:$0x76325410] %v281_v47  ;;  %v336_v62 = vrot.slane %v295_v54, 4  ;;  %v493_v15 = vrot.slane %v492_v3, 4  ;;  %v6388_v54 = vpack.i.bf16 %v7205_v43, %v7193_v40  ;;  %v6428_v10 = vpack.i.bf16 %v255_v56, %v7077_v4 }
  0x75   : > { %6289 = vrot.lane.b32.xlu0 %v7175_v33, %s6881_s24  ;;  %5714 = vst.sshfl [vmem:[#allocation2 + $0xc0] sm:$0xf0 pattern:$0x76325410] %v485_v58  ;;  %359 = vst [vmem:[#allocation2] sm:$0x33] %v343_v63  ;;  %v412_v6 = vsel %vm10428_vm0, %v407_v60, %v408_v61  ;;  %v413_v13 = vsel %vm10428_vm0, %v408_v61, %v7237_v55  ;;  %v7300_v58 = vpack.i.bf16 %v255_v56, %v559_v21 }
  0x76   : > { %447 = vst [vmem:[#allocation2 + $0x40] sm:$0x33] %v344_v2  ;;  %360 = vst [vmem:[#allocation2 + $0x8] sm:$0x33] %v344_v2  ;;  %v345_v12 = vsel %vm10428_vm0, %v7239_v57, %v336_v62  ;;  %v494_v22 = vsel %vm10428_vm0, %v493_v15, %v407_v60  ;;  %v560_v40 = vcombine.high %v255_v56, %v255_v56  ;;  %v7324_v4 = vunpack.c.l.bf16 %v7096_v9  ;;  %v2486_v34 = vld [vmem:[#allocation2 + $0x2c8] sm:$0x11] }
  0x77   : > { %6304 = vrot.lane.b32.xlu1 %v7148_v24, %s6881_s24  ;;  %428 = vst [vmem:[#allocation2] sm:$0xcc] %v412_v6  ;;  %497 = vst [vmem:[#allocation2 + $0x88] sm:$0xcc] %v412_v6  ;;  %v7342_v9 = vunpack.c.l.bf16 %v7108_v11  ;;  %v7380_v43 = vunpack.c.l.bf16 %v7094_v8  ;;  %vm823_vm8 = vcmask 1044484   ;;  %vm885_vm10 = vcmask 1042432  }
  0x78   : > { %429 = vst [vmem:[#allocation2 + $0x8] sm:$0xcc] %v413_v13  ;;  %448 = vst [vmem:[#allocation2 + $0x48] sm:$0x33] %v345_v12  ;;  %vm824_vm9 = vsmask.f32 4352 }
  0x79   : > { %6299 = vrot.lane.b32.xlu0 %v6298_v42, %s6881_s24  ;;  %498 = vst [vmem:[#allocation2 + $0x90] sm:$0xcc] %v413_v13  ;;  %361 = vst [vmem:[#allocation2 + $0x10] sm:$0x33] %v345_v12  ;;  %v7397_v60 = vcombine.high %v7380_v43, %v7380_v43  ;;  %vm886_vm11 = vsmask.f32 2306 }
  0x7a   : > { %515 = vst [vmem:[#allocation2 + $0xc0] sm:$0x33] %v345_v12  ;;  %496 = vst [vmem:[#allocation2 + $0x80] sm:$0xcc] %v494_v22  ;;  %vm889_vm13 = vsmask.f32 6418 }
  0x7b   : > { %6314 = vrot.lane.b32.xlu1 %v7160_v29, %s6882_s7  ;;  %v7410_v2 = vpack.i.bf16 %v7397_v60, %v7380_v43  ;;  %vm4037_vm15 = vcmask 1042434   ;;  %vm4041_vm3 = vsmask.f32 6400  ;;  %vm7477_vm2 = vmand %vm823_vm8, %vm824_vm9  ;;  %p229_p11 = scmp.lt.s32.totalorder %s6864_s15, 1  ;;  %s6158_s19 = smul.u32 768, %s7055_s18 }
  0x7c   : > { %vm7515_vm7 = vmor %vm7477_vm2, %vm7468_vm4  ;;  %s6159_s30 = smul.u32 12288, %s6864_s15 }
  0x7d   : > { %6309 = vrot.lane.b32.xlu0 %v7153_v26, %s6881_s24  ;;  %v4081_v28 = vld [vmem:[#allocation2 + $0x40] sm:$0xff]  ;;  %vm7528_vm9 = vmand %vm885_vm10, %vm886_vm11  ;;  %vm10573_vm11 = vcmask 1046532   ;;  %s10183_s26 = scalar_select %p229_p11, %s6864_s15, 1 }
  0x7e   : > { %v4073_v36 = vld [vmem:[#allocation2] sm:$0xff]  ;;  %v4090_v47 = vld [vmem:[#allocation2 + $0x88] sm:$0xff]  ;;  %vm7546_vm12 = vmand %vm10573_vm11, %vm889_vm13  ;;  %vm10578_vm13 = vcmask 1046534   ;;  %s10264_s25 = scalar_lea.vmem [#allocation8], %s6158_s19  ;;  %s5566_s15 = scalar_lea.sflag [#allocation5], %s7055_s18 }
  0x7f   : > { %6324 = vrot.lane.b32.xlu1 %v6323_v44, %s6882_s7  ;;  %v4074_v37 = vld [vmem:[#allocation2 + $0x8] sm:$0xff]  ;;  %v5861_v41 = vcombine.high %v4073_v36, %v4081_v28  ;;  %v5860_v44 = vcombine.low %v4073_v36, %v4081_v28  ;;  %s5697_s27 = sshll.u32 %s10183_s26, 3 }
  0x80   : > { %v4082_v38 = vld [vmem:[#allocation2 + $0x48] sm:$0xff]  ;;  %s232_s21 = scalar_lea.vmem %s10422_s2, %s5697_s27 }
  0x81   : > { %6319 = vrot.lane.b32.xlu0 %v7164_v30, %s6882_s7  ;;  %v5863_v42 = vcombine.high %v4074_v37, %v4082_v38  ;;  %v5862_v45 = vcombine.low %v4074_v37, %v4082_v38  ;;  %4975 = vmatprep.subr.bf16.mxu0 %v5861_v41  ;;  %v4089_v20 = vld [vmem:[#allocation2 + $0x80] sm:$0xff] }
  0x82   : > { %v4097_v46 = vld [vmem:[#allocation2 + $0xc0] sm:$0xff]  ;;  %4976 = vmatpush1.bf16.msra.mxu0 %v5860_v44 }
  0x83   : > { %6334 = vrot.lane.b32.xlu1 %v6253_v16, %s6883_s8  ;;  %v7261_v16 = vrot.slane %v303_v0, 4  ;;  %5036 = vmatprep.subr.bf16.mxu1 %v5863_v42  ;;  %v5876_v51 = vcombine.low %v4089_v20, %v4097_v46 }
  0x84   : > { %5037 = vmatpush1.bf16.msra.mxu1 %v5862_v45 }
  0x85   : > { %6329 = vrot.lane.b32.xlu0 %v7225_v48, %s6883_s8  ;;  %10558 = vst [vmem:[#allocation20_spill] sm:$0xff] %v7261_v16  ;;  %v346_v23 = vsel %vm10428_vm0, %v336_v62, %v7261_v16  ;;  %v7404_v62 = vunpack.c.h.bf16 %v7094_v8  ;;  %vm4038_vm0 = vsmask.f32 2304 }
  0x86   : > { %516 = vst [vmem:[#allocation2 + $0xc8] sm:$0x33] %v346_v23  ;;  %362 = vst [vmem:[#allocation2 + $0x18] sm:$0x33] %v346_v23 }
  0x87   : > { %6344 = vrot.lane.b32.xlu1 %v7170_v32, %s6878_s20  ;;  %449 = vst [vmem:[#allocation2 + $0x50] sm:$0x33] %v346_v23  ;;  %v7414_v3 = vcombine.high %v7404_v62, %v7404_v62  ;;  %v7420_v13 = vpack.i.bf16 %v7404_v62, %v7397_v60  ;;  %vm7552_vm14 = vmand %vm4037_vm15, %vm4038_vm0 }
  0x88   : > { %vm7565_vm0 = vmand %vm10578_vm13, %vm4041_vm3  ;;  %vm10751_vm13 = vcmask 1043456  }
  0x89   : > { %6339 = vrot.lane.b32.xlu0 %v6338_v59, %s6883_s8  ;;  %v7426_v22 = vpack.i.bf16 %v7324_v4, %v7414_v3  ;;  %v7430_v23 = vpack.i.bf16 %v7414_v3, %v7404_v62  ;;  %vm7587_vm15 = vmor %vm7546_vm12, %vm7528_vm9 }
  0x8a   : > { %vm7604_vm2 = vmor %vm7565_vm0, %vm7552_vm14  ;;  %vm4923_vm14 = vcmask 1041408  }
  0x8b   : > { %6354 = vrot.lane.b32.xlu1 %v7167_v31, %s6883_s8  ;;  %vm10757_vm0 = vmmov %vm10751_vm13 }
  0x8d   : > { %6349 = vrot.lane.b32.xlu0 %v7167_v31, %s6878_s20  ;;  %v4098_v49 = vld [vmem:[#allocation2 + $0xc8] sm:$0xff] }
  0x8e   : > { %v5879_v50 = vcombine.high %v4090_v47, %v4098_v49  ;;  %v5878_v52 = vcombine.low %v4090_v47, %v4098_v49 }
  0x8f   : > { %6364 = vrot.lane.b32.xlu1 %v7160_v29, %s6884_s10  ;;  %v5877_v29 = vcombine.high %v4089_v20, %v4097_v46 }
  0x90   : > { %5038 = vmatprep.subr.bf16.mxu1 %v5879_v50 }
  0x91   : > { %6359 = vrot.lane.b32.xlu0 %v7274_v27, %s6883_s8  ;;  %4977 = vmatprep.subr.bf16.mxu0 %v5877_v29 }
  0x92   : > { %4978 = vmatpush1.bf16.msra.mxu0 %v5876_v51  ;;  %5039 = vmatpush1.bf16.msra.mxu1 %v5878_v52 }
  0x93   : > { %6374 = vrot.lane.b32.xlu1 %v6373_v35, %s6884_s10 }
  0x95   : > { %6369 = vrot.lane.b32.xlu0 %v7164_v30, %s6884_s10 }
  0x97   : > { %6384 = vrot.lane.b32.xlu1 %v7175_v33, %s6882_s7 }
  0x99   : > { %6379 = vrot.lane.b32.xlu0 %v6378_v53, %s6881_s24 }
  0x9b   : > { %6394 = vrot.lane.b32.xlu1 %v7175_v33, %s6885_s11 }
  0x9d   : > { %6389 = vrot.lane.b32.xlu0 %v6388_v54, %s6885_s11 }
  0x9f   : > { %6404 = vrot.lane.b32.xlu1 %v7153_v26, %s6885_s11 }
  0xa1   : > { %6399 = vrot.lane.b32.xlu0 %v6398_v14, %s6885_s11 }
  0xa3   : > { %6414 = vrot.lane.b32.xlu1 %v7148_v24, %s6882_s7 }
  0xa5   : > { %6409 = vrot.lane.b32.xlu0 %v7300_v58, %s6885_s11 }
  0xa7   : > { %6424 = vrot.lane.b32.xlu1 %v7164_v30, %s6883_s8  ;;  %v6463_v30 = vpack.i.bf16 %v560_v40, %v7132_v18 }
  0xa9   : > { %6419 = vrot.lane.b32.xlu0 %v7153_v26, %s6882_s7 }
  0xab   : > { %6434 = vrot.lane.b32.xlu1 %v7225_v48, %s6884_s10 }
  0xad   : > { %6429 = vrot.lane.b32.xlu0 %v6428_v10, %s6883_s8 }
  0xaf   : > { %6444 = vrot.lane.b32.xlu1 %v7167_v31, %s6884_s10  ;;  %v7331_v31 = vcombine.high %v7324_v4, %v7324_v4 }
  0xb1   : > { %6439 = vrot.lane.b32.xlu0 %v7170_v32, %s6884_s10  ;;  %v6478_v18 = vpack.i.bf16 %v7085_v5, %v7331_v31  ;;  %v7349_v32 = vpack.i.bf16 %v7342_v9, %v560_v40  ;;  %v7357_v5 = vpack.i.bf16 %v560_v40, %v255_v56 }
  0xb3   : > { %6454 = vrot.lane.b32.xlu1 %v7137_v19, %s6885_s11 }
  0xb5   : > { %6449 = vrot.lane.b32.xlu0 %v7274_v27, %s6884_s10 }
  0xb7   : > { %6464 = vrot.lane.b32.xlu1 %v6463_v30, %s6885_s11 }
  0xb9   : > { %6459 = vrot.lane.b32.xlu0 %v7128_v17, %s6885_s11 }
  0xbb   : > { %6474 = vrot.lane.b32.xlu1 %v7175_v33, %s6886_s4  ;;  %v257_v33 = vunpack.c.h.bf16 %v7108_v11 }
  0xbd   : > { %6469 = vrot.lane.b32.xlu0 %v6388_v54, %s6886_s4 }
  0xbf   : > { %6484 = vrot.lane.b32.xlu1 %v7137_v19, %s6886_s4  ;;  %v7368_v19 = vand.u32 127, %v270_v25 }
  0xc1   : > { %6479 = vrot.lane.b32.xlu0 %v6478_v18, %s6886_s4  ;;  %vm620_vm1 = vcmp.lt.s32.totalorder %v7368_v19, 126  ;;  %vm1028_vm5 = vcmp.lt.s32.totalorder %v7368_v19, 2  ;;  %vm1389_vm8 = vcmp.lt.s32.totalorder %v7368_v19, 125  ;;  %vm1850_vm3 = vcmp.lt.s32.totalorder %v7368_v19, 3 }
  0xc2   : > { %vm2282_vm4 = vcmp.lt.s32.totalorder %v7368_v19, 124  ;;  %vm2717_vm9 = vcmp.lt.s32.totalorder %v7368_v19, 4  ;;  %vm3118_vm11 = vcmp.lt.s32.totalorder %v7368_v19, 123  ;;  %vm3623_vm12 = vcmp.lt.s32.totalorder %v7368_v19, 5 }
  0xc3   : > { %6494 = vrot.lane.b32.xlu1 %v7300_v58, %s6879_s22 }
  0xc5   : > { %6489 = vrot.lane.b32.xlu0 %v7128_v17, %s6886_s4  ;;  %v7363_v17 = vcombine.high %v7342_v9, %v7342_v9 }
  0xc7   : > { %6504 = vrot.lane.b32.xlu1 %v7274_v27, %s6878_s20  ;;  %v7386_v25 = vpack.i.bf16 %v257_v33, %v7363_v17 }
  0xc9   : > { %6499 = vrot.lane.b32.xlu0 %v7349_v32, %s6879_s22 }
  0xcb   : > { %6514 = vrot.lane.b32.xlu1 %v7153_v26, %s6886_s4  ;;  %v7375_v26 = vpack.i.bf16 %v7363_v17, %v7342_v9 }
  0xcd   : > { %6509 = vrot.lane.b32.xlu0 %v7148_v24, %s6886_s4  ;;  %v7377_v24 = vcombine.high %v257_v33, %v257_v33 }
  0xcf   : > { %6524 = vrot.lane.b32.xlu1 %v7357_v5, %s6881_s24  ;;  %v7393_v59 = vpack.i.bf16 %v7377_v24, %v257_v33  ;;  %v7401_v61 = vpack.i.bf16 %v7380_v43, %v7377_v24 }
  0xd1   : > { %6519 = vrot.lane.b32.xlu0 %v7300_v58, %s6886_s4 }
  0xd3   : > { %6534 = vrot.lane.b32.xlu1 %v7357_v5, %s6878_s20 }
  0xd5   : > { %v7388_v48 = vpop.permute.xlu1 %6249  ;;  %6529 = vrot.lane.b32.xlu0 %v7375_v26, %s6881_s24 }
  0xd6   : > { %v10431_v38 = vunpack.i.l.bf16 %v7388_v48 }
  0xd7   : > { %v6255_v63 = vpop.permute.xlu0 %6254  ;;  %6544 = vrot.lane.b32.xlu1 %v7386_v25, %s6883_s8 }
  0xd8   : > { %v6257_v0 = vunpack.i.h.bf16 %v6255_v63  ;;  %v6256_v6 = vunpack.i.l.bf16 %v6255_v63 }
  0xd9   : > { %v6265_v12 = vpop.permute.xlu1 %6264  ;;  %6539 = vrot.lane.b32.xlu0 %v7349_v32, %s6883_s8 }
  0xda   : > { %v6266_v15 = vunpack.i.l.bf16 %v6265_v12  ;;  %v6267_v27 = vunpack.i.h.bf16 %v6265_v12  ;;  %v640_v41 = vsel %vm620_vm1, %v6256_v6, %v6257_v0 }
  0xdb   : > { %v6260_v21 = vpop.permute.xlu0 %6259  ;;  %6554 = vrot.lane.b32.xlu1 %v7393_v59, %s6885_s11 }
  0xdc   : > { %v6262_v28 = vunpack.i.h.bf16 %v6260_v21  ;;  %v6261_v35 = vunpack.i.l.bf16 %v6260_v21  ;;  %v636_v53 = vsel %vm620_vm1, %v6266_v15, %v6267_v27 }
  0xdd   : > { %v6270_v42 = vpop.permute.xlu1 %6269  ;;  %6549 = vrot.lane.b32.xlu0 %v7375_v26, %s6885_s11 }
  0xde   : > { %v637_v45 = vsel %vm620_vm1, %v6262_v28, %v6266_v15  ;;  %v638_v20 = vsel %vm620_vm1, %v6261_v35, %v6262_v28  ;;  %v639_v46 = vsel %vm620_vm1, %v6257_v0, %v6261_v35  ;;  %v6272_v47 = vunpack.i.h.bf16 %v6270_v42  ;;  %v796_v0 = vld [vmem:[#allocation2 + $0x100] sm:$0xcc]  ;;  %v799_v28 = vld [vmem:[#allocation2 + $0x108] sm:$0xcc] }
  0xdf   : > { %v6031_v49 = vpack.c.bf16 %v639_v46, %v640_v41  ;;  %v7458_v50 = vpack.c.bf16 %v637_v45, %v638_v20  ;;  %v6271_v51 = vunpack.i.l.bf16 %v6270_v42  ;;  %v7460_v52 = vpop.permute.xlu0 %6274  ;;  %6564 = vrot.lane.b32.xlu1 %v7349_v32, %s6882_s7  ;;  %v827_v20 = vld [vmem:[#allocation2 + $0x140] sm:$0x11]  ;;  %v830_v46 = vld [vmem:[#allocation2 + $0x148] sm:$0x11] }
  0xe0   : > { %v10429_v14 = vunpack.i.h.bf16 %v7460_v52  ;;  %v6276_v56 = vunpack.i.l.bf16 %v7460_v52 }
  0xe1   : > { %v702_v40 = vshrl.u32 %v6031_v49, 16  ;;  %v705_v30 = vshll.u32 %v6031_v49, 16  ;;  %v710_v18 = vshrl.u32 %v7458_v50, 16  ;;  %v713_v33 = vshll.u32 %v7458_v50, 16  ;;  %v7483_v63 = vpop.permute.xlu1 %6279  ;;  %6559 = vrot.lane.b32.xlu0 %v7300_v58, %s6882_s7  ;;  %v4104_v58 = vld [vmem:[#allocation2 + $0xf8] sm:$0xff] }
  0xe2   : > { %v634_v6 = vsel %vm620_vm1, %v6271_v51, %v6272_v47  ;;  %v635_v12 = vsel %vm620_vm1, %v6267_v27, %v6271_v51  ;;  %v7495_v15 = vsel %vm620_vm1, %v6276_v56, %v10429_v14  ;;  %v633_v21 = vsel %vm620_vm1, %v6272_v47, %v6276_v56 }
  0xe3   : > { %v704_v35 = vrot.slane %v702_v40, 5  ;;  %v707_v27 = vrot.slane %v705_v30, 6  ;;  %v712_v41 = vrot.slane %v710_v18, 5  ;;  %v715_v42 = vrot.slane %v713_v33, 6  ;;  %v7507_v45 = vpop.permute.xlu0 %6284  ;;  %2699 = vrot.lane.b32.xlu1 %v7342_v9, %s6884_s10 }
  0xe4   : > { %v856_v47 = vrot.slane %v710_v18, 7  ;;  %v6033_v29 = vpack.c.bf16 %v635_v12, %v636_v53  ;;  %v7519_v49 = vpack.c.bf16 %v633_v21, %v634_v6  ;;  %v6282_v30 = vunpack.i.h.bf16 %v7483_v63  ;;  %v802_v21 = vld [vmem:[#allocation2 + $0x110] sm:$0xcc] }
  0xe5   : > { %v708_v50 = vor.u32 %v707_v27, %v704_v35  ;;  %v716_v51 = vor.u32 %v715_v42, %v712_v41  ;;  %v765_v56 = vrot.slane %v704_v35, 4  ;;  %v766_v40 = vrot.slane %v712_v41, 4  ;;  %6569 = vrot.lane.b32.xlu0 %v7357_v5, %s6884_s10  ;;  %v7540_v35 = vpop.permute.xlu1 %6294 }
  0xe6   : > { %v718_v9 = vshrl.u32 %v6033_v29, 16  ;;  %v721_v54 = vshll.u32 %v6033_v29, 16  ;;  %v726_v10 = vshrl.u32 %v7519_v49, 16  ;;  %v857_v29 = vor.u32 %v856_v47, %v713_v33 }
  0xe7   : > { %v797_v18 = vsel %vm7503_vm6, %v708_v50, %v796_v0  ;;  %v800_v5 = vsel %vm7503_vm6, %v716_v51, %v799_v28  ;;  %v828_v6 = vsel %vm7515_vm7, %v765_v56, %v827_v20  ;;  %v831_v12 = vsel %vm7515_vm7, %v766_v40, %v830_v46  ;;  %6579 = vrot.lane.b32.xlu1 %v7401_v61, %s6879_s22  ;;  %v833_v0 = vld [vmem:[#allocation2 + $0x150] sm:$0x11]  ;;  %v962_v50 = vld [vmem:[#allocation2 + $0x180] sm:$0x11]  ;;  %v836_v51 = vld [vmem:[#allocation2 + $0x158] sm:$0x11] }
  0xe8   : > { %798 = vst [vmem:[#allocation2 + $0x100] sm:$0xcc] %v797_v18  ;;  %801 = vst [vmem:[#allocation2 + $0x108] sm:$0xcc] %v800_v5  ;;  %v720_v28 = vrot.slane %v718_v9, 5  ;;  %v723_v41 = vrot.slane %v721_v54, 6  ;;  %v10432_v40 = vunpack.i.l.bf16 %v7483_v63  ;;  %v6287_v18 = vunpack.i.h.bf16 %v7507_v45  ;;  %v7559_v5 = vpop.permute.xlu0 %6289 }
  0xe9   : > { %829 = vst [vmem:[#allocation2 + $0x140] sm:$0x11] %v828_v6  ;;  %832 = vst [vmem:[#allocation2 + $0x148] sm:$0x11] %v831_v12  ;;  %v858_v42 = vrot.slane %v718_v9, 7  ;;  %v728_v20 = vrot.slane %v726_v10, 5  ;;  %6574 = vrot.lane.b32.xlu0 %v7386_v25, %s6879_s22  ;;  %v7614_v46 = vpop.permute.xlu1 %6304  ;;  %v6292_v9 = vunpack.i.h.bf16 %v7559_v5 }
  0xea   : > { %v729_v56 = vshll.u32 %v7519_v49, 16  ;;  %v7569_v33 = vor.u32 %v723_v41, %v720_v28  ;;  %v767_v47 = vrot.slane %v720_v28, 4  ;;  %v965_v6 = vld [vmem:[#allocation2 + $0x188] sm:$0x11]  ;;  %v860_v12 = vrot.slane %v726_v10, 7 }
  0xeb   : > { %v768_v49 = vrot.slane %v728_v20, 4  ;;  %v859_v14 = vor.u32 %v858_v42, %v721_v54  ;;  %v1046_v37 = vsel %vm1028_vm5, %v10432_v40, %v6282_v30  ;;  %v1043_v39 = vsel %vm1028_vm5, %v6287_v18, %v10431_v38  ;;  %6589 = vrot.lane.b32.xlu1 %v7349_v32, %s6886_s4  ;;  %v805_v42 = vld [vmem:[#allocation2 + $0x118] sm:$0xcc] }
  0xec   : > { %v731_v36 = vrot.slane %v729_v56, 6  ;;  %v803_v10 = vsel %vm7503_vm6, %v7569_v33, %v802_v21  ;;  %v834_v28 = vsel %vm7515_vm7, %v767_v47, %v833_v0  ;;  %v963_v41 = vsel %vm7515_vm7, %v767_v47, %v962_v50 }
  0xed   : > { %v837_v32 = vsel %vm7515_vm7, %v768_v49, %v836_v51  ;;  %v10583_v53 = vmov 0  ;;  %804 = vst [vmem:[#allocation2 + $0x110] sm:$0xcc] %v803_v10  ;;  %835 = vst [vmem:[#allocation2 + $0x150] sm:$0x11] %v834_v28  ;;  %v966_v27 = vsel %vm7515_vm7, %v768_v49, %v965_v6  ;;  %v6286_v0 = vunpack.i.l.bf16 %v7507_v45  ;;  %6584 = vrot.lane.b32.xlu0 %v7375_v26, %s6878_s20 }
  0xee   : > { %v10584_v53 = vsel %vm7604_vm2, 4294967295, %v10583_v53  ;;  %964 = vst [vmem:[#allocation2 + $0x180] sm:$0x11] %v963_v41  ;;  %v7608_v21 = vor.u32 %v731_v36, %v728_v20  ;;  %838 = vst [vmem:[#allocation2 + $0x158] sm:$0x11] %v837_v32  ;;  %v10434_v50 = vunpack.i.h.bf16 %v7540_v35  ;;  %v6296_v51 = vunpack.i.l.bf16 %v7540_v35 }
  0xef   : > { %10585 = vst [vmem:[#allocation21_spill] sm:$0xff] %v10584_v53  ;;  %967 = vst [vmem:[#allocation2 + $0x188] sm:$0x11] %v966_v27  ;;  %v6291_v36 = vunpack.i.l.bf16 %v7559_v5  ;;  %v10433_v20 = vunpack.i.h.bf16 %v7614_v46  ;;  %v4044_v6 = vld [vmem:[#allocation2 + $0x100] sm:$0x44]  ;;  %v1044_v10 = vsel %vm1028_vm5, %v6286_v0, %v6287_v18  ;;  %v1045_v26 = vsel %vm1028_vm5, %v6282_v30, %v6286_v0  ;;  %v7632_v5 = vpop.permute.xlu0 %6299  ;;  %6594 = vrot.lane.b32.xlu1 %v7393_v59, %s6881_s24 }
  0xf0   : > { %v892_v47 = vld [vmem:[#allocation2 + $0x140] sm:$0x77]  ;;  %v4047_v49 = vld [vmem:[#allocation2 + $0x108] sm:$0x44]  ;;  %v806_v45 = vsel %vm7503_vm6, %v7608_v21, %v805_v42  ;;  %v6306_v28 = vunpack.i.l.bf16 %v7614_v46  ;;  %v4045_v42 = vsel %vm7604_vm2, 1065369472, %v4044_v6  ;;  %v6042_v27 = vpack.c.bf16 %v1045_v26, %v1046_v37 }
  0xf1   : > { %v893_v41 = vsel %vm7587_vm15, %v857_v29, %v892_v47  ;;  %v4048_v18 = vsel %vm7604_vm2, 1065369472, %v4047_v49  ;;  %v895_v32 = vld [vmem:[#allocation2 + $0x148] sm:$0x77]  ;;  %807 = vst [vmem:[#allocation2 + $0x118] sm:$0xcc] %v806_v45  ;;  %v861_v0 = vor.u32 %v860_v12, %v729_v56  ;;  %v6043_v38 = vpack.c.bf16 %v1043_v39, %v1044_v10  ;;  %3605 = vrot.lane.b32.xlu0 %v7363_v17, %s6886_s4 }
  0xf2   : > { %894 = vst [vmem:[#allocation2 + $0x140] sm:$0x77] %v893_v41  ;;  %4046 = vst [vmem:[#allocation2 + $0x100] sm:$0x44] %v4045_v42  ;;  %v896_v30 = vsel %vm7587_vm15, %v859_v14, %v895_v32  ;;  %v1410_v29 = vsel %vm1389_vm8, %v6292_v9, %v6296_v51  ;;  %v1117_v47 = vshrl.u32 %v6042_v27, 16  ;;  %v1120_v6 = vshll.u32 %v6042_v27, 16 }
  0xf3   : > { %4049 = vst [vmem:[#allocation2 + $0x108] sm:$0x44] %v4048_v18  ;;  %897 = vst [vmem:[#allocation2 + $0x148] sm:$0x77] %v896_v30  ;;  %v1409_v37 = vsel %vm1389_vm8, %v6296_v51, %v10434_v50  ;;  %v1411_v49 = vsel %vm1389_vm8, %v6291_v36, %v6292_v9  ;;  %v1124_v14 = vshrl.u32 %v6043_v38, 16  ;;  %v1127_v56 = vshll.u32 %v6043_v38, 16  ;;  %6599 = vrot.lane.b32.xlu1 %v7393_v59, %s6878_s20  ;;  %v7668_v36 = vpop.permute.xlu1 %6314  ;;  %v7677_v27 = vpop.permute.xlu0 %6309 }
  0xf4   : > { %v6051_v39 = vpack.c.bf16 %v1410_v29, %v1411_v49  ;;  %v7660_v17 = vsel %vm1389_vm8, %v6306_v28, %v10433_v20  ;;  %v4050_v12 = vld [vmem:[#allocation2 + $0x110] sm:$0x44]  ;;  %v1119_v51 = vrot.slane %v1117_v47, 7  ;;  %v7664_v10 = vrot.slane %v1117_v47, 5  ;;  %v1279_v30 = vld [vmem:[#allocation2 + $0x1c0] sm:$0x11] }
  0xf5   : > { %v898_v45 = vld [vmem:[#allocation2 + $0x150] sm:$0x77]  ;;  %v10435_v9 = vunpack.i.h.bf16 %v7632_v5  ;;  %v4051_v26 = vsel %vm7604_vm2, 1065369472, %v4050_v12  ;;  %v1126_v42 = vrot.slane %v1124_v14, 7  ;;  %v7674_v32 = vrot.slane %v1120_v6, 6  ;;  %1379 = vrot.lane.b32.xlu0 %v7380_v43, %s6881_s24 }
  0xf6   : > { %v899_v41 = vsel %vm7587_vm15, %v861_v0, %v898_v45  ;;  %v1176_v18 = vld [vmem:[#allocation2 + $0x188] sm:$0x77]  ;;  %4052 = vst [vmem:[#allocation2 + $0x110] sm:$0x44] %v4051_v26  ;;  %v1122_v47 = vor.u32 %v1120_v6, %v1119_v51  ;;  %v7681_v49 = vrot.slane %v1124_v14, 5  ;;  %v1231_v0 = vrot.slane %v7664_v10, 4 }
  0xf7   : > { %900 = vst [vmem:[#allocation2 + $0x150] sm:$0x77] %v899_v41  ;;  %v1282_v29 = vld [vmem:[#allocation2 + $0x1c8] sm:$0x11]  ;;  %v10439_v12 = vunpack.i.h.bf16 %v7668_v36  ;;  %v7685_v40 = vor.u32 %v1127_v56, %v1126_v42  ;;  %v7687_v20 = vrot.slane %v1127_v56, 6  ;;  %v1475_v50 = vshrl.u32 %v6051_v39, 16  ;;  %2272 = vrot.lane.b32.xlu1 %v7397_v60, %s6883_s8 }
  0xf8   : > { %v4053_v45 = vld [vmem:[#allocation2 + $0x118] sm:$0x44]  ;;  %v1478_v38 = vshll.u32 %v6051_v39, 16  ;;  %v1177_v14 = vsel %vm7587_vm15, %v1122_v47, %v1176_v18  ;;  %v1232_v26 = vrot.slane %v7681_v49, 4  ;;  %v1280_v60 = vsel %vm7515_vm7, %v1231_v0, %v1279_v30  ;;  %v1586_v47 = vld [vmem:[#allocation2 + $0x200] sm:$0x11]  ;;  %v7730_v0 = vpop.permute.xlu1 %6324 }
  0xf9   : > { %10586 = vst [vmem:[#allocation22_spill] sm:$0xff] %v7685_v40  ;;  %v938_v43 = vld [vmem:[#allocation2 + $0x140] sm:$0xcc]  ;;  %v4054_v6 = vsel %vm7604_vm2, 1065369472, %v4053_v45  ;;  %v7703_v41 = vrot.slane %v1475_v50, 5  ;;  %6604 = vrot.lane.b32.xlu0 %v7401_v61, %s6883_s8  ;;  %v7720_v50 = vsel %vm1389_vm8, %v10435_v9, %v6306_v28  ;;  %v10588_v30 = vunpack.i.h.bf16 %v7540_v35 }
  0xfa   : > { %v939_v56 = vsel %vm7503_vm6, %v7569_v33, %v938_v43  ;;  %v941_v39 = vld [vmem:[#allocation2 + $0x148] sm:$0xcc]  ;;  %4055 = vst [vmem:[#allocation2 + $0x118] sm:$0x44] %v4054_v6  ;;  %1178 = vst [vmem:[#allocation2 + $0x188] sm:$0x77] %v1177_v14  ;;  %v1283_v33 = vsel %vm7515_vm7, %v1232_v26, %v1282_v29  ;;  %v1207_v29 = vor.u32 %v7687_v20, %v7681_v49  ;;  %v7738_v6 = vpop.permute.xlu0 %6319  ;;  %v10438_v14 = vunpack.i.l.bf16 %v7668_v36 }
  0xfb   : > { %v7705_v42 = vrot.slane %v1478_v38, 6  ;;  %940 = vst [vmem:[#allocation2 + $0x140] sm:$0xcc] %v939_v56  ;;  %v942_v18 = vsel %vm7503_vm6, %v7608_v21, %v941_v39  ;;  %1281 = vst [vmem:[#allocation2 + $0x1c0] sm:$0x11] %v1280_v60  ;;  %v10587_v38 = vunpack.i.l.bf16 %v7632_v5  ;;  %v1538_v45 = vrot.slane %v7703_v41, 4  ;;  %3110 = vrot.lane.b32.xlu1 %v7404_v62, %s6885_s11 }
  0xfc   : > { %943 = vst [vmem:[#allocation2 + $0x148] sm:$0xcc] %v942_v18  ;;  %1284 = vst [vmem:[#allocation2 + $0x1c8] sm:$0x11] %v1283_v33  ;;  %v6054_v28 = vpack.c.bf16 %v7660_v17, %v7720_v50  ;;  %v10436_v20 = vunpack.i.h.bf16 %v7677_v27  ;;  %v6311_v49 = vunpack.i.l.bf16 %v7677_v27  ;;  %v1589_v60 = vld [vmem:[#allocation2 + $0x208] sm:$0x11]  ;;  %v6322_v35 = vunpack.i.h.bf16 %v7738_v6 }
  0xfd   : > { %v7728_v21 = vsel %vm1389_vm8, %v10588_v30, %v10587_v38  ;;  %v1587_v26 = vsel %vm7515_vm7, %v1538_v45, %v1586_v47  ;;  %6609 = vrot.lane.b32.xlu0 %v7410_v2, %s6885_s11  ;;  %v10589_v38 = vunpack.i.h.bf16 %v7614_v46  ;;  %v1595_v45 = vld [vmem:[#allocation2 + $0x218] sm:$0x11] }
  0xfe   : > { %v6052_v43 = vpack.c.bf16 %v7728_v21, %v1409_v37  ;;  %v1499_v56 = vshrl.u32 %v6054_v28, 16  ;;  %v1502_v39 = vshll.u32 %v6054_v28, 16  ;;  %1588 = vst [vmem:[#allocation2 + $0x200] sm:$0x11] %v1587_v26  ;;  %v7755_v33 = vsel %vm1389_vm8, %v6311_v49, %v10436_v20  ;;  %v1778_v20 = vld [vmem:[#allocation2 + $0x240] sm:$0x11]  ;;  %v7786_v8 = vpop.permute.xlu0 %6329 }
  0xff   : > { %v1403_v47 = vsel %vm1389_vm8, %v10589_v38, %v6311_v49  ;;  %1840 = vrot.lane.b32.xlu1 %v7377_v24, %s6882_s7  ;;  %v7776_v49 = vsel %vm1850_vm3, %v10438_v14, %v10439_v12 }
 0x100   : > { %v1483_v37 = vshrl.u32 %v6052_v43, 16  ;;  %v1486_v18 = vshll.u32 %v6052_v43, 16  ;;  %v1501_v28 = vrot.slane %v1499_v56, 5  ;;  %v1504_v9 = vrot.slane %v1502_v39, 6 }
 0x101   : > { %v6055_v43 = vpack.c.bf16 %v7755_v33, %v1403_v47  ;;  %v1258_v26 = vld [vmem:[#allocation2 + $0x188] sm:$0xcc]  ;;  %v6061_v56 = vpack.c.bf16 %v1403_v47, %v7660_v17  ;;  %6614 = vrot.lane.b32.xlu0 %v7386_v25, %s6882_s7 }
 0x102   : > { %v7762_v51 = vrot.slane %v1483_v37, 5  ;;  %v7768_v46 = vrot.slane %v1486_v18, 6  ;;  %v7780_v37 = vpop.permute.xlu1 %6334  ;;  %v1259_v24 = vsel %vm7503_vm6, %v1207_v29, %v1258_v26  ;;  %v1319_v38 = vld [vmem:[#allocation2 + $0x1c0] sm:$0x77]  ;;  %v1541_v18 = vrot.slane %v1501_v28, 4 }
 0x103   : > { %1260 = vst [vmem:[#allocation2 + $0x188] sm:$0xcc] %v1259_v24  ;;  %v1320_v17 = vsel %vm7587_vm15, %v7685_v40, %v1319_v38  ;;  %v7793_v47 = vor.u32 %v1504_v9, %v1501_v28  ;;  %v1507_v14 = vshrl.u32 %v6055_v43, 16  ;;  %v1510_v29 = vshll.u32 %v6055_v43, 16  ;;  %6624 = vrot.lane.b32.xlu1 %v7401_v61, %s6884_s10  ;;  %v1598_v24 = vld [vmem:[#allocation2 + $0x220] sm:$0x11] }
 0x104   : > { %v1539_v30 = vrot.slane %v7762_v51, 4  ;;  %1321 = vst [vmem:[#allocation2 + $0x1c0] sm:$0x77] %v1320_v17  ;;  %v1596_v26 = vsel %vm7515_vm7, %v1541_v18, %v1595_v45  ;;  %v1779_v12 = vsel %vm7515_vm7, %v1541_v18, %v1778_v20  ;;  %v1639_v16 = vshrl.u32 %v6061_v56, 16  ;;  %v1781_v38 = vld [vmem:[#allocation2 + $0x248] sm:$0x11] }
 0x105   : > { %10590 = vst [vmem:[#allocation23_spill] sm:$0xff] %v7793_v47  ;;  %1597 = vst [vmem:[#allocation2 + $0x218] sm:$0x11] %v1596_v26  ;;  %v1509_v28 = vrot.slane %v1507_v14, 5  ;;  %v1512_v43 = vrot.slane %v1510_v29, 6  ;;  %v6321_v45 = vunpack.i.l.bf16 %v7738_v6  ;;  %v1642_v18 = vshll.u32 %v6061_v56, 16  ;;  %6619 = vrot.lane.b32.xlu0 %v7386_v25, %s6884_s10 }
 0x106   : > { %v1590_v39 = vsel %vm7515_vm7, %v1539_v30, %v1589_v60  ;;  %1780 = vst [vmem:[#allocation2 + $0x240] sm:$0x11] %v1779_v12  ;;  %v1641_v20 = vrot.slane %v1639_v16, 7  ;;  %v10591_v60 = vunpack.i.l.bf16 %v7730_v0  ;;  %v10592_v6 = vunpack.i.h.bf16 %v7668_v36  ;;  %v4113_v40 = vld [vmem:[#allocation2 + $0x140] sm:$0xff] }
 0x107   : > { %1591 = vst [vmem:[#allocation2 + $0x208] sm:$0x11] %v1590_v39  ;;  %v1542_v12 = vrot.slane %v1509_v28, 4  ;;  %v1867_v14 = vsel %vm1850_vm3, %v6321_v45, %v6322_v35  ;;  %v6336_v56 = vunpack.i.l.bf16 %v7780_v37  ;;  %v7822_v39 = vpop.permute.xlu1 %6344  ;;  %v7824_v17 = vor.u32 %v1512_v43, %v1509_v28  ;;  %616 = vrot.lane.b32.xlu1 %v7414_v3, %s6879_s22 }
 0x108   : > { %v7810_v30 = vsel %vm1850_vm3, %v6322_v35, %v10591_v60  ;;  %v1868_v16 = vsel %vm1850_vm3, %v10592_v6, %v6321_v45  ;;  %v7828_v60 = vpop.permute.xlu0 %6339  ;;  %v7834_v45 = vor.u32 %v1642_v18, %v1641_v20  ;;  %v6332_v28 = vunpack.i.h.bf16 %v7786_v8 }
 0x109   : > { %10593 = vst [vmem:[#allocation24_spill] sm:$0xff] %v7824_v17  ;;  %v6072_v29 = vpack.c.bf16 %v1867_v14, %v1868_v16  ;;  %v6078_v26 = vpack.c.bf16 %v1868_v16, %v7776_v49  ;;  %v6079_v25 = vpack.c.bf16 %v7810_v30, %v1867_v14  ;;  %v1599_v35 = vsel %vm7515_vm7, %v1542_v12, %v1598_v24 }
 0x10a   : > { %v1782_v6 = vsel %vm7515_vm7, %v1542_v12, %v1781_v38  ;;  %1600 = vst [vmem:[#allocation2 + $0x220] sm:$0x11] %v1599_v35  ;;  %6629 = vrot.lane.b32.xlu0 %v7420_v13, %s6879_s22  ;;  %v6331_v24 = vunpack.i.l.bf16 %v7786_v8  ;;  %v2305_v20 = vsel %vm2282_vm4, %v6332_v28, %v6336_v56  ;;  %v10594_v38 = vor.u32 %v7705_v42, %v7703_v41 }
 0x10b   : > { %1783 = vst [vmem:[#allocation2 + $0x248] sm:$0x11] %v1782_v6  ;;  %v1950_v43 = vshrl.u32 %v6072_v29, 16  ;;  %v1953_v16 = vshll.u32 %v6072_v29, 16  ;;  %v2038_v14 = vshrl.u32 %v6078_v26, 16  ;;  %v2041_v9 = vshll.u32 %v6078_v26, 16  ;;  %6639 = vrot.lane.b32.xlu1 %v7393_v59, %s6886_s4 }
 0x10c   : > { %v1562_v3 = vld [vmem:[#allocation2 + $0x1c0] sm:$0xcc]  ;;  %v2046_v61 = vshrl.u32 %v6079_v25, 16  ;;  %v2049_v11 = vshll.u32 %v6079_v25, 16  ;;  %v2149_v25 = vld [vmem:[#allocation2 + $0x280] sm:$0x11]  ;;  %v10595_v6 = vunpack.i.h.bf16 %v7780_v37  ;;  %v2306_v42 = vsel %vm2282_vm4, %v6331_v24, %v6332_v28 }
 0x10d   : > { %v1563_v18 = vsel %vm7503_vm6, %v10594_v38, %v1562_v3  ;;  %v1952_v12 = vrot.slane %v1950_v43, 7  ;;  %v7849_v29 = vrot.slane %v2038_v14, 5  ;;  %v7851_v26 = vrot.slane %v2041_v9, 6  ;;  %v7865_v43 = vpop.permute.xlu1 %6354  ;;  %v2152_v9 = vld [vmem:[#allocation2 + $0x288] sm:$0x11] }
 0x10e   : > { %1564 = vst [vmem:[#allocation2 + $0x1c0] sm:$0xcc] %v1563_v18  ;;  %v7855_v8 = vrot.slane %v2046_v61, 5  ;;  %v7857_v35 = vrot.slane %v2049_v11, 6  ;;  %v2304_v41 = vsel %vm2282_vm4, %v6336_v56, %v10595_v6  ;;  %v6089_v3 = vpack.c.bf16 %v2305_v20, %v2306_v42  ;;  %v7871_v11 = vpop.permute.xlu0 %6349  ;;  %6634 = vrot.lane.b32.xlu0 %v7410_v2, %s6878_s20 }
 0x10f   : > { %v7867_v14 = vor.u32 %v1953_v16, %v1952_v12  ;;  %v2101_v59 = vrot.slane %v7849_v29, 4  ;;  %v6347_v61 = vunpack.i.h.bf16 %v7822_v39  ;;  %10597 = vst [vmem:[#allocation26_spill] sm:$0xff] %v7871_v11  ;;  %v6346_v16 = vunpack.i.l.bf16 %v7822_v39  ;;  %6649 = vrot.lane.b32.xlu1 %v7420_v13, %s6881_s24 }
 0x110   : > { %v2102_v24 = vrot.slane %v7855_v8, 4  ;;  %v2372_v38 = vshrl.u32 %v6089_v3, 16  ;;  %v2375_v18 = vshll.u32 %v6089_v3, 16  ;;  %v10598_v42 = vunpack.i.l.bf16 %v7483_v63  ;;  %v2483_v63 = vld [vmem:[#allocation2 + $0x2c0] sm:$0x11] }
 0x111   : > { %10596 = vst [vmem:[#allocation25_spill] sm:$0xff] %v7867_v14  ;;  %v2150_v20 = vsel %vm7515_vm7, %v2101_v59, %v2149_v25  ;;  %v10599_v39 = vunpack.i.h.bf16 %v7388_v48  ;;  %v10444_v59 = vunpack.i.l.bf16 %v7828_v60  ;;  %v10603_v57 = vunpack.i.h.bf16 %v7828_v60 }
 0x112   : > { %2151 = vst [vmem:[#allocation2 + $0x280] sm:$0x11] %v2150_v20  ;;  %v2153_v6 = vsel %vm7515_vm7, %v2102_v24, %v2152_v9  ;;  %v1047_v56 = vsel %vm1028_vm5, %v6346_v16, %v10598_v42  ;;  %v7897_v3 = vrot.slane %v2372_v38, 5  ;;  %v7899_v28 = vrot.slane %v2375_v18, 6  ;;  %6644 = vrot.lane.b32.xlu0 %v7410_v2, %s6886_s4  ;;  %v7920_v9 = vpop.permute.xlu0 %6359 }
 0x113   : > { %v1048_v25 = vsel %vm1028_vm5, %v10599_v39, %v6346_v16  ;;  %2154 = vst [vmem:[#allocation2 + $0x288] sm:$0x11] %v2153_v6  ;;  %v10600_v24 = vunpack.i.h.bf16 %v7780_v37  ;;  %v6356_v6 = vunpack.i.l.bf16 %v7865_v43  ;;  %v6351_v18 = vunpack.i.l.bf16 %v7871_v11  ;;  %6659 = vrot.lane.b32.xlu1 %v7410_v2, %s6882_s7 }
 0x114   : > { %v6041_v20 = vpack.c.bf16 %v1047_v56, %v1048_v25  ;;  %v7913_v56 = vpop.permute.xlu1 %6364  ;;  %v2435_v42 = vrot.slane %v7897_v3, 4  ;;  %v10601_v39 = vunpack.i.l.bf16 %v7388_v48 }
 0x115   : > { %v2303_v16 = vsel %vm2282_vm4, %v10600_v24, %v10444_v59  ;;  %v10602_v59 = vunpack.i.h.bf16 %v7865_v43  ;;  %v2298_v48 = vsel %vm2282_vm4, %v10603_v57, %v6356_v6 }
 0x116   : > { %v1042_v25 = vsel %vm1028_vm5, %v10601_v39, %v6347_v61  ;;  %v1110_v12 = vshrl.u32 %v6041_v20, 16  ;;  %v1113_v37 = vshll.u32 %v6041_v20, 16  ;;  %v6090_v24 = vpack.c.bf16 %v2303_v16, %v2304_v41  ;;  %6654 = vrot.lane.b32.xlu0 %v7426_v22, %s6881_s24 }
 0x117   : > { %v2297_v38 = vsel %vm2282_vm4, %v6356_v6, %v10602_v59  ;;  %v10604_v39 = vunpack.i.h.bf16 %v7871_v11  ;;  %v2484_v2 = vsel %vm7515_vm7, %v2435_v42, %v2483_v63  ;;  %v1041_v59 = vsel %vm1028_vm5, %v6347_v61, %v6351_v18  ;;  %6664 = vrot.lane.b32.xlu1 %v7430_v23, %s6883_s8  ;;  %v1173_v61 = vld [vmem:[#allocation2 + $0x180] sm:$0x77] }
 0x118   : > { %v1112_v41 = vrot.slane %v1110_v12, 7  ;;  %v6093_v16 = vpack.c.bf16 %v2297_v38, %v2298_v48  ;;  %2485 = vst [vmem:[#allocation2 + $0x2c0] sm:$0x11] %v2484_v2  ;;  %v2380_v6 = vshrl.u32 %v6090_v24, 16  ;;  %v6044_v7 = vpack.c.bf16 %v1041_v59, %v1042_v25  ;;  %v7954_v48 = vpop.permute.xlu1 %6374  ;;  %v1285_v12 = vld [vmem:[#allocation2 + $0x1d0] sm:$0x11] }
 0x119   : > { %v7936_v20 = vsel %vm1028_vm5, %v6351_v18, %v10604_v39  ;;  %v2383_v39 = vshll.u32 %v6090_v24, 16 }
 0x11a   : > { %10605 = vst [vmem:[#allocation27_spill] sm:$0xff] %v7936_v20  ;;  %v1115_v55 = vor.u32 %v1113_v37, %v1112_v41  ;;  %v2404_v1 = vshrl.u32 %v6093_v16, 16  ;;  %v2407_v14 = vshll.u32 %v6093_v16, 16  ;;  %v7950_v63 = vrot.slane %v2380_v6, 5  ;;  %v2495_v37 = vld [vmem:[#allocation2 + $0x2e0] sm:$0x11]  ;;  %v7958_v16 = vpop.permute.xlu0 %6369  ;;  %1026 = vrot.lane.b32.xlu0 %v7404_v62, %s6878_s20 }
 0x11b   : > { %v7952_v38 = vrot.slane %v2383_v39, 6  ;;  %v1131_v18 = vshrl.u32 %v6044_v7, 16  ;;  %v1134_v42 = vshll.u32 %v6044_v7, 16  ;;  %v2643_v6 = vld [vmem:[#allocation2 + $0x300] sm:$0x11]  ;;  %6674 = vrot.lane.b32.xlu1 %v7426_v22, %s6885_s11  ;;  %s5581_s20 = sshll.u32 %s10264_s25, 4  ;;  %s10367_s20 = int_to_ptr.vmem [resolvable:$true] %s5581_s20 }
 0x11c   : > { %v1174_v25 = vsel %vm7587_vm15, %v1115_v55, %v1173_v61  ;;  %v2406_v24 = vrot.slane %v2404_v1, 5  ;;  %v2409_v2 = vrot.slane %v2407_v14, 6  ;;  %v2521_v41 = vrot.slane %v2404_v1, 7  ;;  %v1322_v20 = vld [vmem:[#allocation2 + $0x1c8] sm:$0x77] }
 0x11d   : > { %1175 = vst [vmem:[#allocation2 + $0x180] sm:$0x77] %v1174_v25  ;;  %v2436_v7 = vrot.slane %v7950_v63, 4  ;;  %v1133_v39 = vrot.slane %v1131_v18, 7  ;;  %v7965_v57 = vrot.slane %v1131_v18, 5  ;;  %v7969_v1 = vrot.slane %v1134_v42, 6 }
 0x11e   : > { %v7967_v55 = vor.u32 %v2409_v2, %v2406_v24  ;;  %v2439_v61 = vrot.slane %v2406_v24, 4  ;;  %v7976_v25 = vor.u32 %v2521_v41, %v2407_v14  ;;  %v4114_v2 = vld [vmem:[#allocation2 + $0x148] sm:$0xff]  ;;  %v4105_v14 = vld [vmem:[#allocation2 + $0x100] sm:$0xff]  ;;  %v8006_v11 = vpop.permute.xlu0 %6379 }
 0x11f   : > { %v2487_v62 = vsel %vm7515_vm7, %v2436_v7, %v2486_v34  ;;  %v7978_v59 = vor.u32 %v1134_v42, %v1133_v39  ;;  %v1233_v18 = vrot.slane %v7965_v57, 4  ;;  %v10457_v34 = vunpack.i.h.bf16 %v7920_v9  ;;  %v4106_v39 = vld [vmem:[#allocation2 + $0x108] sm:$0xff]  ;;  %6679 = vrot.lane.b32.xlu1 %v7430_v23, %s6882_s7  ;;  %s10365_s7 = scalar_lea.hbm %s10423_s3, %s6159_s30 }
 0x120   : > { %10606 = vst [vmem:[#allocation28_spill] sm:$0xff] %v7967_v55  ;;  %2488 = vst [vmem:[#allocation2 + $0x2c8] sm:$0x11] %v2487_v62  ;;  %v2496_v24 = vsel %vm7515_vm7, %v2439_v61, %v2495_v37  ;;  %v2644_v53 = vsel %vm7515_vm7, %v2439_v61, %v2643_v6  ;;  %v10608_v42 = vpack.i.bf16 %v7331_v31, %v7324_v4  ;;  %v6361_v7 = vunpack.i.l.bf16 %v7920_v9  ;;  %v7998_v61 = vpop.permute.xlu1 %6384 }
 0x121   : > { %10607 = vst [vmem:[#allocation29_spill] sm:$0xff] %v7978_v59  ;;  %2497 = vst [vmem:[#allocation2 + $0x2e0] sm:$0x11] %v2496_v24  ;;  %v1286_v37 = vsel %vm7515_vm7, %v1233_v18, %v1285_v12  ;;  %v1323_v41 = vsel %vm7587_vm15, %v7978_v59, %v1322_v20  ;;  %v5893_v6 = vcombine.high %v4105_v14, %v4113_v40  ;;  %v10609_v62 = vunpack.i.h.bf16 %v7913_v56  ;;  %v1697_v59 = vld [vmem:[#allocation2 + $0x218] sm:$0x77] }
 0x122   : > { %6669 = vrot.lane.b32.xlu0 %v10608_v42, %s6883_s8  ;;  %2645 = vst [vmem:[#allocation2 + $0x300] sm:$0x11] %v2644_v53  ;;  %1287 = vst [vmem:[#allocation2 + $0x1d0] sm:$0x11] %v1286_v37  ;;  %v10610_v24 = vunpack.i.l.bf16 %v7913_v56  ;;  %v5895_v12 = vcombine.high %v4106_v39, %v4114_v2  ;;  %v5892_v18 = vcombine.low %v4105_v14, %v4113_v40  ;;  %v10611_v37 = vunpack.i.h.bf16 %v7865_v43  ;;  %s6786_s8 = scalar_lea.vmem %s10367_s20, 12288 }
 0x123   : > { %1324 = vst [vmem:[#allocation2 + $0x1c8] sm:$0x77] %v1323_v41  ;;  %v5894_v42 = vcombine.low %v4106_v39, %v4114_v2  ;;  %v2295_v20 = vsel %vm2282_vm4, %v6361_v7, %v10457_v34  ;;  %4979 = vmatprep.subr.bf16.mxu0 %v5893_v6  ;;  %v6372_v40 = vunpack.i.h.bf16 %v7958_v16  ;;  %v6371_v39 = vunpack.i.l.bf16 %v7958_v16  ;;  %6689 = vrot.lane.b32.xlu1 %v7426_v22, %s6884_s10  ;;  %p6787_p6 = scmp.ne.s32.totalorder %s10367_s20, %s6786_s8 }
 0x124   : > { %v2737_v53 = vsel %vm2717_vm9, %v10610_v24, %v10609_v62  ;;  %v2296_v41 = vsel %vm2282_vm4, %v10611_v37, %v6361_v7  ;;  %v10458_v62 = vunpack.i.l.bf16 %v7954_v48  ;;  %v1255_v2 = vld [vmem:[#allocation2 + $0x180] sm:$0xcc]  ;;  %5040 = vmatprep.subr.bf16.mxu1 %v5895_v12  ;;  %4980 = vmatpush1.bf16.msra.mxu0 %v5892_v18  ;;  %v6387_v24 = vunpack.i.h.bf16 %v7998_v61 }
 0x125   : > { %v6094_v14 = vpack.c.bf16 %v2295_v20, %v2296_v41  ;;  %v6386_v34 = vunpack.i.l.bf16 %v7998_v61  ;;  %v10612_v43 = vor.u32 %v7674_v32, %v7664_v10  ;;  %5041 = vmatpush1.bf16.msra.mxu1 %v5894_v42  ;;  %v2735_v10 = vsel %vm2717_vm9, %v6371_v39, %v6372_v40  ;;  %v2498_v20 = vld [vmem:[#allocation2 + $0x2e8] sm:$0x11]  ;;  %p6788_p8 = pnand %p6787_p6, %p7004_p10 }
 0x126   : > { %v2734_v12 = vsel %vm2717_vm9, %v6372_v40, %v10458_v62  ;;  %3116 = vrot.lane.b32.xlu0 %v7331_v31, %s6885_s11  ;;  %v10613_v32 = vunpack.i.h.bf16 %v7913_v56 }
 0x127   : > { %v1256_v7 = vsel %vm7503_vm6, %v10612_v43, %v1255_v2  ;;  %v2412_v61 = vshrl.u32 %v6094_v14, 16  ;;  %v2415_v18 = vshll.u32 %v6094_v14, 16  ;;  %v6104_v41 = vpack.c.bf16 %v2734_v12, %v2735_v10  ;;  %v2646_v43 = vld [vmem:[#allocation2 + $0x308] sm:$0x11]  ;;  %3619 = vrot.lane.b32.xlu1 %v7324_v4, %s6886_s4  ;;  %p6789_p12 = pneg %p6788_p8 }
 0x128   : > { %1257 = vst [vmem:[#allocation2 + $0x180] sm:$0xcc] %v1256_v7  ;;  %v2736_v42 = vsel %vm2717_vm9, %v10613_v32, %v6371_v39  ;;  %v10614_v2 = vunpack.i.l.bf16 %v7668_v36  ;;  %v6381_v14 = vunpack.i.l.bf16 %v8006_v11  ;;  %v1871_v39 = vsel %vm1850_vm3, %v6386_v34, %v6387_v24  ;;  %v2989_v4 = vld [vmem:[#allocation2 + $0x348] sm:$0x11] }
 0x129   : > { %v6103_v37 = vpack.c.bf16 %v2736_v42, %v2737_v53  ;;  %v2414_v40 = vrot.slane %v2412_v61, 5  ;;  %v2417_v7 = vrot.slane %v2415_v18, 6  ;;  %v2523_v62 = vrot.slane %v2412_v61, 7 }
 0x12a   : > { %v1870_v31 = vsel %vm1850_vm3, %v6387_v24, %v10614_v2  ;;  %v1565_v32 = vld [vmem:[#allocation2 + $0x1c8] sm:$0xcc]  ;;  %v2828_v16 = vshrl.u32 %v6104_v41, 16  ;;  %v2831_v53 = vshll.u32 %v6104_v41, 16  ;;  %6684 = vrot.lane.b32.xlu0 %v7420_v13, %s6884_s10  ;;  %v10615_v36 = vor.u32 %v7768_v46, %v7762_v51  ;;  %v2986_v2 = vld [vmem:[#allocation2 + $0x340] sm:$0x11] }
 0x12b   : > { %v2821_v6 = vshrl.u32 %v6103_v37, 16  ;;  %v2824_v22 = vshll.u32 %v6103_v37, 16  ;;  %v8058_v10 = vor.u32 %v2417_v7, %v2414_v40  ;;  %v2440_v61 = vrot.slane %v2414_v40, 4  ;;  %s6889_s10 = smov [#allocation8]  }
 0x12c   : > { %v1566_v12 = vsel %vm7503_vm6, %v10615_v36, %v1565_v32  ;;  %v6071_v42 = vpack.c.bf16 %v7776_v49, %v1870_v31  ;;  %v8064_v24 = vor.u32 %v2523_v62, %v2415_v18  ;;  %v2830_v37 = vrot.slane %v2828_v16, 7  ;;  %s6790_s11 = sshll.u32 %s6889_s10, 4  ;;  %s6791_s11 = int_to_ptr.vmem [resolvable:$false] %s6790_s11 }
 0x12d   : > { %10616 = vst [vmem:[#allocation30_spill] sm:$0xff] %v8058_v10  ;;  %1567 = vst [vmem:[#allocation2 + $0x1c8] sm:$0xcc] %v1566_v12  ;;  %v2823_v13 = vrot.slane %v2821_v6, 7  ;;  %v8066_v41 = vrot.slane %v2821_v6, 5  ;;  %v2499_v51 = vsel %vm7515_vm7, %v2440_v61, %v2498_v20  ;;  %v2647_v46 = vsel %vm7515_vm7, %v2440_v61, %v2646_v43  ;;  %v8083_v20 = vpop.permute.xlu1 %6394  ;;  %p6793_p13 = scmp.lt.s32.totalorder %s10367_s20, %s6791_s11 }
 0x12e   : > { %v8072_v49 = vrot.slane %v2828_v16, 5  ;;  %v8074_v31 = vrot.slane %v2831_v53, 6  ;;  %2500 = vst [vmem:[#allocation2 + $0x2e8] sm:$0x11] %v2499_v51  ;;  %2648 = vst [vmem:[#allocation2 + $0x308] sm:$0x11] %v2647_v46  ;;  %v8078_v18 = vor.u32 %v2831_v53, %v2830_v37  ;;  %6694 = vrot.lane.b32.xlu0 %v7430_v23, %s6886_s4  ;;  %v10620_v12 = vunpack.i.h.bf16 %v8006_v11 }
 0x12f   : > { %v8076_v62 = vor.u32 %v2824_v22, %v2823_v13  ;;  %v8080_v6 = vrot.slane %v2824_v22, 6  ;;  %v2938_v40 = vrot.slane %v8066_v41, 4  ;;  %v1943_v7 = vshrl.u32 %v6071_v42, 16  ;;  %s6792_s4 = scalar_lea.vmem %s6791_s11, 24576 }
 0x130   : > { %10618 = vst [vmem:[#allocation32_spill] sm:$0xff] %v8078_v18  ;;  %v2939_v43 = vrot.slane %v8072_v49, 4  ;;  %v1946_v32 = vshll.u32 %v6071_v42, 16  ;;  %v10619_v22 = vunpack.i.h.bf16 %v7730_v0  ;;  %v10621_v61 = vunpack.i.h.bf16 %v7677_v27  ;;  %v1999_v18 = vld [vmem:[#allocation2 + $0x240] sm:$0x77]  ;;  %p6794_p0 = scmp.lt.s32.totalorder %s6792_s4, %s6786_s8 }
 0x131   : > { %10617 = vst [vmem:[#allocation31_spill] sm:$0xff] %v8076_v62  ;;  %v2987_v53 = vsel %vm7515_vm7, %v2938_v40, %v2986_v2  ;;  %v10623_v13 = vunpack.i.h.bf16 %v7632_v5  ;;  %v1945_v51 = vrot.slane %v1943_v7, 7  ;;  %v10624_v27 = vunpack.i.l.bf16 %v7632_v5  ;;  %v2002_v7 = vld [vmem:[#allocation2 + $0x248] sm:$0x77] }
 0x132   : > { %v1872_v36 = vsel %vm1850_vm3, %v10619_v22, %v6386_v34  ;;  %v8102_v23 = vsel %vm1389_vm8, %v10621_v61, %v10620_v12  ;;  %2988 = vst [vmem:[#allocation2 + $0x340] sm:$0x11] %v2987_v53  ;;  %v2990_v37 = vsel %vm7515_vm7, %v2939_v43, %v2989_v4  ;;  %v6396_v53 = vunpack.i.l.bf16 %v8083_v20  ;;  %p6795_p5 = por %p6794_p0, %p6793_p13 }
 0x133   : > { %10622 = vst [vmem:[#allocation33_spill] sm:$0xff] %v8102_v23  ;;  %v1406_v42 = vsel %vm1389_vm8, %v6381_v14, %v10623_v13  ;;  %v6070_v46 = vpack.c.bf16 %v1871_v39, %v1872_v36  ;;  %v6062_v34 = vpack.c.bf16 %v8102_v23, %v7755_v33  ;;  %2991 = vst [vmem:[#allocation2 + $0x348] sm:$0x11] %v2990_v37  ;;  %v8119_v39 = vpop.permute.xlu0 %6389  ;;  %v8122_v37 = vpop.permute.xlu1 %6404 }
 0x134   : > { %v1407_v2 = vsel %vm1389_vm8, %v10624_v27, %v6381_v14  ;;  %v6060_v40 = vpack.c.bf16 %v7720_v50, %v1406_v42  ;;  %v1948_v12 = vor.u32 %v1946_v32, %v1945_v51  ;;  %10625 = vst [vmem:[#allocation34_spill] sm:$0xff] %v8119_v39  ;;  %p6796_p9 = pnand %p6795_p5, %p6789_p12 }
 0x135   : > { %v1936_v61 = vshrl.u32 %v6070_v46, 16  ;;  %v1939_v4 = vshll.u32 %v6070_v46, 16  ;;  %v1646_v43 = vshrl.u32 %v6062_v34, 16  ;;  %v1649_v33 = vshll.u32 %v6062_v34, 16 }
 0x136   : > { %v6053_v36 = vpack.c.bf16 %v1406_v42, %v1407_v2  ;;  %v6059_v5 = vpack.c.bf16 %v1407_v2, %v7728_v21  ;;  %v1632_v13 = vshrl.u32 %v6060_v40, 16  ;;  %v2003_v50 = vsel %vm7587_vm15, %v1948_v12, %v2002_v7  ;;  %v1592_v7 = vld [vmem:[#allocation2 + $0x210] sm:$0x11] }
 0x137   : > { %v1938_v14 = vrot.slane %v1936_v61, 7  ;;  %v1648_v27 = vrot.slane %v1646_v43, 7  ;;  %v1635_v16 = vshll.u32 %v6060_v40, 16  ;;  %2004 = vst [vmem:[#allocation2 + $0x248] sm:$0x77] %v2003_v50  ;;  %v10626_v21 = vunpack.i.h.bf16 %v8083_v20 }
 0x138   : > { %v1491_v32 = vshrl.u32 %v6053_v36, 16  ;;  %v1494_v51 = vshll.u32 %v6053_v36, 16  ;;  %v1625_v46 = vshrl.u32 %v6059_v5, 16  ;;  %v1628_v22 = vshll.u32 %v6059_v5, 16  ;;  %v8140_v5 = vpop.permute.xlu0 %6399 }
 0x139   : > { %v1941_v62 = vor.u32 %v1939_v4, %v1938_v14  ;;  %v1651_v34 = vor.u32 %v1649_v33, %v1648_v27  ;;  %v1634_v42 = vrot.slane %v1632_v13, 7  ;;  %v3141_v2 = vsel %vm3118_vm11, %v6396_v53, %v10626_v21  ;;  %v1691_v13 = vld [vmem:[#allocation2 + $0x208] sm:$0x77] }
 0x13a   : > { %v8130_v23 = vrot.slane %v1491_v32, 5  ;;  %v8132_v12 = vrot.slane %v1494_v51, 6  ;;  %v1627_v40 = vrot.slane %v1625_v46, 7  ;;  %v6392_v61 = vunpack.i.h.bf16 %v8119_v39 }
 0x13b   : > { %v2000_v43 = vsel %vm7587_vm15, %v1941_v62, %v1999_v18  ;;  %v1698_v4 = vsel %vm7587_vm15, %v1651_v34, %v1697_v59  ;;  %v1637_v33 = vor.u32 %v1635_v16, %v1634_v42  ;;  %v10461_v36 = vunpack.i.l.bf16 %v8119_v39  ;;  %v8147_v18 = vpop.permute.xlu1 %6414  ;;  %v1688_v59 = vld [vmem:[#allocation2 + $0x200] sm:$0x77] }
 0x13c   : > { %2001 = vst [vmem:[#allocation2 + $0x240] sm:$0x77] %v2000_v43  ;;  %1699 = vst [vmem:[#allocation2 + $0x218] sm:$0x77] %v1698_v4  ;;  %v1540_v14 = vrot.slane %v8130_v23, 4  ;;  %v1630_v27 = vor.u32 %v1628_v22, %v1627_v40  ;;  %v3142_v62 = vsel %vm3118_vm11, %v6392_v61, %v6396_v53  ;;  %v10465_v51 = vunpack.i.h.bf16 %v8122_v37 }
 0x13d   : > { %v1692_v16 = vsel %vm7587_vm15, %v1637_v33, %v1691_v13  ;;  %v3143_v32 = vsel %vm3118_vm11, %v10461_v36, %v6392_v61  ;;  %v6406_v46 = vunpack.i.l.bf16 %v8122_v37  ;;  %v10462_v42 = vunpack.i.h.bf16 %v8140_v5 }
 0x13e   : > { %v1593_v22 = vsel %vm7515_vm7, %v1540_v14, %v1592_v7  ;;  %v1689_v53 = vsel %vm7587_vm15, %v1630_v27, %v1688_v59  ;;  %1693 = vst [vmem:[#allocation2 + $0x208] sm:$0x77] %v1692_v16  ;;  %v6113_v34 = vpack.c.bf16 %v3142_v62, %v3143_v32  ;;  %v2128_v21 = vld [vmem:[#allocation2 + $0x248] sm:$0xcc]  ;;  %v10463_v61 = vunpack.i.l.bf16 %v8140_v5 }
 0x13f   : > { %1594 = vst [vmem:[#allocation2 + $0x210] sm:$0x11] %v1593_v22  ;;  %1690 = vst [vmem:[#allocation2 + $0x200] sm:$0x77] %v1689_v53  ;;  %v8166_v40 = vsel %vm3118_vm11, %v6406_v46, %v10465_v51  ;;  %v10464_v43 = vunpack.i.h.bf16 %v8147_v18  ;;  %v6416_v7 = vunpack.i.l.bf16 %v8147_v18  ;;  %v10627_v4 = vor.u32 %v7857_v35, %v7855_v8 }
 0x140   : > { %v3212_v13 = vshrl.u32 %v6113_v34, 16  ;;  %v3215_v14 = vshll.u32 %v6113_v34, 16  ;;  %v8180_v27 = vsel %vm3118_vm11, %v10462_v42, %v6406_v46  ;;  %v10628_v62 = vunpack.i.h.bf16 %v8083_v20  ;;  %v8200_v46 = vpop.permute.xlu0 %6409 }
 0x141   : > { %v2129_v33 = vsel %vm7503_vm6, %v10627_v4, %v2128_v21  ;;  %v6118_v8 = vpack.c.bf16 %v8166_v40, %v8180_v27  ;;  %v8194_v35 = vsel %vm1850_vm3, %v6416_v7, %v10464_v43  ;;  %v10629_v16 = vunpack.i.l.bf16 %v7730_v0 }
 0x142   : > { %2130 = vst [vmem:[#allocation2 + $0x248] sm:$0xcc] %v2129_v33  ;;  %v3140_v59 = vsel %vm3118_vm11, %v10628_v62, %v10463_v61  ;;  %v8202_v20 = vrot.slane %v3212_v13, 5  ;;  %v8204_v22 = vrot.slane %v3215_v14, 6  ;;  %v3323_v33 = vld [vmem:[#allocation2 + $0x380] sm:$0x11] }
 0x143   : > { %v1865_v32 = vsel %vm1850_vm3, %v10629_v16, %v6416_v7  ;;  %v6114_v53 = vpack.c.bf16 %v3140_v59, %v3141_v2  ;;  %v2125_v4 = vld [vmem:[#allocation2 + $0x240] sm:$0xcc]  ;;  %v3252_v62 = vshrl.u32 %v6118_v8, 16  ;;  %v3255_v36 = vshll.u32 %v6118_v8, 16  ;;  %v3326_v16 = vld [vmem:[#allocation2 + $0x388] sm:$0x11] }
 0x144   : > { %v6073_v34 = vpack.c.bf16 %v1865_v32, %v7810_v30  ;;  %v6080_v0 = vpack.c.bf16 %v8194_v35, %v1865_v32  ;;  %v10630_v7 = vor.u32 %v7851_v26, %v7849_v29  ;;  %v3275_v14 = vrot.slane %v8202_v20, 4 }
 0x145   : > { %v3220_v2 = vshrl.u32 %v6114_v53, 16  ;;  %v1757_v59 = vld [vmem:[#allocation2 + $0x208] sm:$0xcc]  ;;  %v3223_v50 = vshll.u32 %v6114_v53, 16  ;;  %v3254_v42 = vrot.slane %v3252_v62, 5  ;;  %v3257_v21 = vrot.slane %v3255_v36, 6 }
 0x146   : > { %v2126_v13 = vsel %vm7503_vm6, %v10630_v7, %v2125_v4  ;;  %v1957_v8 = vshrl.u32 %v6073_v34, 16  ;;  %v1694_v61 = vld [vmem:[#allocation2 + $0x210] sm:$0x77]  ;;  %v1754_v32 = vld [vmem:[#allocation2 + $0x200] sm:$0xcc]  ;;  %v1758_v29 = vsel %vm7503_vm6, %v7824_v17, %v1757_v59  ;;  %v3324_v4 = vsel %vm7515_vm7, %v3275_v14, %v3323_v33 }
 0x147   : > { %2127 = vst [vmem:[#allocation2 + $0x240] sm:$0xcc] %v2126_v13  ;;  %v8224_v7 = vrot.slane %v3220_v2, 5  ;;  %v8226_v13 = vpop.permute.xlu1 %6424  ;;  %v1695_v36 = vsel %vm7587_vm15, %v7834_v45, %v1694_v61  ;;  %v1755_v53 = vsel %vm7503_vm6, %v7793_v47, %v1754_v32  ;;  %1759 = vst [vmem:[#allocation2 + $0x208] sm:$0xcc] %v1758_v29  ;;  %v8234_v26 = vrot.slane %v3223_v50, 6  ;;  %v8241_v29 = vpop.permute.xlu0 %6419 }
 0x148   : > { %3325 = vst [vmem:[#allocation2 + $0x380] sm:$0x11] %v3324_v4  ;;  %v3338_v62 = vld [vmem:[#allocation2 + $0x3a8] sm:$0x11]  ;;  %v3547_v59 = vld [vmem:[#allocation2 + $0x3c0] sm:$0x11]  ;;  %v8237_v30 = vor.u32 %v3257_v21, %v3254_v42  ;;  %v6411_v61 = vunpack.i.l.bf16 %v8200_v46  ;;  %v10469_v32 = vunpack.i.h.bf16 %v8226_v13  ;;  %v6421_v47 = vunpack.i.l.bf16 %v8241_v29 }
 0x149   : > { %v1960_v43 = vshll.u32 %v6073_v34, 16  ;;  %1696 = vst [vmem:[#allocation2 + $0x210] sm:$0x77] %v1695_v36  ;;  %1756 = vst [vmem:[#allocation2 + $0x200] sm:$0xcc] %v1755_v53  ;;  %v3276_v33 = vrot.slane %v8224_v7, 4  ;;  %v10635_v53 = vunpack.i.h.bf16 %v8200_v46 }
 0x14a   : > { %v3280_v14 = vrot.slane %v3254_v42, 4  ;;  %v1959_v2 = vrot.slane %v1957_v8, 7  ;;  %v2054_v51 = vshrl.u32 %v6080_v0, 16  ;;  %10631 = vst [vmem:[#allocation35_spill] sm:$0xff] %v8237_v30  ;;  %v2057_v45 = vshll.u32 %v6080_v0, 16  ;;  %10632 = vst [vmem:[#allocation36_spill] sm:$0xff] %v8241_v29 }
 0x14b   : > { %v3327_v50 = vsel %vm7515_vm7, %v3276_v33, %v3326_v16  ;;  %v4121_v42 = vld [vmem:[#allocation2 + $0x180] sm:$0xff]  ;;  %v8259_v16 = vsel %vm3118_vm11, %v6411_v61, %v10635_v53  ;;  %v3341_v17 = vld [vmem:[#allocation2 + $0x3b0] sm:$0x11] }
 0x14c   : > { %v3339_v34 = vsel %vm7515_vm7, %v3280_v14, %v3338_v62  ;;  %v3548_v4 = vsel %vm7515_vm7, %v3280_v14, %v3547_v59  ;;  %v8249_v8 = vor.u32 %v1960_v43, %v1959_v2  ;;  %3328 = vst [vmem:[#allocation2 + $0x388] sm:$0x11] %v3327_v50  ;;  %v2206_v21 = vld [vmem:[#allocation2 + $0x280] sm:$0x77]  ;;  %v8251_v0 = vrot.slane %v2054_v51, 5 }
 0x14d   : > { %3340 = vst [vmem:[#allocation2 + $0x3a8] sm:$0x11] %v3339_v34  ;;  %3549 = vst [vmem:[#allocation2 + $0x3c0] sm:$0x11] %v3548_v4  ;;  %v8253_v36 = vrot.slane %v2057_v45, 6  ;;  %v10636_v62 = vunpack.i.h.bf16 %v8122_v37  ;;  %v6426_v2 = vunpack.i.l.bf16 %v8226_v13  ;;  %v4129_v45 = vld [vmem:[#allocation2 + $0x1c0] sm:$0xff] }
 0x14e   : > { %10633 = vst [vmem:[#allocation37_spill] sm:$0xff] %v8249_v8  ;;  %10634 = vst [vmem:[#allocation38_spill] sm:$0xff] %v8251_v0  ;;  %v2155_v59 = vld [vmem:[#allocation2 + $0x290] sm:$0x11]  ;;  %v2207_v33 = vsel %vm7587_vm15, %v8249_v8, %v2206_v21  ;;  %v2103_v37 = vrot.slane %v8251_v0, 4  ;;  %v5908_v34 = vcombine.low %v4121_v42, %v4129_v45 }
 0x14f   : > { %v3131_v43 = vsel %vm3118_vm11, %v10636_v62, %v6411_v61  ;;  %2208 = vst [vmem:[#allocation2 + $0x280] sm:$0x77] %v2207_v33  ;;  %v5909_v61 = vcombine.high %v4121_v42, %v4129_v45  ;;  %v2301_v50 = vsel %vm2282_vm4, %v6426_v2, %v10469_v32  ;;  %v10637_v33 = vunpack.i.l.bf16 %v7828_v60  ;;  %v8292_v45 = vpop.permute.xlu0 %6429  ;;  %v3550_v8 = vld [vmem:[#allocation2 + $0x3c8] sm:$0x11] }
 0x150   : > { %v6119_v51 = vpack.c.bf16 %v8259_v16, %v3131_v43  ;;  %v8270_v14 = vpack.c.bf16 %v3131_v43, %v8166_v40  ;;  %v8279_v40 = vpop.permute.xlu1 %6434  ;;  %v2156_v43 = vsel %vm7515_vm7, %v2103_v37, %v2155_v59 }
 0x151   : > { %v2302_v42 = vsel %vm2282_vm4, %v10637_v33, %v6426_v2  ;;  %4981 = vmatprep.subr.bf16.mxu0 %v5909_v61  ;;  %2157 = vst [vmem:[#allocation2 + $0x290] sm:$0x11] %v2156_v43  ;;  %v10471_v2 = vunpack.i.h.bf16 %v8279_v40  ;;  %v6436_v61 = vunpack.i.l.bf16 %v8279_v40 }
 0x152   : > { %v3260_v21 = vshrl.u32 %v6119_v51, 16  ;;  %v3263_v53 = vshll.u32 %v6119_v51, 16  ;;  %v3387_v62 = vshrl.u32 %v8270_v14, 16  ;;  %v6091_v37 = vpack.c.bf16 %v2301_v50, %v2302_v42  ;;  %4982 = vmatpush1.bf16.msra.mxu0 %v5908_v34 }
 0x153   : > { %v10639_v50 = vunpack.i.h.bf16 %v8241_v29 }
 0x154   : > { %v3262_v4 = vrot.slane %v3260_v21, 5  ;;  %v3265_v39 = vrot.slane %v3263_v53, 6  ;;  %v8295_v32 = vrot.slane %v3387_v62, 7  ;;  %v2388_v43 = vshrl.u32 %v6091_v37, 16 }
 0x155   : > { %v2391_v53 = vshll.u32 %v6091_v37, 16  ;;  %v8307_v34 = vsel %vm1850_vm3, %v6421_v47, %v10639_v50  ;;  %v10641_v62 = vunpack.i.h.bf16 %v8147_v18  ;;  %v10643_v18 = vor.u32 %v7899_v28, %v7897_v3 }
 0x156   : > { %v8300_v33 = vor.u32 %v3265_v39, %v3262_v4  ;;  %v3281_v51 = vrot.slane %v3262_v4, 4  ;;  %10640 = vst [vmem:[#allocation40_spill] sm:$0xff] %v8307_v34  ;;  %v2740_v39 = vsel %vm2717_vm9, %v6436_v61, %v10471_v2  ;;  %v2459_v4 = vld [vmem:[#allocation2 + $0x280] sm:$0xcc]  ;;  %v8321_v21 = vrot.slane %v2388_v43, 5 }
 0x157   : > { %v1863_v42 = vsel %vm1850_vm3, %v10641_v62, %v6421_v47  ;;  %v2517_v50 = vrot.slane %v2388_v43, 7  ;;  %v2460_v47 = vsel %vm7503_vm6, %v10643_v18, %v2459_v4  ;;  %v2489_v62 = vld [vmem:[#allocation2 + $0x2d0] sm:$0x11]  ;;  %v8328_v2 = vrot.slane %v2391_v53, 6  ;;  %v8338_v4 = vpop.permute.xlu1 %6444 }
 0x158   : > { %10638 = vst [vmem:[#allocation39_spill] sm:$0xff] %v8300_v33  ;;  %v3342_v37 = vsel %vm7515_vm7, %v3281_v51, %v3341_v17  ;;  %v3551_v59 = vsel %vm7515_vm7, %v3281_v51, %v3550_v8  ;;  %10642 = vst [vmem:[#allocation41_spill] sm:$0xff] %v8321_v21  ;;  %v6074_v29 = vpack.c.bf16 %v1863_v42, %v8194_v35  ;;  %v2437_v8 = vrot.slane %v8321_v21, 4 }
 0x159   : > { %3343 = vst [vmem:[#allocation2 + $0x3b0] sm:$0x11] %v3342_v37  ;;  %3552 = vst [vmem:[#allocation2 + $0x3c8] sm:$0x11] %v3551_v59  ;;  %v6081_v17 = vpack.c.bf16 %v8307_v34, %v1863_v42  ;;  %v2518_v51 = vor.u32 %v2517_v50, %v2391_v53  ;;  %v10645_v43 = vunpack.i.h.bf16 %v7954_v48  ;;  %v6431_v3 = vunpack.i.l.bf16 %v8292_v45  ;;  %v2551_v37 = vld [vmem:[#allocation2 + $0x2c0] sm:$0x77] }
 0x15a   : > { %10644 = vst [vmem:[#allocation42_spill] sm:$0xff] %v8328_v2  ;;  %2461 = vst [vmem:[#allocation2 + $0x280] sm:$0xcc] %v2460_v47  ;;  %v1964_v35 = vshrl.u32 %v6074_v29, 16  ;;  %v1967_v18 = vshll.u32 %v6074_v29, 16  ;;  %v2490_v47 = vsel %vm7515_vm7, %v2437_v8, %v2489_v62  ;;  %v10646_v59 = vunpack.i.h.bf16 %v8292_v45 }
 0x15b   : > { %v2741_v28 = vsel %vm2717_vm9, %v10645_v43, %v6436_v61  ;;  %v2062_v42 = vshrl.u32 %v6081_v17, 16  ;;  %v2552_v53 = vsel %vm7587_vm15, %v2518_v51, %v2551_v37  ;;  %v2065_v50 = vshll.u32 %v6081_v17, 16  ;;  %v4130_v61 = vld [vmem:[#allocation2 + $0x1c8] sm:$0xff]  ;;  %2491 = vst [vmem:[#allocation2 + $0x2d0] sm:$0x11] %v2490_v47 }
 0x15c   : > { %v6101_v34 = vpack.c.bf16 %v2740_v39, %v2741_v28  ;;  %2553 = vst [vmem:[#allocation2 + $0x2c0] sm:$0x77] %v2552_v53  ;;  %v1966_v43 = vrot.slane %v1964_v35, 7  ;;  %v10647_v21 = vunpack.i.h.bf16 %v7920_v9  ;;  %v10648_v62 = vunpack.i.h.bf16 %v7828_v60  ;;  %v2158_v39 = vld [vmem:[#allocation2 + $0x298] sm:$0x11]  ;;  %v4122_v9 = vld [vmem:[#allocation2 + $0x188] sm:$0xff] }
 0x15d   : > { %v8346_v0 = vrot.slane %v2062_v42, 5  ;;  %v8360_v8 = vrot.slane %v2065_v50, 6  ;;  %v10649_v37 = vunpack.i.h.bf16 %v8226_v13  ;;  %v6440_v42 = vpop.permute.xlu0 %6439  ;;  %v2209_v50 = vld [vmem:[#allocation2 + $0x288] sm:$0x77]  ;;  %v5910_v2 = vcombine.low %v4122_v9, %v4130_v61  ;;  %v8372_v13 = vpop.permute.xlu1 %6454 }
 0x15e   : > { %v8354_v29 = vsel %vm2282_vm4, %v10647_v21, %v10646_v59  ;;  %v2299_v17 = vsel %vm2282_vm4, %v6431_v3, %v10648_v62  ;;  %v2807_v51 = vshrl.u32 %v6101_v34, 16  ;;  %v2810_v28 = vshll.u32 %v6101_v34, 16 }
 0x15f   : > { %v2300_v35 = vsel %vm2282_vm4, %v10649_v37, %v6431_v3  ;;  %v8366_v47 = vor.u32 %v1967_v18, %v1966_v43  ;;  %v2104_v21 = vrot.slane %v8346_v0, 4  ;;  %v5911_v59 = vcombine.high %v4122_v9, %v4130_v61  ;;  %v2870_v9 = vld [vmem:[#allocation2 + $0x300] sm:$0x77] }
 0x160   : > { %v6092_v60 = vpack.c.bf16 %v2299_v17, %v2300_v35  ;;  %v2809_v62 = vrot.slane %v2807_v51, 7  ;;  %v6446_v61 = vunpack.i.l.bf16 %v8338_v4  ;;  %v6442_v51 = vunpack.i.h.bf16 %v6440_v42 }
 0x161   : > { %10650 = vst [vmem:[#allocation43_spill] sm:$0xff] %v8366_v47  ;;  %v2159_v3 = vsel %vm7515_vm7, %v2104_v21, %v2158_v39  ;;  %v2210_v18 = vsel %vm7587_vm15, %v8366_v47, %v2209_v50  ;;  %5042 = vmatprep.subr.bf16.mxu1 %v5911_v59  ;;  %v6441_v35 = vunpack.i.l.bf16 %v6440_v42  ;;  %v10479_v21 = vunpack.i.h.bf16 %v8372_v13  ;;  %v2492_v59 = vld [vmem:[#allocation2 + $0x2d8] sm:$0x11] }
 0x162   : > { %v2396_v43 = vshrl.u32 %v6092_v60, 16  ;;  %v2399_v17 = vshll.u32 %v6092_v60, 16  ;;  %2160 = vst [vmem:[#allocation2 + $0x298] sm:$0x11] %v2159_v3  ;;  %2211 = vst [vmem:[#allocation2 + $0x288] sm:$0x77] %v2210_v18  ;;  %v2812_v37 = vor.u32 %v2810_v28, %v2809_v62  ;;  %5043 = vmatpush1.bf16.msra.mxu1 %v5910_v2  ;;  %v10651_v2 = vunpack.i.h.bf16 %v8338_v4  ;;  %v8397_v18 = vpop.permute.xlu0 %6449 }
 0x163   : > { %v2557_v50 = vld [vmem:[#allocation2 + $0x2d0] sm:$0x77]  ;;  %v2619_v47 = vld [vmem:[#allocation2 + $0x2c0] sm:$0xcc]  ;;  %v2732_v42 = vsel %vm2717_vm9, %v6442_v51, %v6446_v61  ;;  %v10652_v62 = vunpack.i.l.bf16 %v7954_v48 }
 0x164   : > { %v8380_v53 = vrot.slane %v2396_v43, 5  ;;  %v8382_v34 = vrot.slane %v2399_v17, 6  ;;  %v2519_v39 = vrot.slane %v2396_v43, 7  ;;  %v2871_v60 = vsel %vm7587_vm15, %v2812_v37, %v2870_v9 }
 0x165   : > { %v2731_v28 = vsel %vm2717_vm9, %v6446_v61, %v10651_v2  ;;  %v2733_v3 = vsel %vm2717_vm9, %v10652_v62, %v6442_v51  ;;  %v2558_v43 = vsel %vm7587_vm15, %v7976_v25, %v2557_v50  ;;  %v2620_v37 = vsel %vm7503_vm6, %v7967_v55, %v2619_v47  ;;  %2872 = vst [vmem:[#allocation2 + $0x300] sm:$0x77] %v2871_v60  ;;  %v2554_v62 = vld [vmem:[#allocation2 + $0x2c8] sm:$0x77] }
 0x166   : > { %v2438_v61 = vrot.slane %v8380_v53, 4  ;;  %2559 = vst [vmem:[#allocation2 + $0x2d0] sm:$0x77] %v2558_v43  ;;  %2621 = vst [vmem:[#allocation2 + $0x2c0] sm:$0xcc] %v2620_v37  ;;  %v2520_v48 = vor.u32 %v2519_v39, %v2399_v17  ;;  %v10653_v51 = vunpack.i.l.bf16 %v7913_v56  ;;  %v10654_v25 = vunpack.i.h.bf16 %v8279_v40 }
 0x167   : > { %v6105_v47 = vpack.c.bf16 %v2732_v42, %v2733_v3  ;;  %v6456_v43 = vunpack.i.l.bf16 %v8372_v13  ;;  %v10478_v17 = vunpack.i.h.bf16 %v8397_v18  ;;  %v6451_v40 = vunpack.i.l.bf16 %v8397_v18 }
 0x168   : > { %v2738_v2 = vsel %vm2717_vm9, %v6441_v35, %v10653_v51  ;;  %v2739_v50 = vsel %vm2717_vm9, %v10654_v25, %v6441_v35  ;;  %v2493_v60 = vsel %vm7515_vm7, %v2438_v61, %v2492_v59  ;;  %v2555_v56 = vsel %vm7587_vm15, %v2520_v48, %v2554_v62 }
 0x169   : > { %v6102_v9 = vpack.c.bf16 %v2738_v2, %v2739_v50  ;;  %2494 = vst [vmem:[#allocation2 + $0x2d8] sm:$0x11] %v2493_v60  ;;  %v2835_v39 = vshrl.u32 %v6105_v47, 16  ;;  %v2838_v37 = vshll.u32 %v6105_v47, 16  ;;  %v2462_v51 = vld [vmem:[#allocation2 + $0x288] sm:$0xcc]  ;;  %v8427_v59 = vsel %vm3118_vm11, %v6456_v43, %v10479_v21 }
 0x16a   : > { %2556 = vst [vmem:[#allocation2 + $0x2c8] sm:$0x77] %v2555_v56  ;;  %v10655_v3 = vunpack.i.l.bf16 %v8140_v5  ;;  %v10656_v48 = vor.u32 %v7952_v38, %v7950_v63  ;;  %v2992_v47 = vld [vmem:[#allocation2 + $0x350] sm:$0x11]  ;;  %v10657_v63 = vunpack.i.h.bf16 %v8338_v4 }
 0x16b   : > { %v2814_v35 = vshrl.u32 %v6102_v9, 16  ;;  %v2817_v42 = vshll.u32 %v6102_v9, 16  ;;  %v2837_v25 = vrot.slane %v2835_v39, 7  ;;  %v8438_v50 = vrot.slane %v2835_v39, 5 }
 0x16c   : > { %v3139_v61 = vsel %vm3118_vm11, %v10655_v3, %v6456_v43  ;;  %v2463_v2 = vsel %vm7503_vm6, %v10656_v48, %v2462_v51  ;;  %v8440_v9 = vrot.slane %v2838_v37, 6  ;;  %v8447_v43 = vsel %vm2717_vm9, %v6451_v40, %v10478_v17  ;;  %v2962_v56 = vld [vmem:[#allocation2 + $0x300] sm:$0xcc] }
 0x16d   : > { %2464 = vst [vmem:[#allocation2 + $0x288] sm:$0xcc] %v2463_v2  ;;  %v2816_v60 = vrot.slane %v2814_v35, 7  ;;  %v6115_v62 = vpack.c.bf16 %v8427_v59, %v3139_v61  ;;  %v2730_v38 = vsel %vm2717_vm9, %v10657_v63, %v6451_v40  ;;  %v8453_v39 = vor.u32 %v2838_v37, %v2837_v25  ;;  %v8458_v61 = vpop.permute.xlu1 %6464  ;;  %v3042_v17 = vld [vmem:[#allocation2 + $0x340] sm:$0x77] }
 0x16e   : > { %v2940_v35 = vrot.slane %v8438_v50, 4  ;;  %v6106_v3 = vpack.c.bf16 %v2730_v38, %v2731_v28  ;;  %v10659_v48 = vor.u32 %v8080_v6, %v8066_v41  ;;  %v2873_v37 = vld [vmem:[#allocation2 + $0x308] sm:$0x77]  ;;  %v3329_v6 = vld [vmem:[#allocation2 + $0x390] sm:$0x11] }
 0x16f   : > { %10658 = vst [vmem:[#allocation44_spill] sm:$0xff] %v8453_v39  ;;  %v2819_v2 = vor.u32 %v2817_v42, %v2816_v60  ;;  %v3228_v40 = vshrl.u32 %v6115_v62, 16  ;;  %v3231_v63 = vshll.u32 %v6115_v62, 16  ;;  %v3043_v28 = vsel %vm7587_vm15, %v8453_v39, %v3042_v17 }
 0x170   : > { %v2963_v4 = vsel %vm7503_vm6, %v10659_v48, %v2962_v56  ;;  %v2993_v25 = vsel %vm7515_vm7, %v2940_v35, %v2992_v47  ;;  %v2842_v38 = vshrl.u32 %v6106_v3, 16  ;;  %v2845_v51 = vshll.u32 %v6106_v3, 16  ;;  %v2560_v21 = vld [vmem:[#allocation2 + $0x2d8] sm:$0x77]  ;;  %3044 = vst [vmem:[#allocation2 + $0x340] sm:$0x77] %v3043_v28  ;;  %v6460_v48 = vpop.permute.xlu0 %6459 }
 0x171   : > { %2964 = vst [vmem:[#allocation2 + $0x300] sm:$0xcc] %v2963_v4  ;;  %v2874_v41 = vsel %vm7587_vm15, %v2819_v2, %v2873_v37  ;;  %2994 = vst [vmem:[#allocation2 + $0x350] sm:$0x11] %v2993_v25  ;;  %v8472_v42 = vrot.slane %v3228_v40, 5  ;;  %v8474_v60 = vrot.slane %v3231_v63, 6  ;;  %v10480_v62 = vunpack.i.h.bf16 %v8458_v61  ;;  %v8523_v2 = vpop.permute.xlu1 %6474 }
 0x172   : > { %v2561_v47 = vsel %vm7587_vm15, %v8064_v24, %v2560_v21  ;;  %v2622_v17 = vld [vmem:[#allocation2 + $0x2c8] sm:$0xcc]  ;;  %2875 = vst [vmem:[#allocation2 + $0x308] sm:$0x77] %v2874_v41  ;;  %v2844_v56 = vrot.slane %v2842_v38, 7  ;;  %v8480_v35 = vrot.slane %v2842_v38, 5  ;;  %v10661_v24 = vunpack.i.h.bf16 %v8200_v46 }
 0x173   : > { %10660 = vst [vmem:[#allocation45_spill] sm:$0xff] %v8472_v42  ;;  %v8482_v3 = vrot.slane %v2845_v51, 6  ;;  %2562 = vst [vmem:[#allocation2 + $0x2d8] sm:$0x77] %v2561_v47  ;;  %v2623_v4 = vsel %vm7503_vm6, %v8058_v10, %v2622_v17  ;;  %v3277_v40 = vrot.slane %v8472_v42, 4  ;;  %v6466_v47 = vunpack.i.l.bf16 %v8458_v61  ;;  %v8539_v25 = vld [vmem:[#allocation2 + $0x240] sm:$0xff] }
 0x174   : > { %v2995_v63 = vld [vmem:[#allocation2 + $0x358] sm:$0x11]  ;;  %v8496_v21 = vsel %vm3118_vm11, %v10661_v24, %v10480_v62  ;;  %2624 = vst [vmem:[#allocation2 + $0x2c8] sm:$0xcc] %v2623_v4  ;;  %v8498_v37 = vor.u32 %v2845_v51, %v2844_v56  ;;  %v2941_v28 = vrot.slane %v8480_v35, 4  ;;  %v6462_v17 = vunpack.i.h.bf16 %v6460_v48 }
 0x175   : > { %v8505_v38 = vpack.c.bf16 %v8496_v21, %v8259_v16  ;;  %v3330_v41 = vsel %vm7515_vm7, %v3277_v40, %v3329_v6  ;;  %v3045_v46 = vld [vmem:[#allocation2 + $0x348] sm:$0x77]  ;;  %v6461_v24 = vunpack.i.l.bf16 %v6460_v48  ;;  %v10663_v51 = vshll.u32 %v8270_v14, 16  ;;  %v8521_v40 = vld [vmem:[#allocation2 + $0x200] sm:$0xff]  ;;  %v8559_v55 = vpop.permute.xlu1 %6484 }
 0x176   : > { %10662 = vst [vmem:[#allocation46_spill] sm:$0xff] %v8498_v37  ;;  %3331 = vst [vmem:[#allocation2 + $0x390] sm:$0x11] %v3330_v41  ;;  %v2996_v4 = vsel %vm7515_vm7, %v2941_v28, %v2995_v63  ;;  %v3046_v16 = vsel %vm7587_vm15, %v8498_v37, %v3045_v46  ;;  %v10664_v14 = vunpack.i.h.bf16 %v8140_v5  ;;  %v3135_v48 = vsel %vm3118_vm11, %v6462_v17, %v6466_v47  ;;  %v4138_v37 = vld [vmem:[#allocation2 + $0x208] sm:$0xff] }
 0x177   : > { %v8513_v56 = vor.u32 %v10663_v51, %v8295_v32  ;;  %v3394_v6 = vshrl.u32 %v8505_v38, 16  ;;  %2997 = vst [vmem:[#allocation2 + $0x358] sm:$0x11] %v2996_v4  ;;  %3047 = vst [vmem:[#allocation2 + $0x348] sm:$0x77] %v3046_v16  ;;  %v3136_v63 = vsel %vm3118_vm11, %v6461_v24, %v6462_v17  ;;  %v10665_v28 = vunpack.i.h.bf16 %v8372_v13 }
 0x178   : > { %v3134_v32 = vsel %vm3118_vm11, %v6466_v47, %v10664_v14  ;;  %v3299_v46 = vld [vmem:[#allocation2 + $0x340] sm:$0xcc]  ;;  %v10666_v47 = vor.u32 %v8204_v22, %v8202_v20  ;;  %v6122_v62 = vpack.c.bf16 %v3135_v48, %v3136_v63  ;;  %v3332_v51 = vld [vmem:[#allocation2 + $0x398] sm:$0x11] }
 0x179   : > { %v3137_v41 = vsel %vm3118_vm11, %v10665_v28, %v6461_v24  ;;  %v6123_v4 = vpack.c.bf16 %v8180_v27, %v3134_v32  ;;  %v6117_v16 = vpack.c.bf16 %v3134_v32, %v3135_v48  ;;  %v2965_v14 = vld [vmem:[#allocation2 + $0x308] sm:$0xcc]  ;;  %v5925_v24 = vcombine.high %v8521_v40, %v8539_v25 }
 0x17a   : > { %v6116_v5 = vpack.c.bf16 %v3136_v63, %v3137_v41  ;;  %v3300_v17 = vsel %vm7503_vm6, %v10666_v47, %v3299_v46  ;;  %v6121_v13 = vpack.c.bf16 %v3137_v41, %v8427_v59  ;;  %v10667_v27 = vor.u32 %v8074_v31, %v8072_v49  ;;  %v8557_v41 = vpop.permute.xlu0 %6469 }
 0x17b   : > { %3301 = vst [vmem:[#allocation2 + $0x340] sm:$0xcc] %v3300_v17  ;;  %v8555_v28 = vrot.slane %v3394_v6, 7  ;;  %v3380_v20 = vshrl.u32 %v6123_v4, 16  ;;  %v3383_v22 = vshll.u32 %v6123_v4, 16  ;;  %v3244_v48 = vshrl.u32 %v6117_v16, 16  ;;  %4983 = vmatprep.subr.bf16.mxu0 %v5925_v24 }
 0x17c   : > { %v2966_v32 = vsel %vm7503_vm6, %v10667_v27, %v2965_v14  ;;  %v3236_v46 = vshrl.u32 %v6116_v5, 16  ;;  %v3239_v59 = vshll.u32 %v6116_v5, 16  ;;  %v3247_v63 = vshll.u32 %v6117_v16, 16 }
 0x17d   : > { %2967 = vst [vmem:[#allocation2 + $0x308] sm:$0xcc] %v2966_v32  ;;  %v3382_v47 = vrot.slane %v3380_v20, 7  ;;  %v3366_v10 = vshrl.u32 %v6121_v13, 16  ;;  %v3369_v49 = vshll.u32 %v6121_v13, 16  ;;  %v3373_v31 = vshrl.u32 %v6122_v62, 16 }
 0x17e   : > { %v3435_v14 = vld [vmem:[#allocation2 + $0x390] sm:$0x77]  ;;  %v8561_v6 = vrot.slane %v3236_v46, 5  ;;  %v8563_v17 = vrot.slane %v3239_v59, 6  ;;  %v8565_v4 = vrot.slane %v3244_v48, 5  ;;  %v8567_v5 = vrot.slane %v3247_v63, 6 }
 0x17f   : > { %v3302_v16 = vld [vmem:[#allocation2 + $0x348] sm:$0xcc]  ;;  %v3385_v24 = vor.u32 %v3383_v22, %v3382_v47  ;;  %v3368_v27 = vrot.slane %v3366_v10, 7  ;;  %v3375_v32 = vrot.slane %v3373_v31, 7  ;;  %v3376_v20 = vshll.u32 %v6122_v62, 16 }
 0x180   : > { %10668 = vst [vmem:[#allocation47_spill] sm:$0xff] %v8561_v6  ;;  %10669 = vst [vmem:[#allocation48_spill] sm:$0xff] %v8563_v17  ;;  %v10672_v13 = vor.u32 %v8234_v26, %v8224_v7  ;;  %v3335_v46 = vld [vmem:[#allocation2 + $0x3a0] sm:$0x11]  ;;  %v3278_v63 = vrot.slane %v8561_v6, 4  ;;  %v3279_v62 = vrot.slane %v8565_v4, 4  ;;  %v5924_v48 = vcombine.low %v8521_v40, %v8539_v25 }
 0x181   : > { %10670 = vst [vmem:[#allocation49_spill] sm:$0xff] %v8565_v4  ;;  %10671 = vst [vmem:[#allocation50_spill] sm:$0xff] %v8567_v5  ;;  %v3436_v10 = vsel %vm7587_vm15, %v3385_v24, %v3435_v14  ;;  %v3371_v22 = vor.u32 %v3369_v49, %v3368_v27  ;;  %v3378_v26 = vor.u32 %v3376_v20, %v3375_v32  ;;  %v4146_v7 = vld [vmem:[#allocation2 + $0x248] sm:$0xff]  ;;  %v3429_v31 = vld [vmem:[#allocation2 + $0x380] sm:$0x77]  ;;  %v8595_v27 = vpop.permute.xlu1 %6494  ;;  %v6472_v25 = vunpack.i.h.bf16 %v8557_v41 }
 0x182   : > { %v3303_v39 = vsel %vm7503_vm6, %v10672_v13, %v3302_v16  ;;  %3437 = vst [vmem:[#allocation2 + $0x390] sm:$0x77] %v3436_v10  ;;  %v3333_v47 = vsel %vm7515_vm7, %v3278_v63, %v3332_v51  ;;  %v3432_v16 = vld [vmem:[#allocation2 + $0x388] sm:$0x77]  ;;  %v5927_v13 = vcombine.high %v4138_v37, %v4146_v7  ;;  %v5926_v59 = vcombine.low %v4138_v37, %v4146_v7 }
 0x183   : > { %3304 = vst [vmem:[#allocation2 + $0x348] sm:$0xcc] %v3303_v39  ;;  %v8586_v39 = vpop.permute.xlu0 %6479  ;;  %3334 = vst [vmem:[#allocation2 + $0x398] sm:$0x11] %v3333_v47  ;;  %v3336_v14 = vsel %vm7515_vm7, %v3279_v62, %v3335_v46  ;;  %v3430_v49 = vsel %vm7587_vm15, %v3371_v22, %v3429_v31  ;;  %v3433_v24 = vsel %vm7587_vm15, %v3378_v26, %v3432_v16  ;;  %v6477_v51 = vunpack.i.h.bf16 %v8523_v2 }
 0x184   : > { %10673 = vst [vmem:[#allocation51_spill] sm:$0xff] %v8586_v39  ;;  %3337 = vst [vmem:[#allocation2 + $0x3a0] sm:$0x11] %v3336_v14  ;;  %5044 = vmatprep.subr.bf16.mxu1 %v5927_v13  ;;  %4984 = vmatpush1.bf16.msra.mxu0 %v5924_v48  ;;  %v6476_v37 = vunpack.i.l.bf16 %v8523_v2  ;;  %v6471_v40 = vunpack.i.l.bf16 %v8557_v41  ;;  %v10487_v32 = vunpack.i.h.bf16 %v8559_v55  ;;  %v6486_v20 = vunpack.i.l.bf16 %v8559_v55 }
 0x185   : > { %3431 = vst [vmem:[#allocation2 + $0x380] sm:$0x77] %v3430_v49  ;;  %3434 = vst [vmem:[#allocation2 + $0x388] sm:$0x77] %v3433_v24  ;;  %5045 = vmatpush1.bf16.msra.mxu1 %v5926_v59  ;;  %v6482_v46 = vunpack.i.h.bf16 %v8586_v39  ;;  %v10485_v63 = vunpack.i.l.bf16 %v8586_v39  ;;  %v10486_v10 = vunpack.i.h.bf16 %v8595_v27  ;;  %v10674_v48 = vshll.u32 %v8505_v38, 16 }
 0x186   : > { %v3646_v2 = vsel %vm3623_vm12, %v6476_v37, %v6477_v51  ;;  %v3647_v41 = vsel %vm3623_vm12, %v6472_v25, %v6476_v37  ;;  %v6496_v59 = vunpack.i.l.bf16 %v8595_v27  ;;  %v8617_v26 = vsel %vm3623_vm12, %v6486_v20, %v10487_v32  ;;  %v3783_v32 = vld [vmem:[#allocation2 + $0x3c8] sm:$0x77] }
 0x187   : > { %v3399_v62 = vor.u32 %v10674_v48, %v8555_v28  ;;  %v6135_v22 = vpack.c.bf16 %v3646_v2, %v3647_v41  ;;  %v3644_v7 = vsel %vm3623_vm12, %v6482_v46, %v6486_v20  ;;  %v3645_v38 = vsel %vm3623_vm12, %v6477_v51, %v6482_v46  ;;  %v8630_v13 = vpop.permute.xlu0 %6489 }
 0x188   : > { %v3648_v28 = vsel %vm3623_vm12, %v6471_v40, %v6472_v25  ;;  %v3649_v47 = vsel %vm3623_vm12, %v10485_v63, %v6471_v40  ;;  %v6136_v31 = vpack.c.bf16 %v3644_v7, %v3645_v38  ;;  %v6142_v16 = vpack.c.bf16 %v8617_v26, %v3644_v7  ;;  %v3934_v63 = vld [vmem:[#allocation2 + $0x400] sm:$0x11] }
 0x189   : > { %v3724_v14 = vshrl.u32 %v6135_v22, 16  ;;  %v6134_v49 = vpack.c.bf16 %v3648_v28, %v3649_v47  ;;  %v8636_v24 = vsel %vm620_vm1, %v6496_v59, %v10486_v10  ;;  %v10675_v51 = vunpack.i.h.bf16 %v7460_v52 }
 0x18a   : > { %v3438_v25 = vld [vmem:[#allocation2 + $0x398] sm:$0x77]  ;;  %v3727_v40 = vshll.u32 %v6135_v22, 16  ;;  %v3731_v20 = vshrl.u32 %v6136_v31, 16  ;;  %v3823_v46 = vshrl.u32 %v6142_v16, 16  ;;  %v3826_v48 = vshll.u32 %v6142_v16, 16 }
 0x18b   : > { %v631_v37 = vsel %vm620_vm1, %v10675_v51, %v6496_v59  ;;  %v3439_v2 = vsel %vm7587_vm15, %v8513_v56, %v3438_v25  ;;  %v3441_v41 = vld [vmem:[#allocation2 + $0x3a0] sm:$0x77]  ;;  %v6491_v52 = vunpack.i.l.bf16 %v8630_v13  ;;  %v3726_v16 = vrot.slane %v3724_v14, 7 }
 0x18c   : > { %v3523_v7 = vld [vmem:[#allocation2 + $0x380] sm:$0xcc]  ;;  %v3526_v38 = vld [vmem:[#allocation2 + $0x388] sm:$0xcc]  ;;  %v6035_v28 = vpack.c.bf16 %v631_v37, %v7495_v15  ;;  %3440 = vst [vmem:[#allocation2 + $0x398] sm:$0x77] %v3439_v2  ;;  %v3442_v59 = vsel %vm7587_vm15, %v3399_v62, %v3441_v41  ;;  %v10676_v14 = vunpack.i.h.bf16 %v8630_v13 }
 0x18d   : > { %v3524_v22 = vsel %vm7503_vm6, %v8237_v30, %v3523_v7  ;;  %v3527_v56 = vsel %vm7503_vm6, %v8300_v33, %v3526_v38  ;;  %3443 = vst [vmem:[#allocation2 + $0x3a0] sm:$0x77] %v3442_v59  ;;  %v3717_v15 = vshrl.u32 %v6134_v49, 16  ;;  %v3733_v51 = vrot.slane %v3731_v20, 7 }
 0x18e   : > { %3525 = vst [vmem:[#allocation2 + $0x380] sm:$0xcc] %v3524_v22  ;;  %3528 = vst [vmem:[#allocation2 + $0x388] sm:$0xcc] %v3527_v56  ;;  %v3734_v37 = vshll.u32 %v6136_v31, 16  ;;  %v8656_v25 = vrot.slane %v3823_v46, 5  ;;  %v3729_v2 = vor.u32 %v3727_v40, %v3726_v16  ;;  %v8665_v59 = vsel %vm3623_vm12, %v6491_v52, %v10676_v14 }
 0x18f   : > { %v3720_v62 = vshll.u32 %v6134_v49, 16  ;;  %v734_v41 = vshrl.u32 %v6035_v28, 16  ;;  %v737_v10 = vshll.u32 %v6035_v28, 16  ;;  %v3719_v7 = vrot.slane %v3717_v15, 7  ;;  %v808_v49 = vld [vmem:[#allocation2 + $0x120] sm:$0xcc]  ;;  %v8671_v28 = vpop.permute.xlu1 %6504 }
 0x190   : > { %v8658_v47 = vrot.slane %v3826_v48, 6  ;;  %v3886_v38 = vrot.slane %v8656_v25, 4  ;;  %v3784_v31 = vsel %vm7587_vm15, %v3729_v2, %v3783_v32  ;;  %v8669_v40 = vor.u32 %v3734_v37, %v3733_v51  ;;  %v839_v56 = vld [vmem:[#allocation2 + $0x160] sm:$0x11]  ;;  %v968_v16 = vld [vmem:[#allocation2 + $0x190] sm:$0x11] }
 0x191   : > { %v736_v20 = vrot.slane %v734_v41, 5  ;;  %v739_v46 = vrot.slane %v737_v10, 6  ;;  %3785 = vst [vmem:[#allocation2 + $0x3c8] sm:$0x77] %v3784_v31  ;;  %v3722_v48 = vor.u32 %v3720_v62, %v3719_v7  ;;  %v862_v15 = vrot.slane %v734_v41, 7 }
 0x192   : > { %v3935_v22 = vsel %vm7515_vm7, %v3886_v38, %v3934_v63  ;;  %v10677_v14 = vunpack.i.h.bf16 %v8559_v55  ;;  %v3780_v51 = vld [vmem:[#allocation2 + $0x3c0] sm:$0x77]  ;;  %v944_v63 = vld [vmem:[#allocation2 + $0x150] sm:$0xcc]  ;;  %v10489_v41 = vunpack.i.h.bf16 %v8671_v28  ;;  %v6506_v55 = vunpack.i.l.bf16 %v8671_v28 }
 0x193   : > { %3936 = vst [vmem:[#allocation2 + $0x400] sm:$0x11] %v3935_v22  ;;  %v740_v37 = vor.u32 %v739_v46, %v736_v20  ;;  %v769_v2 = vrot.slane %v736_v20, 4  ;;  %v3781_v62 = vsel %vm7587_vm15, %v3722_v48, %v3780_v51  ;;  %v863_v7 = vor.u32 %v862_v15, %v737_v10  ;;  %v4161_v38 = vld [vmem:[#allocation2 + $0x2c0] sm:$0xff] }
 0x194   : > { %v3642_v32 = vsel %vm3623_vm12, %v10677_v14, %v6491_v52  ;;  %3782 = vst [vmem:[#allocation2 + $0x3c0] sm:$0x77] %v3781_v62  ;;  %v901_v52 = vld [vmem:[#allocation2 + $0x158] sm:$0x77]  ;;  %v3829_v10 = vor.u32 %v8658_v47, %v8656_v25  ;;  %v4153_v14 = vld [vmem:[#allocation2 + $0x280] sm:$0xff] }
 0x195   : > { %v6137_v33 = vpack.c.bf16 %v3642_v32, %v8617_v26  ;;  %v6143_v31 = vpack.c.bf16 %v8665_v59, %v3642_v32  ;;  %v809_v46 = vsel %vm7503_vm6, %v740_v37, %v808_v49  ;;  %v840_v26 = vsel %vm7515_vm7, %v769_v2, %v839_v56  ;;  %v8697_v56 = vpop.permute.xlu0 %6499 }
 0x196   : > { %v945_v20 = vsel %vm7503_vm6, %v740_v37, %v944_v63  ;;  %v969_v48 = vsel %vm7515_vm7, %v769_v2, %v968_v16  ;;  %810 = vst [vmem:[#allocation2 + $0x120] sm:$0xcc] %v809_v46  ;;  %841 = vst [vmem:[#allocation2 + $0x160] sm:$0x11] %v840_v26  ;;  %v902_v22 = vsel %vm7587_vm15, %v863_v7, %v901_v52  ;;  %v10678_v37 = vld [vmem:[#allocation26_spill] sm:$0xff]  ;;  %v10680_v63 = vld [vmem:[#allocation27_spill] sm:$0xff] }
 0x197   : > { %946 = vst [vmem:[#allocation2 + $0x150] sm:$0xcc] %v945_v20  ;;  %970 = vst [vmem:[#allocation2 + $0x190] sm:$0x11] %v969_v48  ;;  %v3738_v49 = vshrl.u32 %v6137_v33, 16  ;;  %v3831_v15 = vshrl.u32 %v6143_v31, 16  ;;  %v10679_v16 = vunpack.i.h.bf16 %v10678_v37  ;;  %v5941_v25 = vcombine.high %v4153_v14, %v4161_v38  ;;  %v8712_v48 = vpop.permute.xlu1 %6514 }
 0x198   : > { %903 = vst [vmem:[#allocation2 + $0x158] sm:$0x77] %v902_v22  ;;  %v3741_v32 = vshll.u32 %v6137_v33, 16  ;;  %v3834_v51 = vshll.u32 %v6143_v31, 16  ;;  %v5940_v52 = vcombine.low %v4153_v14, %v4161_v38  ;;  %v3937_v46 = vld [vmem:[#allocation2 + $0x408] sm:$0x11]  ;;  %v8708_v20 = vsel %vm1028_vm5, %v6506_v55, %v10489_v41 }
 0x199   : > { %v1039_v47 = vsel %vm1028_vm5, %v10679_v16, %v6506_v55  ;;  %v3740_v2 = vrot.slane %v3738_v49, 7  ;;  %v3833_v62 = vrot.slane %v3831_v15, 5  ;;  %4985 = vmatprep.subr.bf16.mxu0 %v5941_v25  ;;  %v6501_v31 = vunpack.i.l.bf16 %v8697_v56  ;;  %v3913_v49 = vld [vmem:[#allocation2 + $0x3c8] sm:$0xcc] }
 0x19a   : > { %v6045_v7 = vpack.c.bf16 %v1039_v47, %v10680_v63  ;;  %v3836_v26 = vrot.slane %v3834_v51, 6  ;;  %4986 = vmatpush1.bf16.msra.mxu0 %v5940_v52  ;;  %v10681_v55 = vunpack.i.h.bf16 %v8595_v27  ;;  %v6516_v47 = vunpack.i.l.bf16 %v8712_v48 }
 0x19b   : > { %v3887_v22 = vrot.slane %v3833_v62, 4  ;;  %v8715_v14 = vor.u32 %v3741_v32, %v3740_v2  ;;  %v3910_v25 = vld [vmem:[#allocation2 + $0x3c0] sm:$0xcc]  ;;  %v6510_v2 = vpop.permute.xlu0 %6509 }
 0x19c   : > { %v1138_v15 = vshrl.u32 %v6045_v7, 16  ;;  %v1141_v37 = vshll.u32 %v6045_v7, 16  ;;  %v3837_v51 = vor.u32 %v3836_v26, %v3833_v62  ;;  %v629_v16 = vsel %vm620_vm1, %v10681_v55, %v6501_v31  ;;  %v10683_v55 = vld [vmem:[#allocation22_spill] sm:$0xff] }
 0x19d   : > { %v3938_v63 = vsel %vm7515_vm7, %v3887_v22, %v3937_v46  ;;  %v10682_v7 = vunpack.i.h.bf16 %v8697_v56  ;;  %v3911_v27 = vsel %vm7503_vm6, %v3829_v10, %v3910_v25  ;;  %v4056_v52 = vld [vmem:[#allocation2 + $0x120] sm:$0x44]  ;;  %v6036_v22 = vpack.c.bf16 %v629_v16, %v8636_v24  ;;  %v1288_v10 = vld [vmem:[#allocation2 + $0x1d8] sm:$0x11]  ;;  %v1325_v16 = vld [vmem:[#allocation2 + $0x1d0] sm:$0x77] }
 0x19e   : > { %v1140_v41 = vrot.slane %v1138_v15, 7  ;;  %v8724_v33 = vrot.slane %v1138_v15, 5  ;;  %v1179_v62 = vld [vmem:[#allocation2 + $0x190] sm:$0x77]  ;;  %v3914_v26 = vsel %vm7503_vm6, %v3837_v51, %v3913_v49  ;;  %3939 = vst [vmem:[#allocation2 + $0x408] sm:$0x11] %v3938_v63  ;;  %v10686_v49 = vunpack.i.h.bf16 %v8712_v48 }
 0x19f   : > { %v8730_v32 = vsel %vm620_vm1, %v6501_v31, %v10682_v7  ;;  %v8736_v46 = vrot.slane %v1141_v37, 6  ;;  %v4162_v15 = vld [vmem:[#allocation2 + $0x2c8] sm:$0xff]  ;;  %3912 = vst [vmem:[#allocation2 + $0x3c0] sm:$0xcc] %v3911_v27  ;;  %v1180_v31 = vsel %vm7587_vm15, %v10683_v55, %v1179_v62  ;;  %v4057_v38 = vsel %vm7604_vm2, 1065369472, %v4056_v52  ;;  %v8753_v52 = vpop.permute.xlu1 %6524 }
 0x1a0   : > { %3915 = vst [vmem:[#allocation2 + $0x3c8] sm:$0xcc] %v3914_v26  ;;  %v8744_v25 = vor.u32 %v1141_v37, %v1140_v41  ;;  %v8750_v51 = vsel %vm3623_vm12, %v6516_v47, %v10686_v49  ;;  %1181 = vst [vmem:[#allocation2 + $0x190] sm:$0x77] %v1180_v31  ;;  %v1234_v24 = vrot.slane %v8724_v33, 4  ;;  %v742_v63 = vshrl.u32 %v6036_v22, 16 }
 0x1a1   : > { %4058 = vst [vmem:[#allocation2 + $0x120] sm:$0x44] %v4057_v38  ;;  %v745_v27 = vshll.u32 %v6036_v22, 16  ;;  %v6512_v62 = vunpack.i.h.bf16 %v6510_v2  ;;  %v4154_v55 = vld [vmem:[#allocation2 + $0x288] sm:$0xff]  ;;  %v6511_v37 = vunpack.i.l.bf16 %v6510_v2  ;;  %v904_v30 = vld [vmem:[#allocation2 + $0x160] sm:$0x77] }
 0x1a2   : > { %10685 = vst [vmem:[#allocation26_spill] sm:$0xff] %v8744_v25  ;;  %v1326_v41 = vsel %vm7587_vm15, %v8744_v25, %v1325_v16  ;;  %v5943_v26 = vcombine.high %v4154_v55, %v4162_v15  ;;  %v5942_v39 = vcombine.low %v4154_v55, %v4162_v15  ;;  %v1289_v31 = vsel %vm7515_vm7, %v1234_v24, %v1288_v10  ;;  %v811_v38 = vld [vmem:[#allocation2 + $0x128] sm:$0xcc]  ;;  %v842_v22 = vld [vmem:[#allocation2 + $0x168] sm:$0x11] }
 0x1a3   : > { %1327 = vst [vmem:[#allocation2 + $0x1d0] sm:$0x77] %v1326_v41  ;;  %v744_v49 = vrot.slane %v742_v63, 5  ;;  %v747_v4 = vrot.slane %v745_v27, 6  ;;  %v864_v5 = vrot.slane %v742_v63, 7  ;;  %v3638_v17 = vsel %vm3623_vm12, %v6512_v62, %v6516_v47 }
 0x1a4   : > { %1290 = vst [vmem:[#allocation2 + $0x1d8] sm:$0x11] %v1289_v31  ;;  %v947_v6 = vld [vmem:[#allocation2 + $0x158] sm:$0xcc]  ;;  %v3639_v2 = vsel %vm3623_vm12, %v6511_v37, %v6512_v62  ;;  %v10687_v15 = vunpack.i.h.bf16 %v8630_v13  ;;  %5046 = vmatprep.subr.bf16.mxu1 %v5943_v26  ;;  %v10499_v24 = vunpack.i.h.bf16 %v8753_v52  ;;  %v971_v16 = vld [vmem:[#allocation2 + $0x198] sm:$0x11]  ;;  %v6145_v42 = vpack.c.bf16 %v8750_v51, %v3638_v17 }
 0x1a5   : > { %v748_v63 = vor.u32 %v747_v4, %v744_v49  ;;  %v770_v55 = vrot.slane %v744_v49, 4  ;;  %v865_v41 = vor.u32 %v864_v5, %v745_v27  ;;  %5047 = vmatpush1.bf16.msra.mxu1 %v5942_v39  ;;  %v6139_v25 = vpack.c.bf16 %v3638_v17, %v3639_v2 }
 0x1a6   : > { %v3640_v10 = vsel %vm3623_vm12, %v10687_v15, %v6511_v37  ;;  %v6526_v62 = vunpack.i.l.bf16 %v8753_v52 }
 0x1a7   : > { %v6138_v31 = vpack.c.bf16 %v3640_v10, %v8665_v59  ;;  %v6144_v47 = vpack.c.bf16 %v3639_v2, %v3640_v10  ;;  %v812_v13 = vsel %vm7503_vm6, %v748_v63, %v811_v38  ;;  %v843_v37 = vsel %vm7515_vm7, %v770_v55, %v842_v22  ;;  %v1261_v59 = vld [vmem:[#allocation2 + $0x190] sm:$0xcc] }
 0x1a8   : > { %v905_v4 = vsel %vm7587_vm15, %v865_v41, %v904_v30  ;;  %v948_v5 = vsel %vm7503_vm6, %v748_v63, %v947_v6  ;;  %813 = vst [vmem:[#allocation2 + $0x128] sm:$0xcc] %v812_v13  ;;  %844 = vst [vmem:[#allocation2 + $0x168] sm:$0x11] %v843_v37  ;;  %v972_v17 = vsel %vm7515_vm7, %v770_v55, %v971_v16  ;;  %v3752_v26 = vshrl.u32 %v6139_v25, 16  ;;  %v8787_v16 = vpop.permute.xlu0 %6519 }
 0x1a9   : > { %906 = vst [vmem:[#allocation2 + $0x160] sm:$0x77] %v905_v4  ;;  %949 = vst [vmem:[#allocation2 + $0x158] sm:$0xcc] %v948_v5  ;;  %v3745_v39 = vshrl.u32 %v6138_v31, 16  ;;  %v3748_v27 = vshll.u32 %v6138_v31, 16  ;;  %v10688_v38 = vor.u32 %v7969_v1, %v7965_v57  ;;  %v10689_v57 = vor.u32 %v8132_v12, %v8130_v23 }
 0x1aa   : > { %973 = vst [vmem:[#allocation2 + $0x198] sm:$0x11] %v972_v17  ;;  %v3755_v49 = vshll.u32 %v6139_v25, 16  ;;  %v3839_v6 = vshrl.u32 %v6144_v47, 16  ;;  %v3842_v22 = vshll.u32 %v6144_v47, 16  ;;  %v3754_v10 = vrot.slane %v3752_v26, 7 }
 0x1ab   : > { %v1262_v30 = vsel %vm7503_vm6, %v10688_v38, %v1261_v59  ;;  %v1568_v2 = vld [vmem:[#allocation2 + $0x1d0] sm:$0xcc]  ;;  %v3747_v15 = vrot.slane %v3745_v39, 7  ;;  %v3847_v63 = vshrl.u32 %v6145_v42, 16  ;;  %v3850_v41 = vshll.u32 %v6145_v42, 16  ;;  %v4177_v12 = vld [vmem:[#allocation2 + $0x340] sm:$0xff] }
 0x1ac   : > { %1263 = vst [vmem:[#allocation2 + $0x190] sm:$0xcc] %v1262_v30  ;;  %v1569_v1 = vsel %vm7503_vm6, %v10689_v57, %v1568_v2  ;;  %v8796_v25 = vrot.slane %v3839_v6, 5  ;;  %v8798_v31 = vrot.slane %v3842_v22, 6  ;;  %v3940_v47 = vld [vmem:[#allocation2 + $0x410] sm:$0x11]  ;;  %v8802_v42 = vor.u32 %v3755_v49, %v3754_v10 }
 0x1ad   : > { %1570 = vst [vmem:[#allocation2 + $0x1d0] sm:$0xcc] %v1569_v1  ;;  %v8800_v13 = vor.u32 %v3748_v27, %v3747_v15  ;;  %v8804_v37 = vrot.slane %v3847_v63, 5  ;;  %v8810_v23 = vsel %vm1389_vm8, %v6526_v62, %v10499_v24  ;;  %v3943_v4 = vld [vmem:[#allocation2 + $0x418] sm:$0x11]  ;;  %v8812_v5 = vrot.slane %v3850_v41, 6 }
 0x1ae   : > { %10691 = vst [vmem:[#allocation22_spill] sm:$0xff] %v8802_v42  ;;  %v3888_v59 = vrot.slane %v8796_v25, 4  ;;  %v4013_v17 = vld [vmem:[#allocation2 + $0x400] sm:$0x77]  ;;  %v10692_v39 = vunpack.i.h.bf16 %v8006_v11  ;;  %v10498_v26 = vunpack.i.h.bf16 %v8787_v16  ;;  %v10693_v6 = vld [vmem:[#allocation33_spill] sm:$0xff]  ;;  %v6521_v10 = vunpack.i.l.bf16 %v8787_v16 }
 0x1af   : > { %10690 = vst [vmem:[#allocation27_spill] sm:$0xff] %v8800_v13  ;;  %v3889_v30 = vrot.slane %v8804_v37, 4  ;;  %v4014_v49 = vsel %vm7587_vm15, %v8802_v42, %v4013_v17  ;;  %v4169_v2 = vld [vmem:[#allocation2 + $0x300] sm:$0xff]  ;;  %v4059_v15 = vld [vmem:[#allocation2 + $0x128] sm:$0x44] }
 0x1b0   : > { %v1400_v27 = vsel %vm1389_vm8, %v10692_v39, %v6526_v62  ;;  %v3941_v11 = vsel %vm7515_vm7, %v3888_v59, %v3940_v47  ;;  %4015 = vst [vmem:[#allocation2 + $0x400] sm:$0x77] %v4014_v49  ;;  %v5957_v63 = vcombine.high %v4169_v2, %v4177_v12  ;;  %v4060_v57 = vsel %vm7604_vm2, 1065369472, %v4059_v15 }
 0x1b1   : > { %v6056_v22 = vpack.c.bf16 %v1400_v27, %v10693_v6  ;;  %v6063_v62 = vpack.c.bf16 %v8810_v23, %v1400_v27  ;;  %v1182_v41 = vld [vmem:[#allocation2 + $0x198] sm:$0x77]  ;;  %3942 = vst [vmem:[#allocation2 + $0x410] sm:$0x11] %v3941_v11  ;;  %v3944_v1 = vsel %vm7515_vm7, %v3889_v30, %v3943_v4  ;;  %4061 = vst [vmem:[#allocation2 + $0x128] sm:$0x44] %v4060_v57  ;;  %v8846_v4 = vpop.permute.xlu1 %6534  ;;  %v10695_v15 = vunpack.i.h.bf16 %v8712_v48  ;;  %v8852_v57 = vpop.permute.xlu0 %6529 }
 0x1b2   : > { %v10694_v6 = vld [vmem:[#allocation29_spill] sm:$0xff]  ;;  %3945 = vst [vmem:[#allocation2 + $0x418] sm:$0x11] %v3944_v1  ;;  %v8844_v49 = vsel %vm3623_vm12, %v6521_v10, %v10498_v26  ;;  %4987 = vmatprep.subr.bf16.mxu0 %v5957_v63  ;;  %10696 = vst [vmem:[#allocation21_spill] sm:$0xff] %v8852_v57  ;;  %v1601_v1 = vld [vmem:[#allocation2 + $0x228] sm:$0x11] }
 0x1b3   : > { %v1515_v17 = vshrl.u32 %v6056_v22, 16  ;;  %v1518_v39 = vshll.u32 %v6056_v22, 16  ;;  %v1183_v47 = vsel %vm7587_vm15, %v10694_v6, %v1182_v41  ;;  %v1653_v27 = vshrl.u32 %v6063_v62, 16  ;;  %v1784_v6 = vld [vmem:[#allocation2 + $0x250] sm:$0x11] }
 0x1b4   : > { %1184 = vst [vmem:[#allocation2 + $0x198] sm:$0x77] %v1183_v47  ;;  %v3636_v11 = vsel %vm3623_vm12, %v10695_v15, %v6521_v10  ;;  %v5956_v41 = vcombine.low %v4169_v2, %v4177_v12  ;;  %v1656_v38 = vshll.u32 %v6063_v62, 16  ;;  %v1760_v10 = vld [vmem:[#allocation2 + $0x210] sm:$0xcc]  ;;  %v4170_v15 = vld [vmem:[#allocation2 + $0x308] sm:$0xff] }
 0x1b5   : > { %v1517_v30 = vrot.slane %v1515_v17, 5  ;;  %v1520_v22 = vrot.slane %v1518_v39, 6  ;;  %v1655_v59 = vrot.slane %v1653_v27, 7  ;;  %v6140_v26 = vpack.c.bf16 %v3636_v11, %v8750_v51  ;;  %v4178_v27 = vld [vmem:[#allocation2 + $0x348] sm:$0xff]  ;;  %v1700_v62 = vld [vmem:[#allocation2 + $0x220] sm:$0x77] }
 0x1b6   : > { %v6146_v63 = vpack.c.bf16 %v8844_v49, %v3636_v11  ;;  %4988 = vmatpush1.bf16.msra.mxu0 %v5956_v41  ;;  %v6536_v39 = vunpack.i.l.bf16 %v8846_v4 }
 0x1b7   : > { %v8856_v24 = vor.u32 %v1520_v22, %v1517_v30  ;;  %v1543_v17 = vrot.slane %v1517_v30, 4  ;;  %v1658_v12 = vor.u32 %v1656_v38, %v1655_v59  ;;  %v3759_v2 = vshrl.u32 %v6140_v26, 16 }
 0x1b8   : > { %v3855_v47 = vshrl.u32 %v6146_v63, 16  ;;  %v3858_v11 = vshll.u32 %v6146_v63, 16  ;;  %v3762_v41 = vshll.u32 %v6140_v26, 16  ;;  %v6531_v63 = vunpack.i.l.bf16 %v8852_v57 }
 0x1b9   : > { %10697 = vst [vmem:[#allocation33_spill] sm:$0xff] %v8856_v24  ;;  %v1602_v51 = vsel %vm7515_vm7, %v1543_v17, %v1601_v1  ;;  %v1761_v30 = vsel %vm7503_vm6, %v8856_v24, %v1760_v10  ;;  %v1785_v22 = vsel %vm7515_vm7, %v1543_v17, %v1784_v6  ;;  %v1701_v38 = vsel %vm7587_vm15, %v1658_v12, %v1700_v62  ;;  %v3946_v1 = vld [vmem:[#allocation2 + $0x420] sm:$0x11] }
 0x1ba   : > { %1603 = vst [vmem:[#allocation2 + $0x228] sm:$0x11] %v1602_v51  ;;  %1762 = vst [vmem:[#allocation2 + $0x210] sm:$0xcc] %v1761_v30  ;;  %v3761_v59 = vrot.slane %v3759_v2, 7  ;;  %v8870_v48 = vrot.slane %v3855_v47, 5  ;;  %v10700_v10 = vunpack.i.h.bf16 %v8671_v28  ;;  %v5959_v17 = vcombine.high %v4170_v15, %v4178_v27  ;;  %v8883_v51 = vpop.permute.xlu1 %6544 }
 0x1bb   : > { %1786 = vst [vmem:[#allocation2 + $0x250] sm:$0x11] %v1785_v22  ;;  %1702 = vst [vmem:[#allocation2 + $0x220] sm:$0x77] %v1701_v38  ;;  %v8872_v55 = vrot.slane %v3858_v11, 6  ;;  %v5958_v47 = vcombine.low %v4170_v15, %v4178_v27  ;;  %v10702_v30 = vor.u32 %v8736_v46, %v8724_v33  ;;  %v10703_v38 = vunpack.i.h.bf16 %v8852_v57  ;;  %v6540_v33 = vpop.permute.xlu0 %6539 }
 0x1bc   : > { %10698 = vst [vmem:[#allocation29_spill] sm:$0xff] %v8870_v48  ;;  %v1037_v6 = vsel %vm1028_vm5, %v10700_v10, %v6536_v39  ;;  %v1264_v12 = vld [vmem:[#allocation2 + $0x198] sm:$0xcc]  ;;  %v8879_v62 = vor.u32 %v3762_v41, %v3761_v59  ;;  %v3890_v26 = vrot.slane %v8870_v48, 4  ;;  %v4016_v11 = vld [vmem:[#allocation2 + $0x408] sm:$0x77]  ;;  %5048 = vmatprep.subr.bf16.mxu1 %v5959_v17  ;;  %v10710_v42 = vunpack.i.l.bf16 %v8883_v51 }
 0x1bd   : > { %10699 = vst [vmem:[#allocation52_spill] sm:$0xff] %v8872_v55  ;;  %v6046_v2 = vpack.c.bf16 %v1037_v6, %v8708_v20  ;;  %v1265_v28 = vsel %vm7503_vm6, %v10702_v30, %v1264_v12  ;;  %v8896_v59 = vsel %vm1389_vm8, %v6531_v63, %v10703_v38  ;;  %v10705_v20 = vunpack.i.h.bf16 %v8753_v52  ;;  %5049 = vmatpush1.bf16.msra.mxu1 %v5958_v47  ;;  %v1291_v12 = vld [vmem:[#allocation2 + $0x1e0] sm:$0x11]  ;;  %v1328_v22 = vld [vmem:[#allocation2 + $0x1d8] sm:$0x77] }
 0x1be   : > { %10701 = vst [vmem:[#allocation53_spill] sm:$0xff] %v8879_v62  ;;  %10704 = vst [vmem:[#allocation54_spill] sm:$0xff] %v8896_v59  ;;  %v3947_v46 = vsel %vm7515_vm7, %v3890_v26, %v3946_v1  ;;  %v4017_v27 = vsel %vm7587_vm15, %v8879_v62, %v4016_v11  ;;  %v10706_v52 = vunpack.i.h.bf16 %v8846_v4  ;;  %v6542_v47 = vunpack.i.h.bf16 %v6540_v33  ;;  %v2625_v57 = vld [vmem:[#allocation2 + $0x2d0] sm:$0xcc] }
 0x1bf   : > { %v1398_v15 = vsel %vm1389_vm8, %v10705_v20, %v6531_v63  ;;  %1266 = vst [vmem:[#allocation2 + $0x198] sm:$0xcc] %v1265_v28  ;;  %v1145_v41 = vshrl.u32 %v6046_v2, 16  ;;  %v1148_v10 = vshll.u32 %v6046_v2, 16  ;;  %3948 = vst [vmem:[#allocation2 + $0x420] sm:$0x11] %v3947_v46 }
 0x1c0   : > { %4018 = vst [vmem:[#allocation2 + $0x408] sm:$0x77] %v4017_v27  ;;  %v8911_v6 = vsel %vm1028_vm5, %v6536_v39, %v10706_v52  ;;  %v6057_v63 = vpack.c.bf16 %v1398_v15, %v8810_v23  ;;  %v6064_v17 = vpack.c.bf16 %v8896_v59, %v1398_v15  ;;  %v10708_v46 = vld [vmem:[#allocation25_spill] sm:$0xff]  ;;  %v8929_v52 = vpop.permute.xlu1 %6554  ;;  %v6550_v39 = vpop.permute.xlu0 %6549  ;;  %v6541_v27 = vunpack.i.l.bf16 %v6540_v33 }
 0x1c1   : > { %v1147_v26 = vrot.slane %v1145_v41, 7  ;;  %v8916_v30 = vrot.slane %v1145_v41, 5  ;;  %v8918_v2 = vrot.slane %v1148_v10, 6  ;;  %10709 = vst [vmem:[#allocation25_spill] sm:$0xff] %v8929_v52  ;;  %v6556_v13 = vunpack.i.l.bf16 %v8929_v52 }
 0x1c2   : > { %v2005_v28 = vld [vmem:[#allocation2 + $0x250] sm:$0x77]  ;;  %v1523_v11 = vshrl.u32 %v6057_v63, 16  ;;  %v1526_v38 = vshll.u32 %v6057_v63, 16  ;;  %v1660_v20 = vshrl.u32 %v6064_v17, 16  ;;  %v1663_v48 = vshll.u32 %v6064_v17, 16 }
 0x1c3   : > { %10707 = vst [vmem:[#allocation55_spill] sm:$0xff] %v8916_v30  ;;  %v2006_v23 = vsel %vm7587_vm15, %v10708_v46, %v2005_v28  ;;  %v8924_v15 = vor.u32 %v1148_v10, %v1147_v26  ;;  %v1235_v41 = vrot.slane %v8916_v30, 4  ;;  %v1604_v26 = vld [vmem:[#allocation2 + $0x230] sm:$0x11]  ;;  %v1787_v28 = vld [vmem:[#allocation2 + $0x258] sm:$0x11] }
 0x1c4   : > { %2007 = vst [vmem:[#allocation2 + $0x250] sm:$0x77] %v2006_v23  ;;  %v1525_v1 = vrot.slane %v1523_v11, 5  ;;  %v1528_v63 = vrot.slane %v1526_v38, 6  ;;  %v1662_v62 = vrot.slane %v1660_v20, 7  ;;  %v2291_v11 = vsel %vm2282_vm4, %v6542_v47, %v10710_v42  ;;  %v10720_v30 = vld [vmem:[#allocation37_spill] sm:$0xff] }
 0x1c5   : > { %v1292_v55 = vsel %vm7515_vm7, %v1235_v41, %v1291_v12  ;;  %v1329_v10 = vsel %vm7587_vm15, %v8924_v15, %v1328_v22  ;;  %v1703_v46 = vld [vmem:[#allocation2 + $0x228] sm:$0x77]  ;;  %v10504_v12 = vunpack.i.h.bf16 %v8929_v52  ;;  %v1763_v23 = vld [vmem:[#allocation2 + $0x218] sm:$0xcc]  ;;  %v2292_v22 = vsel %vm2282_vm4, %v6541_v27, %v6542_v47 }
 0x1c6   : > { %1293 = vst [vmem:[#allocation2 + $0x1e0] sm:$0x11] %v1292_v55  ;;  %1330 = vst [vmem:[#allocation2 + $0x1d8] sm:$0x77] %v1329_v10  ;;  %v8940_v17 = vor.u32 %v1528_v63, %v1525_v1  ;;  %v1544_v38 = vrot.slane %v1525_v1, 4  ;;  %v1665_v20 = vor.u32 %v1663_v48, %v1662_v62  ;;  %v10712_v41 = vunpack.i.h.bf16 %v8292_v45  ;;  %v4194_v55 = vld [vmem:[#allocation2 + $0x3c8] sm:$0xff] }
 0x1c7   : > { %v6552_v42 = vunpack.i.h.bf16 %v6550_v39  ;;  %v6096_v47 = vpack.c.bf16 %v2291_v11, %v2292_v22  ;;  %v6551_v10 = vunpack.i.l.bf16 %v6550_v39 }
 0x1c8   : > { %10711 = vst [vmem:[#allocation56_spill] sm:$0xff] %v8940_v17  ;;  %v2293_v33 = vsel %vm2282_vm4, %v10712_v41, %v6541_v27  ;;  %v1605_v63 = vsel %vm7515_vm7, %v1544_v38, %v1604_v26  ;;  %v1704_v48 = vsel %vm7587_vm15, %v1665_v20, %v1703_v46  ;;  %v1764_v62 = vsel %vm7503_vm6, %v8940_v17, %v1763_v23  ;;  %v4186_v26 = vld [vmem:[#allocation2 + $0x388] sm:$0xff]  ;;  %v8966_v46 = vpop.permute.xlu1 %6564  ;;  %v2649_v23 = vld [vmem:[#allocation2 + $0x310] sm:$0x11] }
 0x1c9   : > { %v1788_v45 = vsel %vm7515_vm7, %v1544_v38, %v1787_v28  ;;  %1606 = vst [vmem:[#allocation2 + $0x230] sm:$0x11] %v1605_v63  ;;  %1705 = vst [vmem:[#allocation2 + $0x228] sm:$0x77] %v1704_v48  ;;  %v6095_v1 = vpack.c.bf16 %v2293_v33, %v8354_v29  ;;  %v8964_v27 = vsel %vm3118_vm11, %v6556_v13, %v10504_v12  ;;  %v2428_v41 = vshrl.u32 %v6096_v47, 16  ;;  %v10714_v63 = vld [vmem:[#allocation38_spill] sm:$0xff] }
 0x1ca   : > { %1765 = vst [vmem:[#allocation2 + $0x218] sm:$0xcc] %v1764_v62  ;;  %1789 = vst [vmem:[#allocation2 + $0x258] sm:$0x11] %v1788_v45  ;;  %v8970_v28 = vsel %vm3118_vm11, %v6552_v42, %v6556_v13  ;;  %v5975_v38 = vcombine.high %v4186_v26, %v4194_v55  ;;  %v5974_v20 = vcombine.low %v4186_v26, %v4194_v55  ;;  %v2431_v33 = vshll.u32 %v6096_v47, 16 }
 0x1cb   : > { %10713 = vst [vmem:[#allocation57_spill] sm:$0xff] %v8964_v27  ;;  %v2131_v29 = vld [vmem:[#allocation2 + $0x250] sm:$0xcc]  ;;  %v2420_v11 = vshrl.u32 %v6095_v1, 16  ;;  %v2423_v22 = vshll.u32 %v6095_v1, 16  ;;  %v10715_v48 = vor.u32 %v8253_v36, %v10714_v63  ;;  %v3127_v62 = vsel %vm3118_vm11, %v6551_v10, %v6552_v42 }
 0x1cc   : > { %v10716_v13 = vunpack.i.h.bf16 %v8458_v61  ;;  %v8986_v45 = vpack.c.bf16 %v8964_v27, %v8970_v28  ;;  %5050 = vmatprep.subr.bf16.mxu1 %v5975_v38  ;;  %v2430_v26 = vrot.slane %v2428_v41, 5  ;;  %v2433_v63 = vrot.slane %v2431_v33, 6  ;;  %v2501_v61 = vld [vmem:[#allocation2 + $0x2f0] sm:$0x11]  ;;  %v2652_v38 = vld [vmem:[#allocation2 + $0x318] sm:$0x11] }
 0x1cd   : > { %v2132_v39 = vsel %vm7503_vm6, %v10715_v48, %v2131_v29  ;;  %v1571_v1 = vld [vmem:[#allocation2 + $0x1d8] sm:$0xcc]  ;;  %v2422_v47 = vrot.slane %v2420_v11, 5  ;;  %v2425_v36 = vrot.slane %v2423_v22, 6  ;;  %5051 = vmatpush1.bf16.msra.mxu1 %v5974_v20  ;;  %v10717_v29 = vld [vmem:[#allocation23_spill] sm:$0xff]  ;;  %v2525_v12 = vrot.slane %v2420_v11, 7 }
 0x1ce   : > { %v3128_v55 = vsel %vm3118_vm11, %v10716_v13, %v6551_v10  ;;  %2133 = vst [vmem:[#allocation2 + $0x250] sm:$0xcc] %v2132_v39  ;;  %v1572_v42 = vsel %vm7503_vm6, %v10717_v29, %v1571_v1  ;;  %v2504_v48 = vld [vmem:[#allocation2 + $0x2f8] sm:$0x11]  ;;  %v2527_v10 = vrot.slane %v2428_v41, 7  ;;  %v8994_v17 = vor.u32 %v2433_v63, %v2430_v26 }
 0x1cf   : > { %v6120_v13 = vpack.c.bf16 %v3128_v55, %v8496_v21  ;;  %1573 = vst [vmem:[#allocation2 + $0x1d8] sm:$0xcc] %v1572_v42  ;;  %v8992_v39 = vor.u32 %v2425_v36, %v2422_v47  ;;  %v2441_v27 = vrot.slane %v2422_v47, 4  ;;  %v2442_v52 = vrot.slane %v2430_v26, 4  ;;  %v2563_v36 = vld [vmem:[#allocation2 + $0x2e0] sm:$0x77] }
 0x1d0   : > { %10719 = vst [vmem:[#allocation23_spill] sm:$0xff] %v8994_v17  ;;  %v2526_v24 = vor.u32 %v2525_v12, %v2423_v22  ;;  %v2528_v59 = vor.u32 %v2527_v10, %v2431_v33  ;;  %v2566_v63 = vld [vmem:[#allocation2 + $0x2e8] sm:$0x77]  ;;  %v2628_v22 = vld [vmem:[#allocation2 + $0x2d8] sm:$0xcc]  ;;  %v3408_v10 = vshrl.u32 %v8986_v45, 16 }
 0x1d1   : > { %10718 = vst [vmem:[#allocation38_spill] sm:$0xff] %v8992_v39  ;;  %v2008_v20 = vld [vmem:[#allocation2 + $0x258] sm:$0x77]  ;;  %v3268_v1 = vshrl.u32 %v6120_v13, 16  ;;  %v3271_v29 = vshll.u32 %v6120_v13, 16  ;;  %v2502_v21 = vsel %vm7515_vm7, %v2441_v27, %v2501_v61  ;;  %v2505_v41 = vsel %vm7515_vm7, %v2442_v52, %v2504_v48 }
 0x1d2   : > { %v2009_v11 = vsel %vm7587_vm15, %v10720_v30, %v2008_v20  ;;  %v2626_v12 = vsel %vm7503_vm6, %v8992_v39, %v2625_v57  ;;  %2503 = vst [vmem:[#allocation2 + $0x2f0] sm:$0x11] %v2502_v21  ;;  %2506 = vst [vmem:[#allocation2 + $0x2f8] sm:$0x11] %v2505_v41  ;;  %v2564_v33 = vsel %vm7587_vm15, %v2526_v24, %v2563_v36  ;;  %v3553_v48 = vld [vmem:[#allocation2 + $0x3d0] sm:$0x11]  ;;  %v10722_v36 = vunpack.i.h.bf16 %v8966_v46 }
 0x1d3   : > { %2010 = vst [vmem:[#allocation2 + $0x258] sm:$0x77] %v2009_v11  ;;  %v2567_v30 = vsel %vm7587_vm15, %v2528_v59, %v2566_v63  ;;  %2627 = vst [vmem:[#allocation2 + $0x2d0] sm:$0xcc] %v2626_v12  ;;  %v2629_v47 = vsel %vm7503_vm6, %v8994_v17, %v2628_v22  ;;  %v2650_v26 = vsel %vm7515_vm7, %v2441_v27, %v2649_v23  ;;  %v3270_v42 = vrot.slane %v3268_v1, 5 }
 0x1d4   : > { %2565 = vst [vmem:[#allocation2 + $0x2e0] sm:$0x77] %v2564_v33  ;;  %2568 = vst [vmem:[#allocation2 + $0x2e8] sm:$0x77] %v2567_v30  ;;  %v2653_v57 = vsel %vm7515_vm7, %v2442_v52, %v2652_v38  ;;  %v3273_v24 = vrot.slane %v3271_v29, 6  ;;  %v6126_v61 = vpack.c.bf16 %v3127_v62, %v3128_v55  ;;  %v3411_v13 = vshll.u32 %v8986_v45, 16  ;;  %v6560_v52 = vpop.permute.xlu0 %6559 }
 0x1d5   : > { %2630 = vst [vmem:[#allocation2 + $0x2d8] sm:$0xcc] %v2629_v47  ;;  %2651 = vst [vmem:[#allocation2 + $0x310] sm:$0x11] %v2650_v26  ;;  %v3344_v59 = vld [vmem:[#allocation2 + $0x3b8] sm:$0x11]  ;;  %v6129_v20 = vpack.c.bf16 %v8970_v28, %v3127_v62  ;;  %v6566_v27 = vunpack.i.l.bf16 %v8966_v46  ;;  %v6562_v26 = vunpack.i.h.bf16 %v6560_v52 }
 0x1d6   : > { %2654 = vst [vmem:[#allocation2 + $0x318] sm:$0x11] %v2653_v57  ;;  %v9021_v23 = vor.u32 %v3273_v24, %v3270_v42  ;;  %v3282_v11 = vrot.slane %v3270_v42, 4  ;;  %v3401_v21 = vshrl.u32 %v6126_v61, 16  ;;  %v3404_v41 = vshll.u32 %v6126_v61, 16  ;;  %v4193_v45 = vld [vmem:[#allocation2 + $0x3c0] sm:$0xff] }
 0x1d7   : > { %v3410_v38 = vrot.slane %v3408_v10, 7  ;;  %v3469_v1 = vshrl.u32 %v6129_v20, 16  ;;  %v3472_v55 = vshll.u32 %v6129_v20, 16  ;;  %v3529_v29 = vld [vmem:[#allocation2 + $0x390] sm:$0xcc]  ;;  %v9027_v63 = vsel %vm1850_vm3, %v6566_v27, %v10722_v36  ;;  %v4185_v57 = vld [vmem:[#allocation2 + $0x380] sm:$0xff] }
 0x1d8   : > { %10721 = vst [vmem:[#allocation37_spill] sm:$0xff] %v9021_v23  ;;  %v3345_v28 = vsel %vm7515_vm7, %v3282_v11, %v3344_v59  ;;  %v3403_v62 = vrot.slane %v3401_v21, 7  ;;  %v3530_v12 = vsel %vm7503_vm6, %v9021_v23, %v3529_v29  ;;  %v3554_v22 = vsel %vm7515_vm7, %v3282_v11, %v3553_v48  ;;  %v3556_v24 = vld [vmem:[#allocation2 + $0x3d8] sm:$0x11]  ;;  %v3447_v59 = vld [vmem:[#allocation2 + $0x3b0] sm:$0x77] }
 0x1d9   : > { %3346 = vst [vmem:[#allocation2 + $0x3b8] sm:$0x11] %v3345_v28  ;;  %v3413_v33 = vor.u32 %v3411_v13, %v3410_v38  ;;  %v3471_v30 = vrot.slane %v3469_v1, 5  ;;  %v3474_v47 = vrot.slane %v3472_v55, 6  ;;  %3531 = vst [vmem:[#allocation2 + $0x390] sm:$0xcc] %v3530_v12  ;;  %v6561_v10 = vunpack.i.l.bf16 %v6560_v52 }
 0x1da   : > { %3555 = vst [vmem:[#allocation2 + $0x3d0] sm:$0x11] %v3554_v22  ;;  %v2134_v42 = vld [vmem:[#allocation2 + $0x258] sm:$0xcc]  ;;  %v3406_v61 = vor.u32 %v3404_v41, %v3403_v62  ;;  %v5973_v20 = vcombine.high %v4185_v57, %v4193_v45  ;;  %v5972_v21 = vcombine.low %v4185_v57, %v4193_v45  ;;  %v10723_v29 = vor.u32 %v8360_v8, %v8346_v0  ;;  %v3444_v11 = vld [vmem:[#allocation2 + $0x3a8] sm:$0x77]  ;;  %v6570_v62 = vpop.permute.xlu0 %6569 }
 0x1db   : > { %v3448_v38 = vsel %vm7587_vm15, %v3413_v33, %v3447_v59  ;;  %v3475_v1 = vor.u32 %v3474_v47, %v3471_v30  ;;  %v3508_v55 = vrot.slane %v3471_v30, 4  ;;  %v10724_v36 = vld [vmem:[#allocation31_spill] sm:$0xff]  ;;  %v3532_v0 = vld [vmem:[#allocation2 + $0x398] sm:$0xcc]  ;;  %v1859_v8 = vsel %vm1850_vm3, %v6562_v26, %v6566_v27  ;;  %v9052_v12 = vld [vmem:[#allocation2 + $0x400] sm:$0x77] }
 0x1dc   : > { %v2135_v48 = vsel %vm7503_vm6, %v10723_v29, %v2134_v42  ;;  %v2876_v13 = vld [vmem:[#allocation2 + $0x310] sm:$0x77]  ;;  %v3445_v45 = vsel %vm7587_vm15, %v3406_v61, %v3444_v11  ;;  %3449 = vst [vmem:[#allocation2 + $0x3b0] sm:$0x77] %v3448_v38  ;;  %v1860_v28 = vsel %vm1850_vm3, %v6561_v10, %v6562_v26  ;;  %4989 = vmatprep.subr.bf16.mxu0 %v5973_v20  ;;  %v10753_v23 = vld [vmem:[#allocation47_spill] sm:$0xff] }
 0x1dd   : > { %2136 = vst [vmem:[#allocation2 + $0x258] sm:$0xcc] %v2135_v48  ;;  %v2877_v41 = vsel %vm7587_vm15, %v10724_v36, %v2876_v13  ;;  %v2879_v52 = vld [vmem:[#allocation2 + $0x318] sm:$0x77]  ;;  %v10725_v22 = vld [vmem:[#allocation32_spill] sm:$0xff]  ;;  %v3533_v30 = vsel %vm7503_vm6, %v3475_v1, %v3532_v0  ;;  %v3557_v47 = vsel %vm7515_vm7, %v3508_v55, %v3556_v24  ;;  %4990 = vmatpush1.bf16.msra.mxu0 %v5972_v21  ;;  %v6572_v48 = vunpack.i.h.bf16 %v6570_v62  ;;  %v10857_v19 = vld [vmem:[#allocation23_spill] sm:$0xff] }
 0x1de   : > { %2878 = vst [vmem:[#allocation2 + $0x310] sm:$0x77] %v2877_v41  ;;  %v2880_v33 = vsel %vm7587_vm15, %v10725_v22, %v2879_v52  ;;  %3446 = vst [vmem:[#allocation2 + $0x3a8] sm:$0x77] %v3445_v45  ;;  %v10726_v27 = vld [vmem:[#allocation36_spill] sm:$0xff]  ;;  %v6076_v59 = vpack.c.bf16 %v1859_v8, %v1860_v28  ;;  %v6083_v29 = vpack.c.bf16 %v9027_v63, %v1859_v8  ;;  %v6571_v13 = vunpack.i.l.bf16 %v6570_v62  ;;  %v9072_v45 = vpop.permute.xlu1 %2699 }
 0x1df   : > { %v10727_v57 = vunpack.i.h.bf16 %v10726_v27  ;;  %2881 = vst [vmem:[#allocation2 + $0x318] sm:$0x77] %v2880_v33  ;;  %3534 = vst [vmem:[#allocation2 + $0x398] sm:$0xcc] %v3533_v30  ;;  %v10728_v42 = vld [vmem:[#allocation40_spill] sm:$0xff]  ;;  %v5989_v24 = vcombine.high %v9052_v12, %v9052_v12  ;;  %v2726_v22 = vsel %vm2717_vm9, %v6572_v48, %v9072_v45 }
 0x1e0   : > { %3558 = vst [vmem:[#allocation2 + $0x3d8] sm:$0x11] %v3557_v47  ;;  %v1981_v21 = vshll.u32 %v6076_v59, 16  ;;  %v2078_v52 = vshrl.u32 %v6083_v29, 16  ;;  %v2161_v0 = vld [vmem:[#allocation2 + $0x2a0] sm:$0x11]  ;;  %v2727_v27 = vsel %vm2717_vm9, %v6571_v13, %v6572_v48 }
 0x1e1   : > { %v1861_v26 = vsel %vm1850_vm3, %v10727_v57, %v6561_v10  ;;  %v3786_v11 = vld [vmem:[#allocation2 + $0x3d0] sm:$0x77]  ;;  %v1978_v10 = vshrl.u32 %v6076_v59, 16  ;;  %v2081_v62 = vshll.u32 %v6083_v29, 16  ;;  %v2164_v33 = vld [vmem:[#allocation2 + $0x2a8] sm:$0x11] }
 0x1e2   : > { %v6075_v61 = vpack.c.bf16 %v1861_v26, %v10728_v42  ;;  %v6082_v20 = vpack.c.bf16 %v1860_v28, %v1861_v26  ;;  %v3787_v55 = vsel %vm7587_vm15, %v8669_v40, %v3786_v11  ;;  %v9081_v40 = vrot.slane %v2078_v52, 5  ;;  %v2212_v59 = vld [vmem:[#allocation2 + $0x290] sm:$0x77] }
 0x1e3   : > { %3788 = vst [vmem:[#allocation2 + $0x3d0] sm:$0x77] %v3787_v55  ;;  %v1980_v28 = vrot.slane %v1978_v10, 7  ;;  %v10731_v11 = vor.u32 %v8440_v9, %v8438_v50 }
 0x1e4   : > { %v1971_v38 = vshrl.u32 %v6075_v61, 16  ;;  %v1974_v1 = vshll.u32 %v6075_v61, 16  ;;  %v2070_v36 = vshrl.u32 %v6082_v20, 16  ;;  %v2073_v41 = vshll.u32 %v6082_v20, 16 }
 0x1e5   : > { %v2968_v57 = vld [vmem:[#allocation2 + $0x310] sm:$0xcc]  ;;  %v9087_v42 = vor.u32 %v1981_v21, %v1980_v28  ;;  %v9089_v61 = vrot.slane %v2081_v62, 6  ;;  %v10730_v20 = vunpack.i.h.bf16 %v8397_v18  ;;  %v2106_v55 = vrot.slane %v9081_v40, 4 }
 0x1e6   : > { %v1973_v8 = vrot.slane %v1971_v38, 7  ;;  %v9077_v30 = vrot.slane %v2070_v36, 5  ;;  %v9079_v47 = vrot.slane %v2073_v41, 6  ;;  %v2969_v38 = vsel %vm7503_vm6, %v10731_v11, %v2968_v57  ;;  %v2971_v48 = vld [vmem:[#allocation2 + $0x318] sm:$0xcc] }
 0x1e7   : > { %10729 = vst [vmem:[#allocation31_spill] sm:$0xff] %v9087_v42  ;;  %v2728_v29 = vsel %vm2717_vm9, %v10730_v20, %v6571_v13  ;;  %v3789_v10 = vld [vmem:[#allocation2 + $0x3d8] sm:$0x77]  ;;  %2970 = vst [vmem:[#allocation2 + $0x310] sm:$0xcc] %v2969_v38  ;;  %v10732_v18 = vor.u32 %v8482_v3, %v8480_v35  ;;  %v2165_v3 = vsel %vm7515_vm7, %v2106_v55, %v2164_v33  ;;  %v10733_v28 = vunpack.i.h.bf16 %v8883_v51 }
 0x1e8   : > { %v9085_v26 = vor.u32 %v1974_v1, %v1973_v8  ;;  %v2105_v21 = vrot.slane %v9077_v30, 4  ;;  %v3790_v50 = vsel %vm7587_vm15, %v8715_v14, %v3789_v10  ;;  %v2215_v41 = vld [vmem:[#allocation2 + $0x298] sm:$0x77]  ;;  %v6107_v52 = vpack.c.bf16 %v2728_v29, %v8447_v43  ;;  %v9125_v8 = vpop.permute.xlu1 %6579  ;;  %2166 = vst [vmem:[#allocation2 + $0x2a8] sm:$0x11] %v2165_v3 }
 0x1e9   : > { %v2972_v13 = vsel %vm7503_vm6, %v10732_v18, %v2971_v48  ;;  %3791 = vst [vmem:[#allocation2 + $0x3d8] sm:$0x77] %v3790_v50  ;;  %v2216_v14 = vsel %vm7587_vm15, %v9087_v42, %v2215_v41  ;;  %v10734_v62 = vunpack.i.l.bf16 %v8883_v51  ;;  %v10512_v33 = vunpack.i.h.bf16 %v9125_v8  ;;  %v3001_v18 = vld [vmem:[#allocation2 + $0x368] sm:$0x11]  ;;  %v3051_v1 = vld [vmem:[#allocation2 + $0x358] sm:$0x77] }
 0x1ea   : > { %v2213_v36 = vsel %vm7587_vm15, %v9085_v26, %v2212_v59  ;;  %2973 = vst [vmem:[#allocation2 + $0x318] sm:$0xcc] %v2972_v13  ;;  %v2162_v35 = vsel %vm7515_vm7, %v2105_v21, %v2161_v0  ;;  %2217 = vst [vmem:[#allocation2 + $0x298] sm:$0x77] %v2216_v14  ;;  %v6108_v0 = vpack.c.bf16 %v2726_v22, %v2727_v27  ;;  %v3916_v59 = vld [vmem:[#allocation2 + $0x3d0] sm:$0xcc]  ;;  %v6581_v14 = vunpack.i.l.bf16 %v9125_v8 }
 0x1eb   : > { %2214 = vst [vmem:[#allocation2 + $0x290] sm:$0x77] %v2213_v36  ;;  %v9133_v57 = vsel %vm2282_vm4, %v10734_v62, %v10733_v28  ;;  %2163 = vst [vmem:[#allocation2 + $0x2a0] sm:$0x11] %v2162_v35  ;;  %v2849_v20 = vshrl.u32 %v6107_v52, 16  ;;  %v2852_v11 = vshll.u32 %v6107_v52, 16  ;;  %v5988_v38 = vcombine.low %v9052_v12, %v9052_v12 }
 0x1ec   : > { %v6887_v43 = vmov 65535   ;;  %v10735_v48 = vor.u32 %v8798_v31, %v8796_v25  ;;  %v2998_v21 = vld [vmem:[#allocation2 + $0x360] sm:$0x11]  ;;  %v2856_v55 = vshrl.u32 %v6108_v0, 16  ;;  %v2859_v22 = vshll.u32 %v6108_v0, 16  ;;  %v6575_v31 = vpop.permute.xlu0 %6574  ;;  %v10740_v62 = vld [vmem:[#allocation41_spill] sm:$0xff] }
 0x1ed   : > { %v4925_v29 = vsel %vm4923_vm14, 4294967295, %v6887_v43  ;;  %v2851_v13 = vrot.slane %v2849_v20, 7  ;;  %v9147_v50 = vrot.slane %v2849_v20, 5  ;;  %v9149_v36 = vrot.slane %v2852_v11, 6  ;;  %v6702_v52 = vld [vmem:[#allocation6 + $0x4] ss:$8 sps:$4 sm:$0xff]   ;;  %vm10769_vm14 = vmmov %vm10757_vm0 }
 0x1ee   : > { %v3917_v10 = vsel %vm7503_vm6, %v10735_v48, %v3916_v59  ;;  %v9145_v27 = vsel %vm885_vm10, %v4925_v29, 0  ;;  %v2858_v41 = vrot.slane %v2856_v55, 7  ;;  %v9155_v35 = vrot.slane %v2856_v55, 5  ;;  %v3048_v59 = vld [vmem:[#allocation2 + $0x350] sm:$0x77] }
 0x1ef   : > { %3918 = vst [vmem:[#allocation2 + $0x3d0] sm:$0xcc] %v3917_v10  ;;  %v4931_v25 = vand.u32 %v5989_v24, %v9145_v27  ;;  %v9157_v3 = vrot.slane %v2859_v22, 6  ;;  %v9160_v28 = vor.u32 %v2852_v11, %v2851_v13  ;;  %v2942_v0 = vrot.slane %v9147_v50, 4  ;;  %v4202_v24 = vld [vmem:[#allocation2 + $0x408] sm:$0x77] }
 0x1f0   : > { %v4928_v12 = vand.u32 %v5988_v38, %v9145_v27  ;;  %v3919_v20 = vld [vmem:[#allocation2 + $0x3d8] sm:$0xcc]  ;;  %v9166_v29 = vor.u32 %v2859_v22, %v2858_v41  ;;  %v2943_v11 = vrot.slane %v9155_v35, 4  ;;  %v6577_v10 = vunpack.i.h.bf16 %v6575_v31 }
 0x1f1   : > { %10736 = vst [vmem:[#allocation32_spill] sm:$0xff] %v9160_v28  ;;  %4991 = vmatprep.subr.bf16.mxu0 %v4931_v25  ;;  %v10738_v55 = vor.u32 %v8812_v5, %v8804_v37  ;;  %v10739_v25 = vld [vmem:[#allocation42_spill] sm:$0xff]  ;;  %v2468_v22 = vld [vmem:[#allocation2 + $0x298] sm:$0xcc]  ;;  %v2999_v41 = vsel %vm7515_vm7, %v2942_v0, %v2998_v21  ;;  %v3049_v48 = vsel %vm7587_vm15, %v9160_v28, %v3048_v59  ;;  %v6576_v0 = vunpack.i.l.bf16 %v6575_v31 }
 0x1f2   : > { %v2465_v43 = vld [vmem:[#allocation2 + $0x290] sm:$0xcc]  ;;  %10737 = vst [vmem:[#allocation36_spill] sm:$0xff] %v9166_v29  ;;  %v10741_v38 = vor.u32 %v10739_v25, %v10740_v62  ;;  %4992 = vmatpush1.bf16.msra.mxu0 %v4928_v12  ;;  %v10742_v37 = vor.u32 %v8382_v34, %v8380_v53  ;;  %3000 = vst [vmem:[#allocation2 + $0x360] sm:$0x11] %v2999_v41  ;;  %v3002_v62 = vsel %vm7515_vm7, %v2943_v11, %v3001_v18  ;;  %v4068_v53 = vld [vmem:[#allocation6] sm:$0xff]  ;;  %v9200_v18 = vpop.permute.xlu1 %6589 }
 0x1f3   : > { %v3920_v13 = vsel %vm7503_vm6, %v10738_v55, %v3919_v20  ;;  %3050 = vst [vmem:[#allocation2 + $0x350] sm:$0x77] %v3049_v48  ;;  %v3052_v21 = vsel %vm7587_vm15, %v9166_v29, %v3051_v1  ;;  %3003 = vst [vmem:[#allocation2 + $0x368] sm:$0x11] %v3002_v62  ;;  %v4069_v34 = vld [vmem:[#allocation6 + $0x8] sm:$0xff]  ;;  %vm4913_vm10 = vcmask 39936   ;;  %v5991_v59 = vcombine.high %v4202_v24, %v4202_v24 }
 0x1f4   : > { %v2466_v9 = vsel %vm7503_vm6, %v10741_v38, %v2465_v43  ;;  %3921 = vst [vmem:[#allocation2 + $0x3d8] sm:$0xcc] %v3920_v13  ;;  %v2469_v5 = vsel %vm7503_vm6, %v10742_v37, %v2468_v22  ;;  %3053 = vst [vmem:[#allocation2 + $0x358] sm:$0x77] %v3052_v21  ;;  %v10743_v12 = vld [vmem:[#allocation12_spill] sm:$0xff]  ;;  %v9202_v43 = vpop.permute.xlu0 %6584  ;;  %v9208_v1 = vsel %vm620_vm1, %v6581_v14, %v10512_v33  ;;  %v10744_v48 = vunpack.i.h.bf16 %v8697_v56 }
 0x1f5   : > { %2467 = vst [vmem:[#allocation2 + $0x290] sm:$0xcc] %v2466_v9  ;;  %2470 = vst [vmem:[#allocation2 + $0x298] sm:$0xcc] %v2469_v5  ;;  %v625_v9 = vsel %vm620_vm1, %v6577_v10, %v6581_v14  ;;  %v383_v20 = vcombine.low %v10743_v12, %v10743_v12  ;;  %v626_v31 = vsel %vm620_vm1, %v6576_v0, %v6577_v10  ;;  %6004 = vmatprep.mubr.msk.bf16.mxu0 %vm4913_vm10, %v6702_v52  ;;  %v10745_v14 = vld [vmem:[#allocation16_spill] sm:$0xff] }
 0x1f6   : > { %v627_v11 = vsel %vm620_vm1, %v10744_v48, %v6576_v0  ;;  %6007 = vmatprep.mubr.msk.bf16.mxu1 %vm4913_vm10, %v6702_v52  ;;  %v9219_v13 = vpack.c.bf16 %v625_v9, %v626_v31  ;;  %v4937_v25 = vand.u32 %v5991_v59, %v9145_v27  ;;  %v9223_v10 = vld [vmem:[#allocation6 + $0x14] ss:$8 sps:$4 sm:$0xff]   ;;  %v9226_v22 = vcombine.low %v4068_v53, %v4069_v34  ;;  %v814_v21 = vld [vmem:[#allocation2 + $0x130] sm:$0xcc]  ;;  %v845_v9 = vld [vmem:[#allocation2 + $0x170] sm:$0x11]  ;;  %v9260_v39 = vpop.permute.xlu1 %6594 }
 0x1f7   : > { %v6037_v55 = vpack.c.bf16 %v627_v11, %v8730_v32  ;;  %v390_v38 = vrot.slane %v383_v20, %v10745_v14  ;;  %5701 = vst.sshfl [vmem:[#allocation2 + $0x58] sm:$0xf0 pattern:$0x76325410] %v383_v20  ;;  %v5990_v41 = vcombine.low %v4202_v24, %v4202_v24  ;;  %v10513_v37 = vunpack.i.l.bf16 %v9202_v43  ;;  %v817_v0 = vld [vmem:[#allocation2 + $0x138] sm:$0xcc] }
 0x1f8   : > { %5718 = vst.sshfl [vmem:[#allocation2 + $0xe0] sm:$0xf0 pattern:$0x76325410] %v383_v20  ;;  %10746 = vst [vmem:[#allocation40_spill] sm:$0xff] %v9226_v22  ;;  %v758_v32 = vshrl.u32 %v9219_v13, 16  ;;  %5052 = vmatprep.subr.bf16.mxu1 %v4937_v25  ;;  %5008 = vmatmul.mubr.bf16.vlgmr.msra.gmra.mrb[0].mxu0 %v9226_v22  ;;  %v10747_v24 = vunpack.i.h.bf16 %v8846_v4 }
 0x1f9   : > { %v750_v52 = vshrl.u32 %v6037_v55, 16  ;;  %v753_v5 = vshll.u32 %v6037_v55, 16  ;;  %v10514_v62 = vshll.u32 %v9219_v13, 16  ;;  %v409_v59 = vrot.slane %v390_v38, 4  ;;  %6005 = vmatprep.mubr.msk.bf16.mxu0 %vm4913_vm10, %v9223_v10  ;;  %v10748_v25 = vld [vmem:[#allocation45_spill] sm:$0xff] }
 0x1fa   : > { %v4934_v53 = vand.u32 %v5990_v41, %v9145_v27  ;;  %v1035_v34 = vsel %vm1028_vm5, %v10747_v24, %v10513_v37  ;;  %v3305_v20 = vld [vmem:[#allocation2 + $0x350] sm:$0xcc]  ;;  %v760_v11 = vrot.slane %v758_v32, 5  ;;  %v10749_v38 = vor.u32 %v8474_v60, %v10748_v25  ;;  %v848_v33 = vld [vmem:[#allocation2 + $0x178] sm:$0x11]  ;;  %v10750_v24 = vld [vmem:[#allocation18_spill] sm:$0xff] }
 0x1fb   : > { %v752_v31 = vrot.slane %v750_v52, 5  ;;  %v755_v48 = vrot.slane %v753_v5, 6  ;;  %v763_v55 = vrot.slane %v10514_v62, 6  ;;  %v3308_v4 = vld [vmem:[#allocation2 + $0x358] sm:$0xcc]  ;;  %v866_v12 = vrot.slane %v750_v52, 7 }
 0x1fc   : > { %v3306_v41 = vsel %vm7503_vm6, %v10749_v38, %v3305_v20  ;;  %v414_v56 = vsel %vm10751_vm13, %v10750_v24, %v409_v59  ;;  %5053 = vmatpush1.bf16.msra.mxu1 %v4934_v53  ;;  %v10752_v62 = vld [vmem:[#allocation48_spill] sm:$0xff]  ;;  %v974_v60 = vld [vmem:[#allocation2 + $0x1a0] sm:$0x11]  ;;  %v977_v25 = vld [vmem:[#allocation2 + $0x1a8] sm:$0x11]  ;;  %v772_v52 = vrot.slane %v760_v11, 4 }
 0x1fd   : > { %3307 = vst [vmem:[#allocation2 + $0x350] sm:$0xcc] %v3306_v41  ;;  %v10754_v17 = vor.u32 %v10752_v62, %v10753_v23  ;;  %v756_v28 = vor.u32 %v755_v48, %v752_v31  ;;  %v9257_v20 = vor.u32 %v763_v55, %v760_v11  ;;  %v771_v38 = vrot.slane %v752_v31, 4  ;;  %430 = vst [vmem:[#allocation2 + $0x10] sm:$0xcc] %v414_v56  ;;  %v4083_v55 = vld [vmem:[#allocation2 + $0x50] sm:$0xff] }
 0x1fe   : > { %499 = vst [vmem:[#allocation2 + $0x98] sm:$0xcc] %v414_v56  ;;  %v867_v53 = vor.u32 %v866_v12, %v753_v5  ;;  %v868_v24 = vrot.slane %v758_v32, 7  ;;  %v950_v37 = vld [vmem:[#allocation2 + $0x160] sm:$0xcc]  ;;  %v6047_v41 = vpack.c.bf16 %v1035_v34, %v8911_v6  ;;  %v9274_v6 = vpop.permute.xlu0 %3605  ;;  %v849_v32 = vsel %vm7515_vm7, %v772_v52, %v848_v33  ;;  %v10755_v33 = vld [vmem:[#allocation13_spill] sm:$0xff]  ;;  %vm10830_vm13 = vmmov %vm10757_vm0 }
 0x1ff   : > { %v3309_v29 = vsel %vm7503_vm6, %v10754_v17, %v3308_v4  ;;  %v9262_v23 = vld [vmem:[#allocation6 + $0x10] ss:$8 sps:$4 sm:$0xff]   ;;  %v815_v17 = vsel %vm7503_vm6, %v756_v28, %v814_v21  ;;  %v818_v62 = vsel %vm7503_vm6, %v9257_v20, %v817_v0  ;;  %v907_v56 = vld [vmem:[#allocation2 + $0x168] sm:$0x77]  ;;  %v951_v5 = vsel %vm7503_vm6, %v756_v28, %v950_v37  ;;  %5069 = vmatmul.mubr.bf16.vlgmr.msra.gmra.mrb[0].mxu1 %v9226_v22 }
 0x200   : > { %3310 = vst [vmem:[#allocation2 + $0x358] sm:$0xcc] %v3309_v29  ;;  %v846_v29 = vsel %vm7515_vm7, %v771_v38, %v845_v9  ;;  %816 = vst [vmem:[#allocation2 + $0x130] sm:$0xcc] %v815_v17  ;;  %v908_v21 = vsel %vm7587_vm15, %v867_v53, %v907_v56  ;;  %v975_v0 = vsel %vm7515_vm7, %v771_v38, %v974_v60  ;;  %6008 = vmatprep.mubr.msk.bf16.mxu1 %vm4913_vm10, %v9223_v10  ;;  %v10756_v34 = vld [vmem:[#allocation19_spill] sm:$0xff]  ;;  %v10768_v56 = vld [vmem:[#allocation20_spill] sm:$0xff] }
 0x201   : > { %819 = vst [vmem:[#allocation2 + $0x138] sm:$0xcc] %v818_v62  ;;  %847 = vst [vmem:[#allocation2 + $0x170] sm:$0x11] %v846_v29  ;;  %v978_v28 = vsel %vm7515_vm7, %v772_v52, %v977_v25  ;;  %v1152_v37 = vshrl.u32 %v6047_v41, 16  ;;  %v1155_v9 = vshll.u32 %v6047_v41, 16  ;;  %v296_v12 = vcombine.high %v10755_v33, %v10755_v33  ;;  %5018 = vmatmul.mubr.bf16.gmra.mrb[4].mxu0 %v9262_v23 }
 0x202   : > { %952 = vst [vmem:[#allocation2 + $0x160] sm:$0xcc] %v951_v5  ;;  %850 = vst [vmem:[#allocation2 + $0x178] sm:$0x11] %v849_v32  ;;  %v415_v31 = vsel %vm10757_vm0, %v409_v59, %v10756_v34  ;;  %v10758_v48 = vshll.u32 %v9219_v13, 16  ;;  %v10759_v4 = vunpack.i.h.bf16 %v9202_v43  ;;  %v10760_v10 = vunpack.i.l.bf16 %v9202_v43  ;;  %v10777_v22 = vld [vmem:[#allocation55_spill] sm:$0xff] }
 0x203   : > { %909 = vst [vmem:[#allocation2 + $0x168] sm:$0x77] %v908_v21  ;;  %976 = vst [vmem:[#allocation2 + $0x1a0] sm:$0x11] %v975_v0  ;;  %v10761_v25 = vunpack.i.h.bf16 %v9200_v18  ;;  %v10763_v38 = vunpack.i.l.bf16 %v9200_v18  ;;  %v1154_v53 = vrot.slane %v1152_v37, 7  ;;  %v9316_v41 = vrot.slane %v1155_v9, 6 }
 0x204   : > { %979 = vst [vmem:[#allocation2 + $0x1a8] sm:$0x11] %v978_v28  ;;  %v869_v11 = vor.u32 %v868_v24, %v10758_v48  ;;  %v9298_v60 = vsel %vm1028_vm5, %v10760_v10, %v10759_v4  ;;  %431 = vst [vmem:[#allocation2 + $0x18] sm:$0xcc] %v415_v31  ;;  %v9314_v24 = vrot.slane %v1152_v37, 5  ;;  %v310_v17 = vrot.slane %v296_v12, %v10745_v14  ;;  %v4075_v62 = vld [vmem:[#allocation2 + $0x10] sm:$0xff]  ;;  %v9330_v28 = vpop.permute.xlu1 %6599 }
 0x205   : > { %500 = vst [vmem:[#allocation2 + $0xa0] sm:$0xcc] %v415_v31  ;;  %v9305_v59 = vsel %vm3623_vm12, %v10761_v25, %v9274_v6  ;;  %v10762_v13 = vmov %v10761_v25  ;;  %5709 = vst.sshfl [vmem:[#allocation2 + $0x98] sm:$0xf pattern:$0x76325410] %v296_v12  ;;  %v10764_v5 = vmov %v10763_v38  ;;  %v10765_v32 = vunpack.i.h.bf16 %v8787_v16 }
 0x206   : > { %v3633_v52 = vsel %vm3623_vm12, %v10763_v38, %v10762_v13  ;;  %5724 = vst.sshfl [vmem:[#allocation2 + $0x110] sm:$0xf pattern:$0x76325410] %v296_v12  ;;  %v5864_v37 = vcombine.low %v4075_v62, %v4083_v55  ;;  %v5865_v31 = vcombine.high %v4075_v62, %v4083_v55  ;;  %v1294_v12 = vld [vmem:[#allocation2 + $0x1e8] sm:$0x11]  ;;  %v9332_v48 = vor.u32 %v1155_v9, %v1154_v53 }
 0x207   : > { %v3634_v21 = vsel %vm3623_vm12, %v10765_v32, %v10764_v5  ;;  %v9328_v0 = vpack.c.bf16 %v9305_v59, %v3633_v52  ;;  %v10767_v4 = vld [vmem:[#allocation15_spill] sm:$0xff]  ;;  %v9336_v25 = vld [vmem:[#allocation2 + $0x190] sm:$0xff]  ;;  %v1236_v16 = vrot.slane %v9314_v24, 4  ;;  %v1331_v18 = vld [vmem:[#allocation2 + $0x1e0] sm:$0x77]  ;;  %v9339_v13 = vrot.slane %v310_v17, 4  ;;  %5079 = vmatmul.mubr.bf16.gmra.mrb[4].mxu1 %v9262_v23 }
 0x208   : > { %10766 = vst [vmem:[#allocation42_spill] sm:$0xff] %v9332_v48  ;;  %v318_v10 = vrot.slane %v10767_v4, %v10745_v14  ;;  %v6141_v38 = vpack.c.bf16 %v3634_v21, %v8844_v49  ;;  %v9342_v5 = vpack.c.bf16 %v3633_v52, %v3634_v21  ;;  %v9344_v32 = vld [vmem:[#allocation2 + $0x1d0] sm:$0xff]  ;;  %v9346_v55 = vld [vmem:[#allocation2 + $0x158] sm:$0xff]  ;;  %5097 = vmatprep.subr.bf16.mxu0 %v5865_v31  ;;  %v10521_v49 = vunpack.i.l.bf16 %v9330_v28 }
 0x209   : > { %v910_v9 = vld [vmem:[#allocation2 + $0x170] sm:$0x77]  ;;  %v4065_v62 = vld [vmem:[#allocation2 + $0x138] sm:$0x44]  ;;  %v1332_v17 = vsel %vm7587_vm15, %v9332_v48, %v1331_v18  ;;  %5098 = vmatpush1.bf16.msra.mxu0 %v5864_v37  ;;  %v1295_v31 = vsel %vm7515_vm7, %v1236_v16, %v1294_v12  ;;  %v347_v18 = vsel %vm10769_vm14, %v10768_v56, %v9339_v13 }
 0x20a   : > { %v4062_v53 = vld [vmem:[#allocation2 + $0x130] sm:$0x44]  ;;  %v911_v52 = vsel %vm7587_vm15, %v869_v11, %v910_v9  ;;  %v953_v21 = vld [vmem:[#allocation2 + $0x168] sm:$0xcc]  ;;  %v1185_v42 = vld [vmem:[#allocation2 + $0x1a0] sm:$0x77] }
 0x20b   : > { %v1188_v34 = vld [vmem:[#allocation2 + $0x1a8] sm:$0x77]  ;;  %1333 = vst [vmem:[#allocation2 + $0x1e0] sm:$0x77] %v1332_v17  ;;  %912 = vst [vmem:[#allocation2 + $0x170] sm:$0x77] %v911_v52  ;;  %v954_v23 = vsel %vm7503_vm6, %v9257_v20, %v953_v21 }
 0x20c   : > { %v10770_v11 = vld [vmem:[#allocation26_spill] sm:$0xff]  ;;  %v1189_v12 = vsel %vm7587_vm15, %v8924_v15, %v1188_v34  ;;  %v4063_v16 = vsel %vm7604_vm2, 1065369472, %v4062_v53  ;;  %1296 = vst [vmem:[#allocation2 + $0x1e8] sm:$0x11] %v1295_v31  ;;  %v9378_v9 = vld [vmem:[#allocation2 + $0x150] sm:$0xff] }
 0x20d   : > { %v1186_v37 = vsel %vm7587_vm15, %v10770_v11, %v1185_v42  ;;  %517 = vst [vmem:[#allocation2 + $0xd0] sm:$0x33] %v347_v18  ;;  %363 = vst [vmem:[#allocation2 + $0x20] sm:$0x33] %v347_v18  ;;  %v4066_v20 = vsel %vm7604_vm2, 1065369472, %v4065_v62  ;;  %v9389_v62 = vpop.permute.xlu0 %1379 }
 0x20e   : > { %450 = vst [vmem:[#allocation2 + $0x58] sm:$0x33] %v347_v18  ;;  %955 = vst [vmem:[#allocation2 + $0x168] sm:$0xcc] %v954_v23  ;;  %v3766_v42 = vshrl.u32 %v6141_v38, 16  ;;  %v3863_v17 = vshrl.u32 %v9342_v5, 16 }
 0x20f   : > { %1187 = vst [vmem:[#allocation2 + $0x1a0] sm:$0x77] %v1186_v37  ;;  %1190 = vst [vmem:[#allocation2 + $0x1a8] sm:$0x77] %v1189_v12  ;;  %v9383_v34 = vld [vmem:[#allocation2 + $0x118] sm:$0xff]  ;;  %v3769_v53 = vshll.u32 %v6141_v38, 16 }
 0x210   : > { %4064 = vst [vmem:[#allocation2 + $0x130] sm:$0x44] %v4063_v16  ;;  %4067 = vst [vmem:[#allocation2 + $0x138] sm:$0x44] %v4066_v20  ;;  %v3866_v52 = vshll.u32 %v9342_v5, 16  ;;  %v3974_v21 = vshrl.u32 %v9328_v0, 16  ;;  %v10772_v20 = vunpack.i.h.bf16 %v9202_v43 }
 0x211   : > { %v9391_v31 = vld [vmem:[#allocation2 + $0x110] sm:$0xff]  ;;  %v3768_v18 = vrot.slane %v3766_v42, 7  ;;  %v9393_v23 = vrot.slane %v3863_v17, 5  ;;  %v3977_v11 = vshll.u32 %v9328_v0, 16  ;;  %v9396_v37 = vrot.slane %v318_v10, 4  ;;  %v4076_v7 = vld [vmem:[#allocation2 + $0x18] sm:$0xff]  ;;  %vm10774_vm2 = vmmov %vm10757_vm0 }
 0x212   : > { %v5897_v5 = vcombine.high %v9391_v31, %v9378_v9  ;;  %v3949_v12 = vld [vmem:[#allocation2 + $0x428] sm:$0x11]  ;;  %v3976_v16 = vrot.slane %v3974_v21, 7  ;;  %v1033_v42 = vsel %vm1028_vm5, %v10772_v20, %v10521_v49  ;;  %v4091_v17 = vld [vmem:[#allocation2 + $0x90] sm:$0xff]  ;;  %v1574_v21 = vld [vmem:[#allocation2 + $0x1e0] sm:$0xcc] }
 0x213   : > { %10771 = vst [vmem:[#allocation41_spill] sm:$0xff] %v9396_v37  ;;  %v9408_v0 = vor.u32 %v3769_v53, %v3768_v18  ;;  %v3891_v10 = vrot.slane %v9393_v23, 4  ;;  %v348_v29 = vsel %vm10774_vm2, %v9339_v13, %v9396_v37  ;;  %v6048_v15 = vpack.c.bf16 %v1033_v42, %v9298_v60  ;;  %v4019_v43 = vld [vmem:[#allocation2 + $0x410] sm:$0x77] }
 0x214   : > { %v9415_v38 = vrot.slane %v3866_v52, 6  ;;  %v3979_v56 = vor.u32 %v3977_v11, %v3976_v16  ;;  %518 = vst [vmem:[#allocation2 + $0xd8] sm:$0x33] %v348_v29  ;;  %364 = vst [vmem:[#allocation2 + $0x28] sm:$0x33] %v348_v29  ;;  %v10775_v18 = vunpack.i.h.bf16 %v9260_v39  ;;  %v10776_v13 = vld [vmem:[#allocation24_spill] sm:$0xff] }
 0x215   : > { %10773 = vst [vmem:[#allocation12_spill] sm:$0xff] %v9408_v0  ;;  %451 = vst [vmem:[#allocation2 + $0x60] sm:$0x33] %v348_v29  ;;  %v1575_v60 = vsel %vm7503_vm6, %v10776_v13, %v1574_v21  ;;  %v4099_v52 = vld [vmem:[#allocation2 + $0xd0] sm:$0xff]  ;;  %v4084_v11 = vld [vmem:[#allocation2 + $0x58] sm:$0xff]  ;;  %v3950_v16 = vsel %vm7515_vm7, %v3891_v10, %v3949_v12  ;;  %v4020_v29 = vsel %vm7587_vm15, %v9408_v0, %v4019_v43  ;;  %v1159_v42 = vshrl.u32 %v6048_v15, 16  ;;  %v9434_v13 = vpop.permute.xlu0 %6604 }
 0x216   : > { %v9424_v20 = vsel %vm1389_vm8, %v10775_v18, %v9389_v62  ;;  %v1267_v49 = vld [vmem:[#allocation2 + $0x1a0] sm:$0xcc]  ;;  %v1270_v53 = vld [vmem:[#allocation2 + $0x1a8] sm:$0xcc]  ;;  %1576 = vst [vmem:[#allocation2 + $0x1e0] sm:$0xcc] %v1575_v60  ;;  %v5880_v37 = vcombine.low %v4091_v17, %v4099_v52  ;;  %v5881_v18 = vcombine.high %v4091_v17, %v4099_v52  ;;  %v5866_v14 = vcombine.low %v4076_v7, %v4084_v11 }
 0x217   : > { %v5867_v48 = vcombine.high %v4076_v7, %v4084_v11  ;;  %3951 = vst [vmem:[#allocation2 + $0x428] sm:$0x11] %v3950_v16  ;;  %4021 = vst [vmem:[#allocation2 + $0x410] sm:$0x77] %v4020_v29  ;;  %v4022_v21 = vld [vmem:[#allocation2 + $0x418] sm:$0x77]  ;;  %v10778_v12 = vor.u32 %v8918_v2, %v10777_v22  ;;  %v10779_v43 = vor.u32 %v9316_v41, %v9314_v24  ;;  %v10782_v24 = vunpack.i.l.bf16 %v9260_v39 }
 0x218   : > { %v4023_v7 = vsel %vm7587_vm15, %v3979_v56, %v4022_v21  ;;  %v1161_v17 = vrot.slane %v1159_v42, 7  ;;  %v9448_v52 = vld [vmem:[#allocation2 + $0x250] sm:$0xff]  ;;  %5099 = vmatprep.subr.bf16.mxu0 %v5881_v18  ;;  %v1162_v2 = vshll.u32 %v6048_v15, 16  ;;  %v9450_v22 = vrot.slane %v1159_v42, 5  ;;  %v10786_v29 = vld [vmem:[#allocation54_spill] sm:$0xff] }
 0x219   : > { %v1268_v10 = vsel %vm7503_vm6, %v10778_v12, %v1267_v49  ;;  %v1271_v60 = vsel %vm7503_vm6, %v10779_v43, %v1270_v53  ;;  %5158 = vmatprep.subr.bf16.mxu1 %v5867_v48  ;;  %4024 = vst [vmem:[#allocation2 + $0x418] sm:$0x77] %v4023_v7  ;;  %v10781_v49 = vunpack.i.h.bf16 %v9260_v39  ;;  %v10783_v56 = vmov %v10782_v24  ;;  %v10784_v53 = vld [vmem:[#allocation21_spill] sm:$0xff]  ;;  %5100 = vmatpush1.bf16.msra.mxu0 %v5880_v37  ;;  %v1297_v15 = vld [vmem:[#allocation2 + $0x1f0] sm:$0x11] }
 0x21a   : > { %1269 = vst [vmem:[#allocation2 + $0x1a0] sm:$0xcc] %v1268_v10  ;;  %1272 = vst [vmem:[#allocation2 + $0x1a8] sm:$0xcc] %v1271_v60  ;;  %v10785_v11 = vunpack.i.h.bf16 %v10784_v53  ;;  %5159 = vmatpush1.bf16.msra.mxu1 %v5866_v14  ;;  %v4092_v48 = vld [vmem:[#allocation2 + $0x98] sm:$0xff]  ;;  %v9466_v12 = vld [vmem:[#allocation2 + $0x210] sm:$0xff]  ;;  %v6607_v10 = vunpack.i.h.bf16 %v9434_v13  ;;  %5101 = vmatprep.subr.bf16.mxu0 %v5897_v5  ;;  %v9469_v39 = vor.u32 %v1162_v2, %v1161_v17 }
 0x21b   : > { %10780 = vst [vmem:[#allocation45_spill] sm:$0xff] %v9450_v22  ;;  %v1395_v41 = vsel %vm1389_vm8, %v10782_v24, %v10781_v49  ;;  %v9471_v43 = vrot.slane %v1162_v2, 6  ;;  %v1237_v60 = vrot.slane %v9450_v22, 4  ;;  %v1334_v37 = vld [vmem:[#allocation2 + $0x1e8] sm:$0x77]  ;;  %v9476_v7 = vld [vmem:[#allocation2 + $0x198] sm:$0xff]  ;;  %v6606_v22 = vunpack.i.l.bf16 %v9434_v13 }
 0x21c   : > { %v1396_v16 = vsel %vm1389_vm8, %v10785_v11, %v10783_v56  ;;  %v6067_v21 = vpack.c.bf16 %v9424_v20, %v1395_v41  ;;  %v4100_v49 = vld [vmem:[#allocation2 + $0xd8] sm:$0xff]  ;;  %v1766_v2 = vld [vmem:[#allocation2 + $0x220] sm:$0xcc]  ;;  %v10790_v13 = vcombine.low %v9336_v25, %v9344_v32 }
 0x21d   : > { %v6058_v42 = vpack.c.bf16 %v1396_v16, %v10786_v29  ;;  %v6065_v18 = vpack.c.bf16 %v1395_v41, %v1396_v16  ;;  %v9478_v11 = vld [vmem:[#allocation2 + $0x1d8] sm:$0xff]  ;;  %v5882_v5 = vcombine.low %v4092_v48, %v4100_v49  ;;  %v5883_v17 = vcombine.high %v4092_v48, %v4100_v49 }
 0x21e   : > { %v1298_v16 = vsel %vm7515_vm7, %v1237_v60, %v1297_v15  ;;  %v1335_v29 = vsel %vm7587_vm15, %v9469_v39, %v1334_v37  ;;  %v10788_v48 = vcombine.high %v9336_v25, %v9344_v32  ;;  %v1607_v49 = vld [vmem:[#allocation2 + $0x238] sm:$0x11]  ;;  %v1790_v15 = vld [vmem:[#allocation2 + $0x260] sm:$0x11]  ;;  %v1722_v60 = vshrl.u32 %v6067_v21, 16 }
 0x21f   : > { %v1531_v24 = vshrl.u32 %v6058_v42, 16  ;;  %v1534_v41 = vshll.u32 %v6058_v42, 16  ;;  %v1667_v56 = vshrl.u32 %v6065_v18, 16  ;;  %v1670_v53 = vshll.u32 %v6065_v18, 16  ;;  %1299 = vst [vmem:[#allocation2 + $0x1f0] sm:$0x11] %v1298_v16  ;;  %5160 = vmatprep.subr.bf16.mxu1 %v5883_v17 }
 0x220   : > { %v10787_v42 = vcombine.low %v9391_v31, %v9378_v9  ;;  %1336 = vst [vmem:[#allocation2 + $0x1e8] sm:$0x77] %v1335_v29  ;;  %v1725_v16 = vshll.u32 %v6067_v21, 16  ;;  %v5929_v37 = vcombine.high %v9466_v12, %v9448_v52  ;;  %v5914_v9 = vcombine.low %v9476_v7, %v9478_v11  ;;  %5161 = vmatpush1.bf16.msra.mxu1 %v5882_v5  ;;  %v1706_v21 = vld [vmem:[#allocation2 + $0x230] sm:$0x77] }
 0x221   : > { %v1533_v18 = vrot.slane %v1531_v24, 5  ;;  %v1536_v14 = vrot.slane %v1534_v41, 6  ;;  %v1669_v0 = vrot.slane %v1667_v56, 7  ;;  %v9499_v56 = vpop.permute.xlu1 %2272  ;;  %v5915_v17 = vcombine.high %v9476_v7, %v9478_v11 }
 0x222   : > { %5102 = vmatpush1.bf16.msra.mxu0 %v10787_v42  ;;  %v10789_v29 = vcombine.high %v9383_v34, %v9346_v55  ;;  %v1724_v42 = vrot.slane %v1722_v60, 5  ;;  %v9522_v60 = vld [vmem:[#allocation2 + $0x258] sm:$0xff]  ;;  %v10792_v25 = vcombine.low %v9383_v34, %v9346_v55 }
 0x223   : > { %5103 = vmatprep.subr.bf16.mxu0 %v10788_v48  ;;  %v9497_v31 = vor.u32 %v1536_v14, %v1533_v18  ;;  %v1545_v24 = vrot.slane %v1533_v18, 4  ;;  %v1672_v41 = vor.u32 %v1670_v53, %v1669_v0  ;;  %v1727_v48 = vrot.slane %v1725_v16, 6  ;;  %v6610_v0 = vpop.permute.xlu0 %6609  ;;  %v1793_v53 = vld [vmem:[#allocation2 + $0x268] sm:$0x11] }
 0x224   : > { %5162 = vmatprep.subr.bf16.mxu1 %v10789_v29  ;;  %v2287_v14 = vsel %vm2282_vm4, %v6607_v10, %v9499_v56 }
 0x225   : > { %v1608_v5 = vsel %vm7515_vm7, %v1545_v24, %v1607_v49  ;;  %v1707_v7 = vsel %vm7587_vm15, %v1672_v41, %v1706_v21  ;;  %v1767_v11 = vsel %vm7503_vm6, %v9497_v31, %v1766_v2  ;;  %v1791_v18 = vsel %vm7515_vm7, %v1545_v24, %v1790_v15  ;;  %v1769_v24 = vld [vmem:[#allocation2 + $0x228] sm:$0xcc]  ;;  %5163 = vmatpush1.bf16.msra.mxu1 %v10792_v25 }
 0x226   : > { %5104 = vmatpush1.bf16.msra.mxu0 %v10790_v13  ;;  %1609 = vst [vmem:[#allocation2 + $0x238] sm:$0x11] %v1608_v5  ;;  %1708 = vst [vmem:[#allocation2 + $0x230] sm:$0x77] %v1707_v7  ;;  %v1728_v16 = vor.u32 %v1727_v48, %v1724_v42  ;;  %v1745_v49 = vrot.slane %v1724_v42, 4  ;;  %v2288_v41 = vsel %vm2282_vm4, %v6606_v22, %v6607_v10  ;;  %v10791_v2 = vunpack.i.h.bf16 %v8883_v51  ;;  %v4140_v48 = vld [vmem:[#allocation2 + $0x218] sm:$0xff] }
 0x227   : > { %1768 = vst [vmem:[#allocation2 + $0x220] sm:$0xcc] %v1767_v11  ;;  %1792 = vst [vmem:[#allocation2 + $0x260] sm:$0x11] %v1791_v18  ;;  %5105 = vmatprep.subr.bf16.mxu0 %v5929_v37  ;;  %v6098_v29 = vpack.c.bf16 %v2287_v14, %v2288_v41  ;;  %v6612_v21 = vunpack.i.h.bf16 %v6610_v0  ;;  %v6611_v42 = vunpack.i.l.bf16 %v6610_v0  ;;  %5164 = vmatprep.subr.bf16.mxu1 %v5915_v17  ;;  %v1577_v5 = vld [vmem:[#allocation2 + $0x1e8] sm:$0xcc]  ;;  %v9540_v0 = vpop.permute.xlu1 %3110 }
 0x228   : > { %v2289_v15 = vsel %vm2282_vm4, %v10791_v2, %v6606_v22  ;;  %v1770_v37 = vsel %vm7503_vm6, %v1728_v16, %v1769_v24  ;;  %v1794_v51 = vsel %vm7515_vm7, %v1745_v49, %v1793_v53  ;;  %v5930_v22 = vcombine.low %v4140_v48, %v9522_v60  ;;  %v10794_v11 = vld [vmem:[#allocation33_spill] sm:$0xff]  ;;  %v2655_v2 = vld [vmem:[#allocation2 + $0x320] sm:$0x11] }
 0x229   : > { %v6097_v32 = vpack.c.bf16 %v2289_v15, %v9133_v57  ;;  %v5931_v10 = vcombine.high %v4140_v48, %v9522_v60  ;;  %1771 = vst [vmem:[#allocation2 + $0x228] sm:$0xcc] %v1770_v37  ;;  %1795 = vst [vmem:[#allocation2 + $0x268] sm:$0x11] %v1794_v51  ;;  %v2537_v34 = vshrl.u32 %v6098_v29, 16  ;;  %v2540_v14 = vshll.u32 %v6098_v29, 16  ;;  %5165 = vmatpush1.bf16.msra.mxu1 %v5914_v9 }
 0x22a   : > { %v10793_v7 = vcombine.low %v9466_v12, %v9448_v52  ;;  %v1578_v17 = vsel %vm7503_vm6, %v10794_v11, %v1577_v5  ;;  %v3122_v53 = vsel %vm3118_vm11, %v6612_v21, %v9540_v0  ;;  %v3123_v18 = vsel %vm3118_vm11, %v6611_v42, %v6612_v21  ;;  %v10795_v13 = vld [vmem:[#allocation25_spill] sm:$0xff]  ;;  %v2658_v15 = vld [vmem:[#allocation2 + $0x328] sm:$0x11]  ;;  %v2569_v5 = vld [vmem:[#allocation2 + $0x2f0] sm:$0x77] }
 0x22b   : > { %v2530_v55 = vshrl.u32 %v6097_v32, 16  ;;  %v2533_v57 = vshll.u32 %v6097_v32, 16  ;;  %v10796_v60 = vunpack.i.h.bf16 %v10795_v13  ;;  %1579 = vst [vmem:[#allocation2 + $0x1e8] sm:$0xcc] %v1578_v17  ;;  %v2539_v52 = vrot.slane %v2537_v34, 7  ;;  %v10797_v29 = vld [vmem:[#allocation57_spill] sm:$0xff]  ;;  %5166 = vmatprep.subr.bf16.mxu1 %v5931_v10 }
 0x22c   : > { %5106 = vmatpush1.bf16.msra.mxu0 %v10793_v7  ;;  %v2588_v24 = vrot.slane %v2537_v34, 5  ;;  %v2589_v25 = vrot.slane %v2540_v14, 6  ;;  %v10798_v11 = vld [vmem:[#allocation43_spill] sm:$0xff]  ;;  %v2572_v17 = vld [vmem:[#allocation2 + $0x2f8] sm:$0x77] }
 0x22d   : > { %v3124_v16 = vsel %vm3118_vm11, %v10796_v60, %v6611_v42  ;;  %v2532_v49 = vrot.slane %v2530_v55, 7  ;;  %v2585_v12 = vrot.slane %v2530_v55, 5  ;;  %v2586_v41 = vrot.slane %v2533_v57, 6  ;;  %v2631_v60 = vld [vmem:[#allocation2 + $0x2e0] sm:$0xcc]  ;;  %5167 = vmatpush1.bf16.msra.mxu1 %v5930_v22 }
 0x22e   : > { %v6128_v32 = vpack.c.bf16 %v3123_v18, %v3124_v16  ;;  %v6130_v48 = vpack.c.bf16 %v3124_v16, %v10797_v29  ;;  %v2011_v21 = vld [vmem:[#allocation2 + $0x260] sm:$0x77]  ;;  %v2542_v51 = vor.u32 %v2540_v14, %v2539_v52  ;;  %v2590_v9 = vor.u32 %v2589_v25, %v2588_v24  ;;  %v2634_v14 = vld [vmem:[#allocation2 + $0x2e8] sm:$0xcc]  ;;  %v6615_v52 = vpop.permute.xlu0 %6614 }
 0x22f   : > { %v2535_v37 = vor.u32 %v2533_v57, %v2532_v49  ;;  %v2587_v7 = vor.u32 %v2586_v41, %v2585_v12  ;;  %v2607_v42 = vrot.slane %v2585_v12, 4  ;;  %v2012_v55 = vsel %vm7587_vm15, %v10798_v11, %v2011_v21  ;;  %v9569_v12 = vld [vmem:[#allocation2 + $0x290] sm:$0xff] }
 0x230   : > { %v2608_v13 = vrot.slane %v2588_v24, 4  ;;  %v3415_v34 = vshrl.u32 %v6128_v32, 16  ;;  %2013 = vst [vmem:[#allocation2 + $0x260] sm:$0x77] %v2012_v55  ;;  %v2573_v10 = vsel %vm7587_vm15, %v2542_v51, %v2572_v17  ;;  %v2014_v41 = vld [vmem:[#allocation2 + $0x268] sm:$0x77]  ;;  %v2635_v24 = vsel %vm7503_vm6, %v2590_v9, %v2634_v14 }
 0x231   : > { %v2570_v16 = vsel %vm7587_vm15, %v2535_v37, %v2569_v5  ;;  %v2632_v57 = vsel %vm7503_vm6, %v2587_v7, %v2631_v60  ;;  %v2656_v49 = vsel %vm7515_vm7, %v2607_v42, %v2655_v2  ;;  %2574 = vst [vmem:[#allocation2 + $0x2f8] sm:$0x77] %v2573_v10  ;;  %v3418_v21 = vshll.u32 %v6128_v32, 16  ;;  %2636 = vst [vmem:[#allocation2 + $0x2e8] sm:$0xcc] %v2635_v24  ;;  %v4163_v5 = vld [vmem:[#allocation2 + $0x2d0] sm:$0xff]  ;;  %v9579_v60 = vpop.permute.xlu1 %1840 }
 0x232   : > { %2571 = vst [vmem:[#allocation2 + $0x2f0] sm:$0x77] %v2570_v16  ;;  %2633 = vst [vmem:[#allocation2 + $0x2e0] sm:$0xcc] %v2632_v57  ;;  %v2659_v25 = vsel %vm7515_vm7, %v2608_v13, %v2658_v15  ;;  %v3417_v29 = vrot.slane %v3415_v34, 7  ;;  %v2015_v22 = vsel %vm7587_vm15, %v9085_v26, %v2014_v41  ;;  %v6131_v2 = vpack.c.bf16 %v3122_v53, %v3123_v18 }
 0x233   : > { %2657 = vst [vmem:[#allocation2 + $0x320] sm:$0x11] %v2656_v49  ;;  %2660 = vst [vmem:[#allocation2 + $0x328] sm:$0x11] %v2659_v25  ;;  %v3477_v37 = vshrl.u32 %v6130_v48, 16  ;;  %v3480_v51 = vshll.u32 %v6130_v48, 16  ;;  %v6617_v42 = vunpack.i.h.bf16 %v6615_v52  ;;  %v6616_v11 = vunpack.i.l.bf16 %v6615_v52 }
 0x234   : > { %2016 = vst [vmem:[#allocation2 + $0x268] sm:$0x77] %v2015_v22  ;;  %v3420_v7 = vor.u32 %v3418_v21, %v3417_v29  ;;  %v5944_v55 = vcombine.low %v9569_v12, %v4163_v5  ;;  %v3450_v17 = vld [vmem:[#allocation2 + $0x3b8] sm:$0x77]  ;;  %v3485_v32 = vshrl.u32 %v6131_v2, 16  ;;  %v3488_v13 = vshll.u32 %v6131_v2, 16 }
 0x235   : > { %v3479_v15 = vrot.slane %v3477_v37, 5  ;;  %v3482_v9 = vrot.slane %v3480_v51, 6  ;;  %v9586_v53 = vsel %vm1850_vm3, %v6617_v42, %v9579_v60  ;;  %v1856_v18 = vsel %vm1850_vm3, %v6616_v11, %v6617_v42  ;;  %v3559_v16 = vld [vmem:[#allocation2 + $0x3e0] sm:$0x11]  ;;  %v3562_v41 = vld [vmem:[#allocation2 + $0x3e8] sm:$0x11] }
 0x236   : > { %v3451_v26 = vsel %vm7587_vm15, %v3420_v7, %v3450_v17  ;;  %v10799_v48 = vunpack.i.h.bf16 %v8966_v46  ;;  %v3487_v57 = vrot.slane %v3485_v32, 5  ;;  %v3490_v14 = vrot.slane %v3488_v13, 6  ;;  %v3535_v24 = vld [vmem:[#allocation2 + $0x3a0] sm:$0xcc] }
 0x237   : > { %3452 = vst [vmem:[#allocation2 + $0x3b8] sm:$0x77] %v3451_v26  ;;  %v3483_v10 = vor.u32 %v3482_v9, %v3479_v15  ;;  %v3509_v49 = vrot.slane %v3479_v15, 4  ;;  %v2137_v52 = vld [vmem:[#allocation2 + $0x260] sm:$0xcc]  ;;  %v6086_v21 = vpack.c.bf16 %v9586_v53, %v1856_v18  ;;  %v5945_v22 = vcombine.high %v9569_v12, %v4163_v5  ;;  %v4156_v5 = vld [vmem:[#allocation2 + $0x298] sm:$0xff] }
 0x238   : > { %v1857_v34 = vsel %vm1850_vm3, %v10799_v48, %v6616_v11  ;;  %v10800_v46 = vor.u32 %v9079_v47, %v9077_v30  ;;  %v3491_v51 = vor.u32 %v3490_v14, %v3487_v57  ;;  %v3510_v7 = vrot.slane %v3487_v57, 4  ;;  %v3538_v11 = vld [vmem:[#allocation2 + $0x3a8] sm:$0xcc]  ;;  %v10802_v32 = vld [vmem:[#allocation46_spill] sm:$0xff] }
 0x239   : > { %v6077_v25 = vpack.c.bf16 %v1857_v34, %v9027_v63  ;;  %v6084_v29 = vpack.c.bf16 %v1856_v18, %v1857_v34  ;;  %v3536_v42 = vsel %vm7503_vm6, %v3483_v10, %v3535_v24  ;;  %v10801_v63 = vld [vmem:[#allocation44_spill] sm:$0xff]  ;;  %v3560_v30 = vsel %vm7515_vm7, %v3509_v49, %v3559_v16  ;;  %5107 = vmatprep.subr.bf16.mxu0 %v5945_v22  ;;  %v4164_v49 = vld [vmem:[#allocation2 + $0x2d8] sm:$0xff] }
 0x23a   : > { %v2138_v2 = vsel %vm7503_vm6, %v10800_v46, %v2137_v52  ;;  %v2882_v37 = vld [vmem:[#allocation2 + $0x320] sm:$0x77]  ;;  %v2885_v15 = vld [vmem:[#allocation2 + $0x328] sm:$0x77]  ;;  %3537 = vst [vmem:[#allocation2 + $0x3a0] sm:$0xcc] %v3536_v42  ;;  %v3539_v26 = vsel %vm7503_vm6, %v3491_v51, %v3538_v11  ;;  %v3563_v18 = vsel %vm7515_vm7, %v3510_v7, %v3562_v41  ;;  %5108 = vmatpush1.bf16.msra.mxu0 %v5944_v55  ;;  %v6620_v52 = vpop.permute.xlu0 %6619 }
 0x23b   : > { %2139 = vst [vmem:[#allocation2 + $0x260] sm:$0xcc] %v2138_v2  ;;  %v2883_v17 = vsel %vm7587_vm15, %v10801_v63, %v2882_v37  ;;  %v1985_v47 = vshrl.u32 %v6077_v25, 16  ;;  %v1988_v12 = vshll.u32 %v6077_v25, 16  ;;  %v2140_v9 = vld [vmem:[#allocation2 + $0x268] sm:$0xcc]  ;;  %v2886_v13 = vsel %vm7587_vm15, %v10802_v32, %v2885_v15 }
 0x23c   : > { %2884 = vst [vmem:[#allocation2 + $0x320] sm:$0x77] %v2883_v17  ;;  %3561 = vst [vmem:[#allocation2 + $0x3e0] sm:$0x11] %v3560_v30  ;;  %v2086_v48 = vshrl.u32 %v6084_v29, 16  ;;  %v10803_v34 = vor.u32 %v9089_v61, %v9081_v40  ;;  %v2089_v57 = vshll.u32 %v6084_v29, 16  ;;  %v3869_v24 = vor.u32 %v9415_v38, %v9393_v23  ;;  %v9625_v40 = vpop.permute.xlu1 %6624 }
 0x23d   : > { %2887 = vst [vmem:[#allocation2 + $0x328] sm:$0x77] %v2886_v13  ;;  %3540 = vst [vmem:[#allocation2 + $0x3a8] sm:$0xcc] %v3539_v26  ;;  %v1987_v10 = vrot.slane %v1985_v47, 7  ;;  %v2183_v14 = vshrl.u32 %v6086_v21, 16  ;;  %v5947_v25 = vcombine.high %v4156_v5, %v4164_v49  ;;  %v5946_v37 = vcombine.low %v4156_v5, %v4164_v49 }
 0x23e   : > { %v2141_v16 = vsel %vm7503_vm6, %v10803_v34, %v2140_v9  ;;  %3564 = vst [vmem:[#allocation2 + $0x3e8] sm:$0x11] %v3563_v18  ;;  %v9623_v41 = vrot.slane %v2086_v48, 5  ;;  %v2186_v55 = vshll.u32 %v6086_v21, 16  ;;  %v4179_v61 = vld [vmem:[#allocation2 + $0x350] sm:$0xff]  ;;  %v10531_v29 = vunpack.i.h.bf16 %v9625_v40  ;;  %v4072_v18 = vld [vmem:[#allocation6 + $0x20] sm:$0xff] }
 0x23f   : > { %2142 = vst [vmem:[#allocation2 + $0x268] sm:$0xcc] %v2141_v16  ;;  %v2167_v22 = vld [vmem:[#allocation2 + $0x2b0] sm:$0x11]  ;;  %v9627_v46 = vor.u32 %v1988_v12, %v1987_v10  ;;  %v2185_v2 = vrot.slane %v2183_v14, 7  ;;  %5168 = vmatprep.subr.bf16.mxu1 %v5947_v25  ;;  %v6626_v42 = vunpack.i.l.bf16 %v9625_v40  ;;  %v6622_v11 = vunpack.i.h.bf16 %v6620_v52  ;;  %v4180_v12 = vld [vmem:[#allocation2 + $0x358] sm:$0xff] }
 0x240   : > { %v2107_v51 = vrot.slane %v9623_v41, 4  ;;  %v2218_v7 = vld [vmem:[#allocation2 + $0x2a0] sm:$0x77]  ;;  %v6621_v63 = vunpack.i.l.bf16 %v6620_v52  ;;  %v4171_v21 = vld [vmem:[#allocation2 + $0x310] sm:$0xff]  ;;  %v9632_v17 = vrot.slane %v2089_v57, 6  ;;  %5169 = vmatpush1.bf16.msra.mxu1 %v5946_v37  ;;  %v4172_v49 = vld [vmem:[#allocation2 + $0x318] sm:$0xff]  ;;  %v10804_v52 = vor.u32 %v9149_v36, %v9147_v50 }
 0x241   : > { %v2188_v15 = vor.u32 %v2186_v55, %v2185_v2  ;;  %v2219_v30 = vsel %vm7587_vm15, %v9627_v46, %v2218_v7  ;;  %v5960_v47 = vcombine.low %v4171_v21, %v4179_v61  ;;  %v2221_v9 = vld [vmem:[#allocation2 + $0x2a8] sm:$0x77]  ;;  %v2722_v32 = vsel %vm2717_vm9, %v6626_v42, %v10531_v29  ;;  %v10807_v36 = vld [vmem:[#allocation22_spill] sm:$0xff] }
 0x242   : > { %v2168_v5 = vsel %vm7515_vm7, %v2107_v51, %v2167_v22  ;;  %2220 = vst [vmem:[#allocation2 + $0x2a0] sm:$0x77] %v2219_v30  ;;  %v2723_v13 = vsel %vm2717_vm9, %v6622_v11, %v6626_v42  ;;  %v2724_v26 = vsel %vm2717_vm9, %v6621_v63, %v6622_v11  ;;  %v2725_v10 = vsel %vm2717_vm9, %v9072_v45, %v6621_v63  ;;  %v10805_v22 = vld [vmem:[#allocation27_spill] sm:$0xff]  ;;  %v9660_v42 = vpop.permute.xlu1 %616  ;;  %v4195_v45 = vld [vmem:[#allocation2 + $0x3d0] sm:$0xff] }
 0x243   : > { %v2974_v48 = vld [vmem:[#allocation2 + $0x320] sm:$0xcc]  ;;  %2169 = vst [vmem:[#allocation2 + $0x2b0] sm:$0x11] %v2168_v5  ;;  %v2222_v16 = vsel %vm7587_vm15, %v2188_v15, %v2221_v9  ;;  %v6110_v57 = vpack.c.bf16 %v2722_v32, %v2723_v13  ;;  %v5961_v14 = vcombine.high %v4171_v21, %v4179_v61  ;;  %v6109_v51 = vpack.c.bf16 %v2724_v26, %v2725_v10 }
 0x244   : > { %v3792_v34 = vld [vmem:[#allocation2 + $0x3e0] sm:$0x77]  ;;  %v2975_v55 = vsel %vm7503_vm6, %v10804_v52, %v2974_v48  ;;  %v2977_v25 = vld [vmem:[#allocation2 + $0x328] sm:$0xcc]  ;;  %2223 = vst [vmem:[#allocation2 + $0x2a8] sm:$0x77] %v2222_v16  ;;  %v5962_v7 = vcombine.low %v4172_v49, %v4180_v12  ;;  %v10806_v61 = vor.u32 %v9157_v3, %v9155_v35  ;;  %v5963_v5 = vcombine.high %v4172_v49, %v4180_v12 }
 0x245   : > { %v3793_v2 = vsel %vm7587_vm15, %v10805_v22, %v3792_v34  ;;  %v3795_v37 = vld [vmem:[#allocation2 + $0x3e8] sm:$0x77]  ;;  %2976 = vst [vmem:[#allocation2 + $0x320] sm:$0xcc] %v2975_v55  ;;  %v2931_v63 = vshrl.u32 %v6110_v57, 16  ;;  %v2934_v21 = vshll.u32 %v6110_v57, 16  ;;  %5109 = vmatprep.subr.bf16.mxu0 %v5961_v14  ;;  %v9670_v9 = vcombine.high %v4072_v18, %v4072_v18  ;;  %v6630_v57 = vpop.permute.xlu0 %6629 }
 0x246   : > { %v2978_v50 = vsel %vm7503_vm6, %v10806_v61, %v2977_v25  ;;  %3794 = vst [vmem:[#allocation2 + $0x3e0] sm:$0x77] %v3793_v2  ;;  %v3796_v11 = vsel %vm7587_vm15, %v10807_v36, %v3795_v37  ;;  %v2923_v15 = vshrl.u32 %v6109_v51, 16  ;;  %v2926_v30 = vshll.u32 %v6109_v51, 16  ;;  %5110 = vmatpush1.bf16.msra.mxu0 %v5960_v47  ;;  %v4187_v35 = vld [vmem:[#allocation2 + $0x390] sm:$0xff]  ;;  %5170 = vmatprep.subr.bf16.mxu1 %v5963_v5  ;;  %v4196_v12 = vld [vmem:[#allocation2 + $0x3d8] sm:$0xff] }
 0x247   : > { %2979 = vst [vmem:[#allocation2 + $0x328] sm:$0xcc] %v2978_v50  ;;  %3797 = vst [vmem:[#allocation2 + $0x3e8] sm:$0x77] %v3796_v11  ;;  %v9672_v3 = vrot.slane %v2931_v63, 5  ;;  %v9674_v32 = vrot.slane %v2934_v21, 6  ;;  %v5976_v26 = vcombine.low %v4187_v35, %v4195_v45  ;;  %6006 = vmatprep.mubr.msk.bf16.mxu0 %vm4913_vm10, %v9670_v9  ;;  %v5977_v47 = vcombine.high %v4187_v35, %v4195_v45  ;;  %v9695_v11 = vpop.permute.xlu1 %6639 }
 0x248   : > { %v3022_v13 = vrot.slane %v2931_v63, 7  ;;  %v3007_v48 = vld [vmem:[#allocation2 + $0x378] sm:$0x11]  ;;  %v9676_v34 = vrot.slane %v2923_v15, 5  ;;  %v9678_v16 = vrot.slane %v2926_v30, 6  ;;  %v3020_v10 = vrot.slane %v2923_v15, 7  ;;  %6009 = vmatprep.mubr.msk.bf16.mxu1 %vm4913_vm10, %v9670_v9  ;;  %5171 = vmatpush1.bf16.msra.mxu1 %v5962_v7 }
 0x249   : > { %v2471_v14 = vld [vmem:[#allocation2 + $0x2a0] sm:$0xcc]  ;;  %v3004_v49 = vld [vmem:[#allocation2 + $0x370] sm:$0x11]  ;;  %v2945_v55 = vrot.slane %v9672_v3, 4  ;;  %v9687_v22 = vcombine.low %v4072_v18, %v4072_v18  ;;  %5111 = vmatprep.subr.bf16.mxu0 %v5977_v47  ;;  %v4188_v36 = vld [vmem:[#allocation2 + $0x398] sm:$0xff] }
 0x24a   : > { %v3023_v25 = vor.u32 %v3022_v13, %v2934_v21  ;;  %v10809_v2 = vld [vmem:[#allocation28_spill] sm:$0xff]  ;;  %v2944_v45 = vrot.slane %v9676_v34, 4  ;;  %v3021_v61 = vor.u32 %v3020_v10, %v2926_v30  ;;  %v3057_v50 = vld [vmem:[#allocation2 + $0x368] sm:$0x77]  ;;  %v3054_v7 = vld [vmem:[#allocation2 + $0x360] sm:$0x77]  ;;  %v5978_v15 = vcombine.low %v4188_v36, %v4196_v12  ;;  %5112 = vmatpush1.bf16.msra.mxu0 %v5976_v26 }
 0x24b   : > { %10808 = vst [vmem:[#allocation18_spill] sm:$0xff] %v9687_v22  ;;  %v2472_v37 = vsel %vm7503_vm6, %v10809_v2, %v2471_v14  ;;  %v2474_v63 = vld [vmem:[#allocation2 + $0x2a8] sm:$0xcc]  ;;  %v3008_v18 = vsel %vm7515_vm7, %v2945_v55, %v3007_v48  ;;  %5028 = vmatmul.mubr.bf16.gmra.mrb[8].mxu0 %v9687_v22  ;;  %5089 = vmatmul.mubr.bf16.gmra.mrb[8].mxu1 %v9687_v22  ;;  %v6632_v30 = vunpack.i.h.bf16 %v6630_v57  ;;  %v9703_v5 = vld [vmem:[#allocation2 + $0x410] sm:$0x77]  ;;  %v10810_v13 = vld [vmem:[#allocation30_spill] sm:$0xff] }
 0x24c   : > { %2473 = vst [vmem:[#allocation2 + $0x2a0] sm:$0xcc] %v2472_v37  ;;  %v3058_v21 = vsel %vm7587_vm15, %v3023_v25, %v3057_v50  ;;  %v2475_v10 = vsel %vm7503_vm6, %v10810_v13, %v2474_v63  ;;  %v3005_v48 = vsel %vm7515_vm7, %v2944_v45, %v3004_v49  ;;  %3009 = vst [vmem:[#allocation2 + $0x378] sm:$0x11] %v3008_v18  ;;  %v9712_v55 = vld [vmem:[#allocation2 + $0x418] sm:$0x77]  ;;  %v6631_v49 = vunpack.i.l.bf16 %v6630_v57 }
 0x24d   : > { %v3922_v35 = vld [vmem:[#allocation2 + $0x3e0] sm:$0xcc]  ;;  %v3055_v47 = vsel %vm7587_vm15, %v3021_v61, %v3054_v7  ;;  %3059 = vst [vmem:[#allocation2 + $0x368] sm:$0x77] %v3058_v21  ;;  %v5979_v14 = vcombine.high %v4188_v36, %v4196_v12  ;;  %v10811_v25 = vld [vmem:[#allocation52_spill] sm:$0xff]  ;;  %v10812_v2 = vld [vmem:[#allocation29_spill] sm:$0xff]  ;;  %v621_v45 = vsel %vm620_vm1, %v6632_v30, %v9660_v42  ;;  %v6642_v12 = vunpack.i.h.bf16 %v9695_v11 }
 0x24e   : > { %v10813_v37 = vor.u32 %v10811_v25, %v10812_v2  ;;  %v3925_v52 = vld [vmem:[#allocation2 + $0x3e8] sm:$0xcc]  ;;  %2476 = vst [vmem:[#allocation2 + $0x2a8] sm:$0xcc] %v2475_v10  ;;  %3006 = vst [vmem:[#allocation2 + $0x370] sm:$0x11] %v3005_v48  ;;  %v10814_v61 = vunpack.i.h.bf16 %v9330_v28  ;;  %v10815_v36 = vunpack.i.l.bf16 %v9330_v28  ;;  %v6641_v63 = vunpack.i.l.bf16 %v9695_v11  ;;  %v9769_v2 = vpop.permute.xlu0 %6634 }
 0x24f   : > { %3056 = vst [vmem:[#allocation2 + $0x360] sm:$0x77] %v3055_v47  ;;  %v9723_v26 = vld [vmem:[#allocation6 + $0x4] ss:$8 sps:$4 sm:$0xff]   ;;  %v3926_v42 = vsel %vm7503_vm6, %v3869_v24, %v3925_v52  ;;  %5172 = vmatprep.subr.bf16.mxu1 %v5979_v14  ;;  %v5993_v18 = vcombine.high %v9703_v5, %v9703_v5  ;;  %v622_v21 = vsel %vm620_vm1, %v6631_v49, %v6632_v30 }
 0x250   : > { %v3923_v50 = vsel %vm7503_vm6, %v10813_v37, %v3922_v35  ;;  %6010 = vmatprep.mubr.msk.bf16.mxu0 %vm4913_vm10, %v9723_v26  ;;  %6013 = vmatprep.mubr.msk.bf16.mxu1 %vm4913_vm10, %v9723_v26  ;;  %v9735_v57 = vsel %vm1028_vm5, %v10815_v36, %v10814_v61  ;;  %3927 = vst [vmem:[#allocation2 + $0x3e8] sm:$0xcc] %v3926_v42  ;;  %v10816_v35 = vunpack.i.h.bf16 %v9125_v8  ;;  %v10817_v36 = vld [vmem:[#allocation35_spill] sm:$0xff] }
 0x251   : > { %3924 = vst [vmem:[#allocation2 + $0x3e0] sm:$0xcc] %v3923_v50  ;;  %5173 = vmatpush1.bf16.msra.mxu1 %v5978_v15  ;;  %v5995_v38 = vcombine.high %v9712_v55, %v9712_v55  ;;  %v6040_v52 = vpack.c.bf16 %v621_v45, %v622_v21  ;;  %v9760_v13 = vsel %vm3623_vm12, %v6641_v63, %v6642_v12  ;;  %v980_v50 = vld [vmem:[#allocation2 + $0x1b0] sm:$0x11] }
 0x252   : > { %v623_v23 = vsel %vm620_vm1, %v10816_v35, %v6631_v49  ;;  %v3631_v8 = vsel %vm3623_vm12, %v9274_v6, %v6641_v63  ;;  %v4943_v10 = vand.u32 %v5993_v18, %v9145_v27  ;;  %v5992_v6 = vcombine.low %v9703_v5, %v9703_v5  ;;  %v10818_v35 = vld [vmem:[#allocation50_spill] sm:$0xff]  ;;  %vm10828_vm1 = vmmov %vm10757_vm0 }
 0x253   : > { %v6039_v24 = vpack.c.bf16 %v623_v23, %v9208_v1  ;;  %v6148_v30 = vpack.c.bf16 %v3631_v8, %v9305_v59  ;;  %v6151_v15 = vpack.c.bf16 %v9760_v13, %v3631_v8  ;;  %v4949_v48 = vand.u32 %v5995_v38, %v9145_v27  ;;  %v10819_v23 = vld [vmem:[#allocation49_spill] sm:$0xff] }
 0x254   : > { %v925_v14 = vshrl.u32 %v6040_v52, 16  ;;  %v928_v25 = vshll.u32 %v6040_v52, 16  ;;  %v3314_v37 = vld [vmem:[#allocation2 + $0x368] sm:$0xcc]  ;;  %5113 = vmatprep.subr.bf16.mxu0 %v4943_v10  ;;  %v10820_v38 = vor.u32 %v10818_v35, %v10819_v23  ;;  %v983_v52 = vld [vmem:[#allocation2 + $0x1b8] sm:$0x11]  ;;  %v5994_v35 = vcombine.low %v9712_v55, %v9712_v55  ;;  %v9801_v55 = vpop.permute.xlu0 %6644 }
 0x255   : > { %v871_v1 = vshrl.u32 %v6039_v24, 16  ;;  %v874_v47 = vshll.u32 %v6039_v24, 16  ;;  %v3871_v49 = vshrl.u32 %v6148_v30, 16  ;;  %v3874_v45 = vshll.u32 %v6148_v30, 16  ;;  %5174 = vmatprep.subr.bf16.mxu1 %v4949_v48  ;;  %v913_v48 = vld [vmem:[#allocation2 + $0x178] sm:$0x77] }
 0x256   : > { %v3981_v61 = vshrl.u32 %v6151_v15, 16  ;;  %v3311_v59 = vld [vmem:[#allocation2 + $0x360] sm:$0xcc]  ;;  %v3315_v42 = vsel %vm7503_vm6, %v10817_v36, %v3314_v37  ;;  %v9781_v8 = vrot.slane %v925_v14, 5  ;;  %v9783_v5 = vrot.slane %v928_v25, 6  ;;  %v9791_v25 = vpop.permute.xlu1 %6649 }
 0x257   : > { %v873_v63 = vrot.slane %v871_v1, 7  ;;  %v921_v18 = vrot.slane %v871_v1, 5  ;;  %v922_v21 = vrot.slane %v874_v47, 6  ;;  %v3312_v24 = vsel %vm7503_vm6, %v10820_v38, %v3311_v59  ;;  %3316 = vst [vmem:[#allocation2 + $0x368] sm:$0xcc] %v3315_v42 }
 0x258   : > { %v9785_v30 = vrot.slane %v3871_v49, 5  ;;  %3313 = vst [vmem:[#allocation2 + $0x360] sm:$0xcc] %v3312_v24  ;;  %v3952_v36 = vld [vmem:[#allocation2 + $0x430] sm:$0x11]  ;;  %v933_v23 = vrot.slane %v9781_v8, 4 }
 0x259   : > { %v876_v10 = vor.u32 %v874_v47, %v873_v63  ;;  %v923_v37 = vor.u32 %v922_v21, %v921_v18  ;;  %v932_v1 = vrot.slane %v921_v18, 4  ;;  %v956_v59 = vld [vmem:[#allocation2 + $0x170] sm:$0xcc]  ;;  %v3983_v14 = vrot.slane %v3981_v61, 7 }
 0x25a   : > { %v3892_v42 = vrot.slane %v9785_v30, 4  ;;  %v3984_v38 = vshll.u32 %v6151_v15, 16  ;;  %v9799_v18 = vrot.slane %v3874_v45, 6  ;;  %v931_v61 = vor.u32 %v9783_v5, %v9781_v8 }
 0x25b   : > { %v914_v49 = vsel %vm7587_vm15, %v876_v10, %v913_v48  ;;  %v957_v47 = vsel %vm7503_vm6, %v923_v37, %v956_v59  ;;  %v981_v63 = vsel %vm7515_vm7, %v932_v1, %v980_v50  ;;  %v984_v15 = vsel %vm7515_vm7, %v933_v23, %v983_v52  ;;  %v4025_v50 = vld [vmem:[#allocation2 + $0x420] sm:$0x77] }
 0x25c   : > { %915 = vst [vmem:[#allocation2 + $0x178] sm:$0x77] %v914_v49  ;;  %958 = vst [vmem:[#allocation2 + $0x170] sm:$0xcc] %v957_v47  ;;  %v3953_v21 = vsel %vm7515_vm7, %v3892_v42, %v3952_v36  ;;  %v3986_v24 = vor.u32 %v3984_v38, %v3983_v14  ;;  %v10534_v45 = vunpack.i.l.bf16 %v9769_v2  ;;  %v4940_v10 = vand.u32 %v5992_v6, %v9145_v27  ;;  %v10824_v49 = vld [vmem:[#allocation16_spill] sm:$0xff] }
 0x25d   : > { %982 = vst [vmem:[#allocation2 + $0x1b0] sm:$0x11] %v981_v63  ;;  %985 = vst [vmem:[#allocation2 + $0x1b8] sm:$0x11] %v984_v15  ;;  %v6652_v48 = vunpack.i.h.bf16 %v9791_v25  ;;  %v6651_v8 = vunpack.i.l.bf16 %v9791_v25  ;;  %v4946_v52 = vand.u32 %v5994_v35, %v9145_v27  ;;  %v10530_v37 = vunpack.i.h.bf16 %v9801_v55 }
 0x25e   : > { %3954 = vst [vmem:[#allocation2 + $0x430] sm:$0x11] %v3953_v21  ;;  %v4026_v5 = vsel %vm7587_vm15, %v3986_v24, %v4025_v50  ;;  %v6646_v1 = vunpack.i.l.bf16 %v9801_v55  ;;  %v10821_v36 = vunpack.i.h.bf16 %v9330_v28  ;;  %5114 = vmatpush1.bf16.msra.mxu0 %v4940_v10  ;;  %v9833_v59 = vcombine.low %v10755_v33, %v10755_v33  ;;  %v10822_v21 = vld [vmem:[#allocation40_spill] sm:$0xff] }
 0x25f   : > { %4027 = vst [vmem:[#allocation2 + $0x420] sm:$0x77] %v4026_v5  ;;  %v1392_v23 = vsel %vm1389_vm8, %v6651_v8, %v6652_v48  ;;  %v1393_v35 = vsel %vm1389_vm8, %v9389_v62, %v6651_v8  ;;  %5175 = vmatpush1.bf16.msra.mxu1 %v4946_v52  ;;  %v9863_v5 = vld [vmem:[#allocation6 + $0x14] ss:$8 sps:$4 sm:$0xff]  }
 0x260   : > { %v1031_v6 = vsel %vm1028_vm5, %v10821_v36, %v10534_v45  ;;  %v6066_v28 = vpack.c.bf16 %v1393_v35, %v9424_v20  ;;  %v6068_v14 = vpack.c.bf16 %v1392_v23, %v1393_v35  ;;  %v3628_v38 = vsel %vm3623_vm12, %v6646_v1, %v10530_v37  ;;  %5703 = vst.sshfl [vmem:[#allocation2 + $0x68] sm:$0xf0 pattern:$0x76325410] %v9833_v59  ;;  %v9876_v35 = vpop.permute.xlu1 %6659  ;;  %v2224_v45 = vld [vmem:[#allocation2 + $0x2b0] sm:$0x77] }
 0x261   : > { %v6049_v42 = vpack.c.bf16 %v1031_v6, %v9735_v57  ;;  %v3629_v33 = vsel %vm3623_vm12, %v6642_v12, %v6646_v1  ;;  %5720 = vst.sshfl [vmem:[#allocation2 + $0xf0] sm:$0xf0 pattern:$0x76325410] %v9833_v59  ;;  %v9852_v20 = vcombine.high %v10767_v4, %v10767_v4  ;;  %5130 = vmatmul.mubr.bf16.vlgmr.msra.gmra.mrb[12].mxu0 %v10822_v21  ;;  %v10823_v1 = vld [vmem:[#allocation42_spill] sm:$0xff]  ;;  %v10532_v51 = vunpack.i.h.bf16 %v9876_v35 }
 0x262   : > { %v1674_v63 = vshrl.u32 %v6066_v28, 16  ;;  %v1677_v15 = vshll.u32 %v6066_v28, 16  ;;  %v1730_v11 = vshrl.u32 %v6068_v14, 16  ;;  %v1733_v10 = vshll.u32 %v6068_v14, 16  ;;  %5191 = vmatmul.mubr.bf16.vlgmr.msra.gmra.mrb[12].mxu1 %v10822_v21  ;;  %6011 = vmatprep.mubr.msk.bf16.mxu0 %vm4913_vm10, %v9863_v5 }
 0x263   : > { %v1224_v57 = vshrl.u32 %v6049_v42, 16  ;;  %v1227_v47 = vshll.u32 %v6049_v42, 16  ;;  %v959_v24 = vld [vmem:[#allocation2 + $0x178] sm:$0xcc]  ;;  %v9856_v12 = vpack.c.bf16 %v3629_v33, %v9760_v13  ;;  %v9858_v8 = vpack.c.bf16 %v3628_v38, %v3629_v33  ;;  %6014 = vmatprep.mubr.msk.bf16.mxu1 %vm4913_vm10, %v9863_v5  ;;  %v1300_v42 = vld [vmem:[#allocation2 + $0x1f8] sm:$0x11] }
 0x264   : > { %v1191_v50 = vld [vmem:[#allocation2 + $0x1b0] sm:$0x77]  ;;  %5711 = vst.sshfl [vmem:[#allocation2 + $0xa8] sm:$0xf pattern:$0x76325410] %v9852_v20  ;;  %v960_v52 = vsel %vm7503_vm6, %v931_v61, %v959_v24  ;;  %v398_v37 = vrot.slane %v9833_v59, %v10824_v49 }
 0x265   : > { %5726 = vst.sshfl [vmem:[#allocation2 + $0x120] sm:$0xf pattern:$0x76325410] %v9852_v20  ;;  %v1192_v13 = vsel %vm7587_vm15, %v10823_v1, %v1191_v50  ;;  %v1194_v36 = vld [vmem:[#allocation2 + $0x1b8] sm:$0x77] }
 0x266   : > { %v9872_v6 = vrot.slane %v1224_v57, 5  ;;  %v9874_v23 = vrot.slane %v1227_v47, 6  ;;  %961 = vst [vmem:[#allocation2 + $0x178] sm:$0xcc] %v960_v52  ;;  %1193 = vst [vmem:[#allocation2 + $0x1b0] sm:$0x77] %v1192_v13  ;;  %v1195_v61 = vsel %vm7587_vm15, %v9469_v39, %v1194_v36 }
 0x267   : > { %v1308_v28 = vrot.slane %v1224_v57, 7  ;;  %v1676_v14 = vrot.slane %v1674_v63, 7  ;;  %v1732_v38 = vrot.slane %v1730_v11, 5  ;;  %1196 = vst [vmem:[#allocation2 + $0x1b8] sm:$0x77] %v1195_v61  ;;  %v1735_v50 = vrot.slane %v1733_v10, 6 }
 0x268   : > { %v1238_v33 = vrot.slane %v9872_v6, 4  ;;  %v1796_v24 = vld [vmem:[#allocation2 + $0x270] sm:$0x11]  ;;  %v3879_v1 = vshrl.u32 %v9856_v12, 16  ;;  %v1709_v63 = vld [vmem:[#allocation2 + $0x238] sm:$0x77]  ;;  %v1230_v61 = vor.u32 %v9874_v23, %v9872_v6 }
 0x269   : > { %v1309_v52 = vor.u32 %v1308_v28, %v1227_v47  ;;  %v1679_v13 = vor.u32 %v1677_v15, %v1676_v14  ;;  %v1746_v29 = vrot.slane %v1732_v38, 4  ;;  %v1337_v57 = vld [vmem:[#allocation2 + $0x1f0] sm:$0x77]  ;;  %v1736_v11 = vor.u32 %v1735_v50, %v1732_v38  ;;  %v3955_v28 = vld [vmem:[#allocation2 + $0x438] sm:$0x11]  ;;  %v6655_v14 = vpop.permute.xlu0 %6654 }
 0x26a   : > { %v1301_v39 = vsel %vm7515_vm7, %v1238_v33, %v1300_v42  ;;  %v9890_v36 = vrot.slane %v3879_v1, 5  ;;  %v3988_v10 = vshrl.u32 %v9858_v8, 16  ;;  %v1772_v15 = vld [vmem:[#allocation2 + $0x230] sm:$0xcc]  ;;  %v3991_v33 = vshll.u32 %v9858_v8, 16 }
 0x26b   : > { %1302 = vst [vmem:[#allocation2 + $0x1f8] sm:$0x11] %v1301_v39  ;;  %v1338_v59 = vsel %vm7587_vm15, %v1309_v52, %v1337_v57  ;;  %v1710_v47 = vsel %vm7587_vm15, %v1679_v13, %v1709_v63  ;;  %v1797_v42 = vsel %vm7515_vm7, %v1746_v29, %v1796_v24  ;;  %v1773_v38 = vsel %vm7503_vm6, %v1736_v11, %v1772_v15  ;;  %v9905_v50 = vld [vmem:[#allocation6 + $0x10] ss:$8 sps:$4 sm:$0xff]  }
 0x26c   : > { %1339 = vst [vmem:[#allocation2 + $0x1f0] sm:$0x77] %v1338_v59  ;;  %1711 = vst [vmem:[#allocation2 + $0x238] sm:$0x77] %v1710_v47  ;;  %v3893_v6 = vrot.slane %v9890_v36, 4  ;;  %v3990_v23 = vrot.slane %v3988_v10, 7  ;;  %5140 = vmatmul.mubr.bf16.gmra.mrb[16].mxu0 %v9905_v50  ;;  %v325_v1 = vrot.slane %v9852_v20, %v10824_v49  ;;  %v6661_v52 = vunpack.i.l.bf16 %v9876_v35  ;;  %5201 = vmatmul.mubr.bf16.gmra.mrb[16].mxu1 %v9905_v50 }
 0x26d   : > { %1798 = vst [vmem:[#allocation2 + $0x270] sm:$0x11] %v1797_v42  ;;  %1774 = vst [vmem:[#allocation2 + $0x230] sm:$0xcc] %v1773_v38  ;;  %v410_v24 = vrot.slane %v398_v37, 4  ;;  %6012 = vmatprep.mubr.msk.bf16.mxu0 %vm4913_vm10, %v9670_v9  ;;  %v6657_v57 = vunpack.i.h.bf16 %v6655_v14  ;;  %v6656_v63 = vunpack.i.l.bf16 %v6655_v14  ;;  %6015 = vmatprep.mubr.msk.bf16.mxu1 %vm4913_vm10, %v9670_v9  ;;  %v10825_v37 = vld [vmem:[#allocation45_spill] sm:$0xff]  ;;  %v9930_v38 = vpop.permute.xlu1 %6664  ;;  %v1027_v7 = vpop.permute.xlu0 %1026 }
 0x26e   : > { %v1273_v13 = vld [vmem:[#allocation2 + $0x1b0] sm:$0xcc]  ;;  %v3956_v8 = vsel %vm7515_vm7, %v3893_v6, %v3955_v28  ;;  %v3993_v39 = vor.u32 %v3991_v33, %v3990_v23  ;;  %v10826_v20 = vor.u32 %v9471_v43, %v10825_v37  ;;  %v1276_v10 = vld [vmem:[#allocation2 + $0x1b8] sm:$0xcc]  ;;  %v4028_v59 = vld [vmem:[#allocation2 + $0x428] sm:$0x77]  ;;  %v1853_v23 = vsel %vm1850_vm3, %v6661_v52, %v10532_v51 }
 0x26f   : > { %3957 = vst [vmem:[#allocation2 + $0x438] sm:$0x11] %v3956_v8  ;;  %v10827_v47 = vld [vmem:[#allocation19_spill] sm:$0xff]  ;;  %v9926_v42 = vrot.slane %v325_v1, 4  ;;  %v10829_v28 = vld [vmem:[#allocation20_spill] sm:$0xff]  ;;  %v1277_v43 = vsel %vm7503_vm6, %v1230_v61, %v1276_v10  ;;  %v1854_v33 = vsel %vm1850_vm3, %v9579_v60, %v6661_v52  ;;  %v10831_v61 = vld [vmem:[#allocation41_spill] sm:$0xff]  ;;  %v1391_v60 = vsel %vm1389_vm8, %v6652_v48, %v6656_v63 }
 0x270   : > { %v1274_v11 = vsel %vm7503_vm6, %v10826_v20, %v1273_v13  ;;  %v416_v15 = vsel %vm10828_vm1, %v10827_v47, %v410_v24  ;;  %v417_v14 = vsel %vm10830_vm13, %v410_v24, %v10829_v28  ;;  %v4029_v6 = vsel %vm7587_vm15, %v3993_v39, %v4028_v59  ;;  %v9943_v24 = vld [vmem:[#allocation2 + $0x160] sm:$0xff]  ;;  %1278 = vst [vmem:[#allocation2 + $0x1b8] sm:$0xcc] %v1277_v43 }
 0x271   : > { %1275 = vst [vmem:[#allocation2 + $0x1b0] sm:$0xcc] %v1274_v11  ;;  %432 = vst [vmem:[#allocation2 + $0x20] sm:$0xcc] %v416_v15  ;;  %v349_v1 = vsel %vm10757_vm0, %v10831_v61, %v9926_v42  ;;  %v6085_v13 = vpack.c.bf16 %v1854_v33, %v9586_v53  ;;  %v6087_v8 = vpack.c.bf16 %v1853_v23, %v1854_v33  ;;  %v10832_v52 = vld [vmem:[#allocation14_spill] sm:$0xff]  ;;  %v10533_v20 = vunpack.i.h.bf16 %v9930_v38 }
 0x272   : > { %501 = vst [vmem:[#allocation2 + $0xa8] sm:$0xcc] %v416_v15  ;;  %433 = vst [vmem:[#allocation2 + $0x28] sm:$0xcc] %v417_v14  ;;  %v1390_v39 = vsel %vm1389_vm8, %v6656_v63, %v6657_v57  ;;  %v332_v37 = vrot.slane %v10832_v52, %v10824_v49  ;;  %v6666_v11 = vunpack.i.l.bf16 %v9930_v38  ;;  %v9959_v53 = vld [vmem:[#allocation2 + $0x120] sm:$0xff]  ;;  %v10834_v63 = vld [vmem:[#allocation31_spill] sm:$0xff] }
 0x273   : > { %502 = vst [vmem:[#allocation2 + $0xb0] sm:$0xcc] %v417_v14  ;;  %4030 = vst [vmem:[#allocation2 + $0x428] sm:$0x77] %v4029_v6  ;;  %v1580_v10 = vld [vmem:[#allocation2 + $0x1f0] sm:$0xcc]  ;;  %v6069_v15 = vpack.c.bf16 %v1390_v39, %v1391_v60 }
 0x274   : > { %452 = vst [vmem:[#allocation2 + $0x68] sm:$0x33] %v349_v1  ;;  %365 = vst [vmem:[#allocation2 + $0x30] sm:$0x33] %v349_v1  ;;  %v2017_v59 = vld [vmem:[#allocation2 + $0x270] sm:$0x77]  ;;  %5150 = vmatmul.mubr.bf16.gmra.mrb[20].mxu0 %v9687_v22  ;;  %5211 = vmatmul.mubr.bf16.gmra.mrb[20].mxu1 %v9687_v22  ;;  %v10000_v22 = vpop.permute.xlu1 %6674 }
 0x275   : > { %519 = vst [vmem:[#allocation2 + $0xe0] sm:$0x33] %v349_v1  ;;  %v2094_v57 = vshrl.u32 %v6085_v13, 16  ;;  %v2097_v47 = vshll.u32 %v6085_v13, 16  ;;  %v10833_v14 = vld [vmem:[#allocation56_spill] sm:$0xff]  ;;  %v2018_v43 = vsel %vm7587_vm15, %v10834_v63, %v2017_v59  ;;  %v2190_v6 = vshrl.u32 %v6087_v8, 16  ;;  %6016 = vmatprep.mubr.msk.bf16.mxu0 %vm4913_vm10, %v9723_v26  ;;  %6019 = vmatprep.mubr.msk.bf16.mxu1 %vm4913_vm10, %v9723_v26  ;;  %vm10835_vm8 = vmmov %vm10757_vm0 }
 0x276   : > { %v1581_v48 = vsel %vm7503_vm6, %v10833_v14, %v1580_v10  ;;  %v2193_v23 = vshll.u32 %v6087_v8, 16  ;;  %2019 = vst [vmem:[#allocation2 + $0x270] sm:$0x77] %v2018_v43  ;;  %v4085_v33 = vld [vmem:[#allocation2 + $0x60] sm:$0xff]  ;;  %v1738_v39 = vshrl.u32 %v6069_v15, 16  ;;  %v1741_v60 = vshll.u32 %v6069_v15, 16 }
 0x277   : > { %1582 = vst [vmem:[#allocation2 + $0x1f0] sm:$0xcc] %v1581_v48  ;;  %v9970_v1 = vrot.slane %v2094_v57, 5  ;;  %v9972_v13 = vrot.slane %v2097_v47, 6  ;;  %v2170_v52 = vld [vmem:[#allocation2 + $0x2b8] sm:$0x11]  ;;  %v2285_v8 = vsel %vm2282_vm4, %v6666_v11, %v10533_v20  ;;  %v2286_v57 = vsel %vm2282_vm4, %v9499_v56, %v6666_v11 }
 0x278   : > { %v2192_v10 = vrot.slane %v2190_v6, 7  ;;  %v9977_v59 = vrot.slane %v332_v37, 4  ;;  %v4077_v47 = vld [vmem:[#allocation2 + $0x20] sm:$0xff]  ;;  %v1740_v48 = vrot.slane %v1738_v39, 5  ;;  %v1743_v63 = vrot.slane %v1741_v60, 6  ;;  %v9994_v26 = vld [vmem:[#allocation2 + $0x168] sm:$0xff] }
 0x279   : > { %v4078_v15 = vld [vmem:[#allocation2 + $0x28] sm:$0xff]  ;;  %v2108_v37 = vrot.slane %v9970_v1, 4  ;;  %v4093_v43 = vld [vmem:[#allocation2 + $0xa0] sm:$0xff]  ;;  %v5868_v6 = vcombine.low %v4077_v47, %v4085_v33  ;;  %v5869_v29 = vcombine.high %v4077_v47, %v4085_v33  ;;  %v1799_v20 = vld [vmem:[#allocation2 + $0x278] sm:$0x11] }
 0x27a   : > { %v2195_v51 = vor.u32 %v2193_v23, %v2192_v10  ;;  %v1775_v25 = vld [vmem:[#allocation2 + $0x238] sm:$0xcc]  ;;  %v350_v56 = vsel %vm10835_vm8, %v9926_v42, %v9977_v59  ;;  %v1744_v62 = vor.u32 %v1743_v63, %v1740_v48  ;;  %v1747_v39 = vrot.slane %v1740_v48, 4 }
 0x27b   : > { %v4086_v11 = vld [vmem:[#allocation2 + $0x68] sm:$0xff]  ;;  %v2171_v14 = vsel %vm7515_vm7, %v2108_v37, %v2170_v52  ;;  %520 = vst [vmem:[#allocation2 + $0xe8] sm:$0x33] %v350_v56  ;;  %366 = vst [vmem:[#allocation2 + $0x38] sm:$0x33] %v350_v56  ;;  %v6099_v23 = vpack.c.bf16 %v2285_v8, %v2286_v57  ;;  %5219 = vmatprep.subr.bf16.mxu0 %v5869_v29  ;;  %v10836_v48 = vor.u32 %v9632_v17, %v9623_v41 }
 0x27c   : > { %v4101_v60 = vld [vmem:[#allocation2 + $0xe0] sm:$0xff]  ;;  %453 = vst [vmem:[#allocation2 + $0x70] sm:$0x33] %v350_v56  ;;  %v5870_v33 = vcombine.low %v4078_v15, %v4086_v11  ;;  %v5871_v10 = vcombine.high %v4078_v15, %v4086_v11  ;;  %2172 = vst [vmem:[#allocation2 + $0x2b8] sm:$0x11] %v2171_v14  ;;  %v2225_v42 = vsel %vm7587_vm15, %v2195_v51, %v2224_v45  ;;  %5220 = vmatpush1.bf16.msra.mxu0 %v5868_v6  ;;  %v10006_v57 = vld [vmem:[#allocation2 + $0x128] sm:$0xff] }
 0x27d   : > { %v5884_v47 = vcombine.low %v4093_v43, %v4101_v60  ;;  %2226 = vst [vmem:[#allocation2 + $0x2b0] sm:$0x77] %v2225_v42  ;;  %v1776_v52 = vsel %vm7503_vm6, %v1744_v62, %v1775_v25  ;;  %v1800_v37 = vsel %vm7515_vm7, %v1747_v39, %v1799_v20  ;;  %v5885_v8 = vcombine.high %v4093_v43, %v4101_v60  ;;  %v2143_v15 = vld [vmem:[#allocation2 + $0x270] sm:$0xcc]  ;;  %v10014_v25 = vld [vmem:[#allocation2 + $0x1a0] sm:$0xff]  ;;  %v10016_v20 = vld [vmem:[#allocation2 + $0x1e8] sm:$0xff] }
 0x27e   : > { %v2592_v29 = vshrl.u32 %v6099_v23, 16  ;;  %5280 = vmatprep.subr.bf16.mxu1 %v5871_v10  ;;  %1777 = vst [vmem:[#allocation2 + $0x238] sm:$0xcc] %v1776_v52  ;;  %1801 = vst [vmem:[#allocation2 + $0x278] sm:$0x11] %v1800_v37  ;;  %v2595_v51 = vshll.u32 %v6099_v23, 16  ;;  %v5901_v45 = vcombine.high %v9959_v53, %v9943_v24  ;;  %v5902_v14 = vcombine.low %v10006_v57, %v9994_v26 }
 0x27f   : > { %v5903_v62 = vcombine.high %v10006_v57, %v9994_v26  ;;  %v2144_v63 = vsel %vm7503_vm6, %v10836_v48, %v2143_v15  ;;  %5281 = vmatpush1.bf16.msra.mxu1 %v5870_v33  ;;  %5221 = vmatprep.subr.bf16.mxu0 %v5885_v8  ;;  %v2661_v43 = vld [vmem:[#allocation2 + $0x330] sm:$0x11]  ;;  %v10837_v56 = vunpack.i.h.bf16 %v9769_v2  ;;  %v10839_v60 = vunpack.i.l.bf16 %v9769_v2  ;;  %v4094_v41 = vld [vmem:[#allocation2 + $0xa8] sm:$0xff]  ;;  %v4133_v52 = vld [vmem:[#allocation2 + $0x1e0] sm:$0xff] }
 0x280   : > { %v2594_v6 = vrot.slane %v2592_v29, 5  ;;  %2145 = vst [vmem:[#allocation2 + $0x270] sm:$0xcc] %v2144_v63  ;;  %v2597_v17 = vrot.slane %v2595_v51, 6  ;;  %v10537_v33 = vunpack.i.h.bf16 %v10000_v22  ;;  %v6676_v42 = vunpack.i.l.bf16 %v10000_v22  ;;  %v10035_v37 = vld [vmem:[#allocation2 + $0x1a8] sm:$0xff]  ;;  %5222 = vmatpush1.bf16.msra.mxu0 %v5884_v47  ;;  %v6680_v47 = vpop.permute.xlu1 %6679  ;;  %v4157_v57 = vld [vmem:[#allocation2 + $0x2a0] sm:$0xff] }
 0x281   : > { %v1029_v11 = vsel %vm1028_vm5, %v10837_v56, %v1027_v7  ;;  %v10838_v39 = vmov %v10837_v56  ;;  %v5916_v8 = vcombine.low %v10014_v25, %v4133_v52  ;;  %v5917_v2 = vcombine.high %v10014_v25, %v4133_v52  ;;  %5223 = vmatprep.subr.bf16.mxu0 %v5901_v45 }
 0x282   : > { %v1030_v23 = vsel %vm1028_vm5, %v10839_v60, %v10838_v39  ;;  %v2609_v7 = vrot.slane %v2594_v6, 4  ;;  %v4102_v15 = vld [vmem:[#allocation2 + $0xe8] sm:$0xff]  ;;  %v2598_v48 = vor.u32 %v2597_v17, %v2594_v6  ;;  %v3120_v56 = vsel %vm3118_vm11, %v6676_v42, %v10537_v33  ;;  %v10054_v33 = vld [vmem:[#allocation2 + $0x260] sm:$0xff]  ;;  %vm10862_vm5 = vmmov %vm10757_vm0 }
 0x283   : > { %v6050_v10 = vpack.c.bf16 %v1029_v11, %v1030_v23  ;;  %v6670_v11 = vpop.permute.xlu0 %6669  ;;  %v5886_v39 = vcombine.low %v4094_v41, %v4102_v15  ;;  %v5887_v60 = vcombine.high %v4094_v41, %v4102_v15  ;;  %v2637_v23 = vld [vmem:[#allocation2 + $0x2f0] sm:$0xcc]  ;;  %v3121_v6 = vsel %vm3118_vm11, %v9540_v0, %v6676_v42  ;;  %v10840_v41 = vld [vmem:[#allocation38_spill] sm:$0xff]  ;;  %v1340_v0 = vld [vmem:[#allocation2 + $0x1f8] sm:$0x77] }
 0x284   : > { %v2662_v25 = vsel %vm7515_vm7, %v2609_v7, %v2661_v43  ;;  %v2477_v45 = vld [vmem:[#allocation2 + $0x2b0] sm:$0xcc]  ;;  %v2638_v17 = vsel %vm7503_vm6, %v2598_v48, %v2637_v23  ;;  %v6132_v52 = vpack.c.bf16 %v3120_v56, %v3121_v6  ;;  %v5919_v29 = vcombine.high %v10035_v37, %v10016_v20 }
 0x285   : > { %v1311_v51 = vshrl.u32 %v6050_v10, 16  ;;  %v1314_v63 = vshll.u32 %v6050_v10, 16  ;;  %2663 = vst [vmem:[#allocation2 + $0x330] sm:$0x11] %v2662_v25  ;;  %v2478_v43 = vsel %vm7503_vm6, %v10840_v41, %v2477_v45  ;;  %v2020_v7 = vld [vmem:[#allocation2 + $0x278] sm:$0x77]  ;;  %5282 = vmatprep.subr.bf16.mxu1 %v5887_v60  ;;  %v10841_v42 = vcombine.low %v9959_v53, %v9943_v24 }
 0x286   : > { %2639 = vst [vmem:[#allocation2 + $0x2f0] sm:$0xcc] %v2638_v17  ;;  %v6672_v15 = vunpack.i.h.bf16 %v6670_v11  ;;  %v6671_v48 = vunpack.i.l.bf16 %v6670_v11  ;;  %2479 = vst [vmem:[#allocation2 + $0x2b0] sm:$0xcc] %v2478_v43  ;;  %v2021_v56 = vsel %vm7587_vm15, %v9627_v46, %v2020_v7  ;;  %5283 = vmatpush1.bf16.msra.mxu1 %v5886_v39  ;;  %v3493_v25 = vshrl.u32 %v6132_v52, 16  ;;  %v4141_v60 = vld [vmem:[#allocation2 + $0x220] sm:$0xff] }
 0x287   : > { %v1313_v10 = vrot.slane %v1311_v51, 7  ;;  %5224 = vmatpush1.bf16.msra.mxu0 %v10841_v42  ;;  %v6682_v51 = vunpack.i.h.bf16 %v6680_v47  ;;  %v3496_v6 = vshll.u32 %v6132_v52, 16  ;;  %v10065_v45 = vld [vmem:[#allocation2 + $0x268] sm:$0xff]  ;;  %2022 = vst [vmem:[#allocation2 + $0x278] sm:$0x77] %v2021_v56  ;;  %5284 = vmatprep.subr.bf16.mxu1 %v5903_v62  ;;  %v10842_v53 = vunpack.i.h.bf16 %v9930_v38  ;;  %v3117_v62 = vpop.permute.xlu0 %3116  ;;  %v10090_v56 = vpop.permute.xlu1 %6689 }
 0x288   : > { %5225 = vmatprep.subr.bf16.mxu0 %v5917_v2  ;;  %v2283_v24 = vsel %vm2282_vm4, %v6671_v48, %v6672_v15  ;;  %v6681_v17 = vunpack.i.l.bf16 %v6680_v47  ;;  %v5932_v46 = vcombine.low %v4141_v60, %v10054_v33  ;;  %v3495_v2 = vrot.slane %v3493_v25, 5  ;;  %v10076_v52 = vld [vmem:[#allocation2 + $0x228] sm:$0xff]  ;;  %v3565_v41 = vld [vmem:[#allocation2 + $0x3f0] sm:$0x11] }
 0x289   : > { %v1316_v23 = vor.u32 %v1314_v63, %v1313_v10  ;;  %v2284_v11 = vsel %vm2282_vm4, %v10842_v53, %v6671_v48  ;;  %v3498_v39 = vrot.slane %v3496_v6, 6  ;;  %v10843_v43 = vunpack.i.h.bf16 %v9876_v35  ;;  %v3541_v35 = vld [vmem:[#allocation2 + $0x3b0] sm:$0xcc] }
 0x28a   : > { %v6100_v10 = vpack.c.bf16 %v2283_v24, %v2284_v11  ;;  %v1851_v38 = vsel %vm1850_vm3, %v6681_v17, %v6682_v51  ;;  %v5933_v7 = vcombine.high %v4141_v60, %v10054_v33  ;;  %v3511_v15 = vrot.slane %v3495_v2, 4  ;;  %5285 = vmatpush1.bf16.msra.mxu1 %v5902_v14  ;;  %v10845_v14 = vld [vmem:[#allocation32_spill] sm:$0xff] }
 0x28b   : > { %v1341_v63 = vsel %vm7587_vm15, %v1316_v23, %v1340_v0  ;;  %5226 = vmatpush1.bf16.msra.mxu0 %v5916_v8  ;;  %v1852_v47 = vsel %vm1850_vm3, %v10843_v43, %v6681_v17  ;;  %v5934_v0 = vcombine.low %v10076_v52, %v10065_v45  ;;  %v3499_v42 = vor.u32 %v3498_v39, %v3495_v2  ;;  %v10846_v2 = vld [vmem:[#allocation34_spill] sm:$0xff] }
 0x28c   : > { %1342 = vst [vmem:[#allocation2 + $0x1f8] sm:$0x77] %v1341_v63  ;;  %v2600_v8 = vshrl.u32 %v6100_v10, 16  ;;  %v2603_v48 = vshll.u32 %v6100_v10, 16  ;;  %v2888_v51 = vld [vmem:[#allocation2 + $0x330] sm:$0x77]  ;;  %5286 = vmatprep.subr.bf16.mxu1 %v5919_v29  ;;  %v6088_v23 = vpack.c.bf16 %v1851_v38, %v1852_v47  ;;  %5227 = vmatprep.subr.bf16.mxu0 %v5933_v7  ;;  %v5935_v33 = vcombine.high %v10076_v52, %v10065_v45 }
 0x28d   : > { %v10844_v25 = vunpack.i.h.bf16 %v10000_v22  ;;  %v6692_v26 = vunpack.i.h.bf16 %v10090_v56  ;;  %v2889_v60 = vsel %vm7587_vm15, %v10845_v14, %v2888_v51  ;;  %v3542_v29 = vsel %vm7503_vm6, %v3499_v42, %v3541_v35  ;;  %v2664_v22 = vld [vmem:[#allocation2 + $0x338] sm:$0x11]  ;;  %v4165_v38 = vld [vmem:[#allocation2 + $0x2e0] sm:$0xff]  ;;  %v2640_v35 = vld [vmem:[#allocation2 + $0x2f8] sm:$0xcc] }
 0x28e   : > { %v3566_v24 = vsel %vm7515_vm7, %v3511_v15, %v3565_v41  ;;  %v2602_v53 = vrot.slane %v2600_v8, 5  ;;  %2890 = vst [vmem:[#allocation2 + $0x330] sm:$0x77] %v2889_v60  ;;  %3543 = vst [vmem:[#allocation2 + $0x3b0] sm:$0xcc] %v3542_v29  ;;  %v2605_v11 = vrot.slane %v2603_v48, 6  ;;  %v10847_v39 = vunpack.i.l.bf16 %v10846_v2  ;;  %v6685_v48 = vpop.permute.xlu0 %6684 }
 0x28f   : > { %v3119_v6 = vsel %vm3118_vm11, %v10844_v25, %v3117_v62  ;;  %3567 = vst [vmem:[#allocation2 + $0x3f0] sm:$0x11] %v3566_v24  ;;  %v2197_v17 = vshrl.u32 %v6088_v23, 16  ;;  %v2200_v63 = vshll.u32 %v6088_v23, 16  ;;  %5228 = vmatpush1.bf16.msra.mxu0 %v5932_v46  ;;  %v2146_v43 = vld [vmem:[#allocation2 + $0x278] sm:$0xcc]  ;;  %v10848_v41 = vcombine.low %v10035_v37, %v10016_v20 }
 0x290   : > { %v3144_v10 = vsel %vm3118_vm11, %v3117_v62, %v10847_v39  ;;  %v2610_v47 = vrot.slane %v2602_v53, 4  ;;  %v6691_v42 = vunpack.i.l.bf16 %v10090_v56  ;;  %v5948_v15 = vcombine.low %v4157_v57, %v4165_v38  ;;  %v10114_v8 = vld [vmem:[#allocation2 + $0x2a8] sm:$0xff]  ;;  %v3568_v2 = vld [vmem:[#allocation2 + $0x3f8] sm:$0x11] }
 0x291   : > { %5287 = vmatpush1.bf16.msra.mxu1 %v10848_v41  ;;  %v6133_v7 = vpack.c.bf16 %v3144_v10, %v3119_v6  ;;  %v10849_v51 = vor.u32 %v9972_v13, %v9970_v1  ;;  %v2606_v62 = vor.u32 %v2605_v11, %v2602_v53  ;;  %v2199_v23 = vrot.slane %v2197_v17, 7  ;;  %v4166_v60 = vld [vmem:[#allocation2 + $0x2e8] sm:$0xff]  ;;  %v10125_v1 = vpop.permute.xlu1 %3619  ;;  %v4181_v13 = vld [vmem:[#allocation2 + $0x360] sm:$0xff]  ;;  %v2227_v53 = vld [vmem:[#allocation2 + $0x2b8] sm:$0x77] }
 0x292   : > { %5288 = vmatprep.subr.bf16.mxu1 %v5935_v33  ;;  %v5949_v25 = vcombine.high %v4157_v57, %v4165_v38  ;;  %v2665_v37 = vsel %vm7515_vm7, %v2610_v47, %v2664_v22  ;;  %v2718_v14 = vsel %vm2717_vm9, %v6691_v42, %v6692_v26  ;;  %v5950_v24 = vcombine.low %v10114_v8, %v4166_v60  ;;  %v4173_v17 = vld [vmem:[#allocation2 + $0x320] sm:$0xff]  ;;  %v10850_v10 = vld [vmem:[#allocation51_spill] sm:$0xff] }
 0x293   : > { %v2147_v46 = vsel %vm7503_vm6, %v10849_v51, %v2146_v43  ;;  %v1583_v20 = vld [vmem:[#allocation2 + $0x1f8] sm:$0xcc]  ;;  %v3501_v56 = vshrl.u32 %v6133_v7, 16  ;;  %v3504_v6 = vshll.u32 %v6133_v7, 16  ;;  %v2641_v33 = vsel %vm7503_vm6, %v2606_v62, %v2640_v35  ;;  %2666 = vst [vmem:[#allocation2 + $0x338] sm:$0x11] %v2665_v37  ;;  %v6695_v51 = vpop.permute.xlu0 %6694 }
 0x294   : > { %2148 = vst [vmem:[#allocation2 + $0x278] sm:$0xcc] %v2147_v46  ;;  %v1584_v29 = vsel %vm7503_vm6, %v9497_v31, %v1583_v20  ;;  %v2202_v57 = vor.u32 %v2200_v63, %v2199_v23  ;;  %5229 = vmatprep.subr.bf16.mxu0 %v5949_v25  ;;  %2642 = vst [vmem:[#allocation2 + $0x2f8] sm:$0xcc] %v2641_v33  ;;  %v5951_v11 = vcombine.high %v10114_v8, %v4166_v60  ;;  %v4182_v8 = vld [vmem:[#allocation2 + $0x368] sm:$0xff]  ;;  %v10853_v62 = vld [vmem:[#allocation53_spill] sm:$0xff] }
 0x295   : > { %1585 = vst [vmem:[#allocation2 + $0x1f8] sm:$0xcc] %v1584_v29  ;;  %v3503_v26 = vrot.slane %v3501_v56, 5  ;;  %v3506_v22 = vrot.slane %v3504_v6, 6  ;;  %5289 = vmatpush1.bf16.msra.mxu1 %v5934_v0  ;;  %v6687_v31 = vunpack.i.h.bf16 %v6685_v48  ;;  %5230 = vmatpush1.bf16.msra.mxu0 %v5948_v15  ;;  %v6686_v39 = vunpack.i.l.bf16 %v6685_v48  ;;  %v2980_v41 = vld [vmem:[#allocation2 + $0x330] sm:$0xcc] }
 0x296   : > { %v2228_v63 = vsel %vm7587_vm15, %v2202_v57, %v2227_v53  ;;  %v10851_v38 = vunpack.i.l.bf16 %v10850_v10  ;;  %v5964_v47 = vcombine.low %v4173_v17, %v4181_v13  ;;  %v3798_v45 = vld [vmem:[#allocation2 + $0x3f0] sm:$0x77]  ;;  %5290 = vmatprep.subr.bf16.mxu1 %v5951_v11  ;;  %v5965_v15 = vcombine.high %v4173_v17, %v4181_v13  ;;  %v3544_v23 = vld [vmem:[#allocation2 + $0x3b8] sm:$0xcc]  ;;  %v4174_v6 = vld [vmem:[#allocation2 + $0x328] sm:$0xff] }
 0x297   : > { %2229 = vst [vmem:[#allocation2 + $0x2b8] sm:$0x77] %v2228_v63  ;;  %v3507_v52 = vor.u32 %v3506_v22, %v3503_v26  ;;  %v3512_v0 = vrot.slane %v3503_v26, 4  ;;  %v2719_v7 = vsel %vm2717_vm9, %v6687_v31, %v6691_v42  ;;  %v10852_v48 = vor.u32 %v9678_v16, %v9676_v34  ;;  %v4197_v33 = vld [vmem:[#allocation2 + $0x3e0] sm:$0xff]  ;;  %v4198_v57 = vld [vmem:[#allocation2 + $0x3e8] sm:$0xff] }
 0x298   : > { %v3624_v43 = vsel %vm3623_vm12, %v10125_v1, %v10851_v38  ;;  %v3799_v35 = vsel %vm7587_vm15, %v10853_v62, %v3798_v45  ;;  %v2720_v25 = vsel %vm2717_vm9, %v6686_v39, %v6687_v31  ;;  %v10854_v20 = vunpack.i.h.bf16 %v9625_v40  ;;  %5231 = vmatprep.subr.bf16.mxu0 %v5965_v15  ;;  %v10855_v31 = vld [vmem:[#allocation36_spill] sm:$0xff]  ;;  %v4190_v45 = vld [vmem:[#allocation2 + $0x3a8] sm:$0xff]  ;;  %v3063_v62 = vld [vmem:[#allocation2 + $0x378] sm:$0x77] }
 0x299   : > { %v2981_v46 = vsel %vm7503_vm6, %v10852_v48, %v2980_v41  ;;  %3800 = vst [vmem:[#allocation2 + $0x3f0] sm:$0x77] %v3799_v35  ;;  %v3545_v34 = vsel %vm7503_vm6, %v3507_v52, %v3544_v23  ;;  %v3569_v16 = vsel %vm7515_vm7, %v3512_v0, %v3568_v2  ;;  %v6112_v56 = vpack.c.bf16 %v2718_v14, %v2719_v7  ;;  %v4189_v41 = vld [vmem:[#allocation2 + $0x3a0] sm:$0xff]  ;;  %v3060_v7 = vld [vmem:[#allocation2 + $0x370] sm:$0x77]  ;;  %vm10864_vm7 = vmmov %vm10757_vm0 }
 0x29a   : > { %v2721_v42 = vsel %vm2717_vm9, %v10854_v20, %v6686_v39  ;;  %2982 = vst [vmem:[#allocation2 + $0x330] sm:$0xcc] %v2981_v46  ;;  %3546 = vst [vmem:[#allocation2 + $0x3b8] sm:$0xcc] %v3545_v34  ;;  %5291 = vmatpush1.bf16.msra.mxu1 %v5950_v24  ;;  %v5966_v60 = vcombine.low %v4174_v6, %v4182_v8  ;;  %v5967_v40 = vcombine.high %v4174_v6, %v4182_v8  ;;  %v2891_v53 = vld [vmem:[#allocation2 + $0x338] sm:$0x77] }
 0x29b   : > { %v6111_v37 = vpack.c.bf16 %v2720_v25, %v2721_v42  ;;  %3570 = vst [vmem:[#allocation2 + $0x3f8] sm:$0x11] %v3569_v16  ;;  %v6697_v13 = vunpack.i.h.bf16 %v6695_v51  ;;  %v6696_v29 = vunpack.i.l.bf16 %v6695_v51  ;;  %5232 = vmatpush1.bf16.msra.mxu0 %v5964_v47  ;;  %v3032_v44 = vshrl.u32 %v6112_v56, 16  ;;  %v4205_v52 = vld [vmem:[#allocation2 + $0x420] sm:$0x77] }
 0x29c   : > { %v3035_v11 = vshll.u32 %v6112_v56, 16  ;;  %v2892_v14 = vsel %vm7587_vm15, %v10855_v31, %v2891_v53  ;;  %5292 = vmatprep.subr.bf16.mxu1 %v5967_v40  ;;  %v10856_v63 = vunpack.i.h.bf16 %v9801_v55  ;;  %v5981_v15 = vcombine.high %v4189_v41, %v4197_v33  ;;  %v4206_v35 = vld [vmem:[#allocation2 + $0x428] sm:$0x77] }
 0x29d   : > { %v3025_v26 = vshrl.u32 %v6111_v37, 16  ;;  %v3028_v22 = vshll.u32 %v6111_v37, 16  ;;  %v3625_v24 = vsel %vm3623_vm12, %v6697_v13, %v10125_v1  ;;  %v3626_v17 = vsel %vm3623_vm12, %v6696_v29, %v6697_v13  ;;  %2893 = vst [vmem:[#allocation2 + $0x338] sm:$0x77] %v2892_v14  ;;  %v10859_v13 = vld [vmem:[#allocation12_spill] sm:$0xff] }
 0x29e   : > { %v3627_v2 = vsel %vm3623_vm12, %v10856_v63, %v6696_v29  ;;  %v3034_v10 = vrot.slane %v3032_v44, 7  ;;  %v6154_v47 = vpack.c.bf16 %v3624_v43, %v3625_v24  ;;  %v2480_v0 = vld [vmem:[#allocation2 + $0x2b8] sm:$0xcc]  ;;  %v5980_v1 = vcombine.low %v4189_v41, %v4197_v33  ;;  %5293 = vmatpush1.bf16.msra.mxu1 %v5966_v60  ;;  %5233 = vmatprep.subr.bf16.mxu0 %v5981_v15  ;;  %v4031_v14 = vld [vmem:[#allocation2 + $0x430] sm:$0x77] }
 0x29f   : > { %v3027_v39 = vrot.slane %v3025_v26, 7  ;;  %v6153_v38 = vpack.c.bf16 %v3626_v17, %v3627_v2  ;;  %v5982_v8 = vcombine.low %v4190_v45, %v4198_v57  ;;  %v5983_v55 = vcombine.high %v4190_v45, %v4198_v57  ;;  %v10861_v63 = vld [vmem:[#allocation17_spill] sm:$0xff] }
 0x2a0   : > { %v2481_v51 = vsel %vm7503_vm6, %v10857_v19, %v2480_v0  ;;  %v3037_v46 = vor.u32 %v3035_v11, %v3034_v10  ;;  %v3928_v23 = vld [vmem:[#allocation2 + $0x3f0] sm:$0xcc]  ;;  %v4002_v20 = vshrl.u32 %v6154_v47, 16  ;;  %v4005_v42 = vshll.u32 %v6154_v47, 16  ;;  %5234 = vmatpush1.bf16.msra.mxu0 %v5980_v1  ;;  %v4034_v10 = vld [vmem:[#allocation2 + $0x438] sm:$0x77] }
 0x2a1   : > { %v3030_v48 = vor.u32 %v3028_v22, %v3027_v39  ;;  %v3995_v43 = vshrl.u32 %v6153_v38, 16  ;;  %2482 = vst [vmem:[#allocation2 + $0x2b8] sm:$0xcc] %v2481_v51  ;;  %v3998_v25 = vshll.u32 %v6153_v38, 16  ;;  %5294 = vmatprep.subr.bf16.mxu1 %v5983_v55  ;;  %v5996_v34 = vcombine.low %v4205_v52, %v4205_v52  ;;  %v10867_v15 = vld [vmem:[#allocation37_spill] sm:$0xff]  ;;  %v4095_v55 = vld [vmem:[#allocation2 + $0xb0] sm:$0xff] }
 0x2a2   : > { %v10858_v16 = vor.u32 %v9799_v18, %v9785_v30  ;;  %v3801_v56 = vld [vmem:[#allocation2 + $0x3f8] sm:$0x77]  ;;  %v3064_v60 = vsel %vm7587_vm15, %v3037_v46, %v3063_v62  ;;  %v4004_v30 = vrot.slane %v4002_v20, 7  ;;  %v5997_v18 = vcombine.high %v4205_v52, %v4205_v52  ;;  %5295 = vmatpush1.bf16.msra.mxu1 %v5982_v8  ;;  %v4087_v51 = vld [vmem:[#allocation2 + $0x70] sm:$0xff] }
 0x2a3   : > { %v3061_v6 = vsel %vm7587_vm15, %v3030_v48, %v3060_v7  ;;  %v3997_v40 = vrot.slane %v3995_v43, 7  ;;  %v3802_v29 = vsel %vm7587_vm15, %v10859_v13, %v3801_v56  ;;  %3065 = vst [vmem:[#allocation2 + $0x378] sm:$0x77] %v3064_v60  ;;  %v5998_v33 = vcombine.low %v4206_v35, %v4206_v35  ;;  %v10866_v7 = vld [vmem:[#allocation39_spill] sm:$0xff]  ;;  %v4120_v56 = vld [vmem:[#allocation2 + $0x178] sm:$0xff]  ;;  %v4127_v13 = vld [vmem:[#allocation2 + $0x1b0] sm:$0xff] }
 0x2a4   : > { %v3929_v37 = vsel %vm7503_vm6, %v10858_v16, %v3928_v23  ;;  %3062 = vst [vmem:[#allocation2 + $0x370] sm:$0x77] %v3061_v6  ;;  %v10860_v57 = vshll.u32 %v9856_v12, 16  ;;  %3803 = vst [vmem:[#allocation2 + $0x3f8] sm:$0x77] %v3802_v29  ;;  %v5999_v22 = vcombine.high %v4206_v35, %v4206_v35  ;;  %v399_v44 = vcombine.low %v10767_v4, %v10767_v4  ;;  %v4111_v6 = vld [vmem:[#allocation2 + $0x130] sm:$0xff] }
 0x2a5   : > { %3930 = vst [vmem:[#allocation2 + $0x3f0] sm:$0xcc] %v3929_v37  ;;  %v4000_v26 = vor.u32 %v3998_v25, %v3997_v40  ;;  %v2983_v11 = vld [vmem:[#allocation2 + $0x338] sm:$0xcc]  ;;  %v4007_v31 = vor.u32 %v4005_v42, %v4004_v30  ;;  %v4955_v24 = vand.u32 %v5997_v18, %v9145_v27  ;;  %v4952_v17 = vand.u32 %v5996_v34, %v9145_v27  ;;  %v4119_v37 = vld [vmem:[#allocation2 + $0x170] sm:$0xff] }
 0x2a6   : > { %v3884_v53 = vrot.slane %v10860_v57, 6  ;;  %v445_v2 = vsel %vm10862_vm5, %v9977_v59, %v10861_v63  ;;  %v10863_v12 = vor.u32 %v9674_v32, %v9672_v3  ;;  %v4961_v38 = vand.u32 %v5999_v22, %v9145_v27  ;;  %5705 = vst.sshfl [vmem:[#allocation2 + $0x78] sm:$0xf0 pattern:$0x76325410] %v399_v44  ;;  %v4112_v60 = vld [vmem:[#allocation2 + $0x138] sm:$0xff] }
 0x2a7   : > { %v4032_v4 = vsel %vm7587_vm15, %v4000_v26, %v4031_v14  ;;  %v406_v47 = vrot.slane %v399_v44, %v10824_v49  ;;  %454 = vst [vmem:[#allocation2 + $0x78] sm:$0x33] %v445_v2  ;;  %521 = vst [vmem:[#allocation2 + $0xf0] sm:$0x33] %v445_v2  ;;  %v4035_v59 = vsel %vm7587_vm15, %v4007_v31, %v4034_v10  ;;  %5235 = vmatprep.subr.bf16.mxu0 %v4955_v24  ;;  %v4136_v29 = vld [vmem:[#allocation2 + $0x1f8] sm:$0xff] }
 0x2a8   : > { %v2984_v39 = vsel %vm7503_vm6, %v10863_v12, %v2983_v11  ;;  %4033 = vst [vmem:[#allocation2 + $0x430] sm:$0x77] %v4032_v4  ;;  %v4958_v3 = vand.u32 %v5998_v33, %v9145_v27  ;;  %4036 = vst [vmem:[#allocation2 + $0x438] sm:$0x77] %v4035_v59  ;;  %5296 = vmatprep.subr.bf16.mxu1 %v4961_v38  ;;  %5236 = vmatpush1.bf16.msra.mxu0 %v4952_v17  ;;  %v4135_v33 = vld [vmem:[#allocation2 + $0x1f0] sm:$0xff]  ;;  %v4128_v57 = vld [vmem:[#allocation2 + $0x1b8] sm:$0xff] }
 0x2a9   : > { %2985 = vst [vmem:[#allocation2 + $0x338] sm:$0xcc] %v2984_v39  ;;  %v411_v32 = vrot.slane %v406_v47, 4  ;;  %v3885_v49 = vor.u32 %v3884_v53, %v9890_v36  ;;  %vm10865_vm15 = vmmov %vm10757_vm0  ;;  %v5543_v36 = vld [vmem:[%s232_s21] sm:$0xff]  ;;  %v5905_v40 = vcombine.high %v4111_v6, %v4119_v37  ;;  %v5904_v30 = vcombine.low %v4111_v6, %v4119_v37  ;;  %v6725_v44 = vld [vmem:[#allocation6 + $0x4] ss:$8 sps:$4 sm:$0xff]  }
 0x2aa   : > { %5297 = vmatpush1.bf16.msra.mxu1 %v4958_v3  ;;  %v3320_v45 = vld [vmem:[#allocation2 + $0x378] sm:$0xcc]  ;;  %v5906_v18 = vcombine.low %v4112_v60, %v4120_v56  ;;  %v10868_v53 = vld [vmem:[#allocation18_spill] sm:$0xff]  ;;  %v5921_v26 = vcombine.high %v4127_v13, %v4135_v33  ;;  %v5923_v22 = vcombine.high %v4128_v57, %v4136_v29  ;;  %v4151_v11 = vld [vmem:[#allocation2 + $0x270] sm:$0xff]  ;;  %v5920_v14 = vcombine.low %v4127_v13, %v4135_v33 }
 0x2ab   : > { %v3317_v41 = vld [vmem:[#allocation2 + $0x370] sm:$0xcc]  ;;  %v418_v54 = vsel %vm10864_vm7, %v10829_v28, %v411_v32  ;;  %v419_v52 = vsel %vm10865_vm15, %v411_v32, %v10831_v61  ;;  %v3931_v0 = vld [vmem:[#allocation2 + $0x3f8] sm:$0xcc]  ;;  %v3321_v8 = vsel %vm7503_vm6, %v10867_v15, %v3320_v45  ;;  %5252 = vmatmul.mubr.bf16.vlgmr.msra.gmra.mrb[24].mxu0 %v10822_v21  ;;  %v6888_v61 = vmov 0  }
 0x2ac   : > { %v3318_v1 = vsel %vm7503_vm6, %v10866_v7, %v3317_v41  ;;  %434 = vst [vmem:[#allocation2 + $0x30] sm:$0xcc] %v418_v54  ;;  %503 = vst [vmem:[#allocation2 + $0xb8] sm:$0xcc] %v418_v54  ;;  %v3932_v28 = vsel %vm7503_vm6, %v3885_v49, %v3931_v0  ;;  %6017 = vmatprep.mubr.msk.bf16.mxu0 %vm4913_vm10, %v9863_v5  ;;  %6698 = vset.pattern.permute.xlu0 %v6888_v61  ;;  %v4152_v31 = vld [vmem:[#allocation2 + $0x278] sm:$0xff]  ;;  %v4143_v17 = vld [vmem:[#allocation2 + $0x230] sm:$0xff] }
 0x2ad   : > { %435 = vst [vmem:[#allocation2 + $0x38] sm:$0xcc] %v419_v52  ;;  %3319 = vst [vmem:[#allocation2 + $0x370] sm:$0xcc] %v3318_v1  ;;  %5313 = vmatmul.mubr.bf16.vlgmr.msra.gmra.mrb[24].mxu1 %v10822_v21  ;;  %5546 = vperm.xlu0 %6698, %v5543_v36   ;;  %v5922_v24 = vcombine.low %v4128_v57, %v4136_v29  ;;  %v4144_v63 = vld [vmem:[#allocation2 + $0x238] sm:$0xff]  ;;  %v5937_v2 = vcombine.high %v4143_v17, %v4151_v11  ;;  %v4159_v39 = vld [vmem:[#allocation2 + $0x2b0] sm:$0xff] }
 0x2ae   : > { %3322 = vst [vmem:[#allocation2 + $0x378] sm:$0xcc] %v3321_v8  ;;  %3933 = vst [vmem:[#allocation2 + $0x3f8] sm:$0xcc] %v3932_v28  ;;  %6020 = vmatprep.mubr.msk.bf16.mxu1 %vm4913_vm10, %v9863_v5  ;;  %v4103_v19 = vld [vmem:[#allocation2 + $0xf0] sm:$0xff]  ;;  %v4088_v48 = vld [vmem:[#allocation2 + $0x78] sm:$0xff]  ;;  %v5939_v12 = vcombine.high %v4144_v63, %v4152_v31  ;;  %v5936_v10 = vcombine.low %v4143_v17, %v4151_v11  ;;  %v5938_v38 = vcombine.low %v4144_v63, %v4152_v31 }
 0x2af   : > { %v5889_v43 = vcombine.high %v4095_v55, %v4103_v19  ;;  %v5888_v5 = vcombine.low %v4095_v55, %v4103_v19  ;;  %v4160_v4 = vld [vmem:[#allocation2 + $0x2b8] sm:$0xff]  ;;  %v4167_v47 = vld [vmem:[#allocation2 + $0x2f0] sm:$0xff] }
 0x2b0   : > { %v4168_v59 = vld [vmem:[#allocation2 + $0x2f8] sm:$0xff]  ;;  %v5953_v3 = vcombine.high %v4159_v39, %v4167_v47  ;;  %v5952_v54 = vcombine.low %v4159_v39, %v4167_v47  ;;  %v4175_v0 = vld [vmem:[#allocation2 + $0x330] sm:$0xff] }
 0x2b1   : > { %v5955_v32 = vcombine.high %v4160_v4, %v4168_v59  ;;  %v4176_v41 = vld [vmem:[#allocation2 + $0x338] sm:$0xff]  ;;  %v5954_v52 = vcombine.low %v4160_v4, %v4168_v59  ;;  %v4199_v15 = vld [vmem:[#allocation2 + $0x3f0] sm:$0xff] }
 0x2b2   : > { %v4207_v36 = vld [vmem:[#allocation2 + $0x430] sm:$0x77]  ;;  %v4208_v28 = vld [vmem:[#allocation2 + $0x438] sm:$0x77] }
 0x2b3   : > { %v4079_v46 = vld [vmem:[#allocation2 + $0x30] sm:$0xff]  ;;  %v4096_v35 = vld [vmem:[#allocation2 + $0xb8] sm:$0xff]  ;;  %5262 = vmatmul.mubr.bf16.gmra.mrb[28].mxu0 %v9905_v50 }
 0x2b4   : > { %v4080_v62 = vld [vmem:[#allocation2 + $0x38] sm:$0xff]  ;;  %v5872_v23 = vcombine.low %v4079_v46, %v4087_v51  ;;  %v5873_v25 = vcombine.high %v4079_v46, %v4087_v51  ;;  %v5891_v34 = vcombine.high %v4096_v35, %v4104_v58  ;;  %v5890_v16 = vcombine.low %v4096_v35, %v4104_v58  ;;  %6018 = vmatprep.mubr.msk.bf16.mxu0 %vm4913_vm10, %v9670_v9  ;;  %v4183_v49 = vld [vmem:[#allocation2 + $0x370] sm:$0xff] }
 0x2b5   : > { %v5874_v20 = vcombine.low %v4080_v62, %v4088_v48  ;;  %v5875_v42 = vcombine.high %v4080_v62, %v4088_v48  ;;  %5323 = vmatmul.mubr.bf16.gmra.mrb[28].mxu1 %v9905_v50  ;;  %v5907_v50 = vcombine.high %v4112_v60, %v4120_v56  ;;  %v4184_v45 = vld [vmem:[#allocation2 + $0x378] sm:$0xff]  ;;  %v5969_v7 = vcombine.high %v4175_v0, %v4183_v49  ;;  %v4191_v19 = vld [vmem:[#allocation2 + $0x3b0] sm:$0xff] }
 0x2b6   : > { %5341 = vmatprep.subr.bf16.mxu0 %v5873_v25  ;;  %6021 = vmatprep.mubr.msk.bf16.mxu1 %vm4913_vm10, %v9670_v9  ;;  %v5971_v1 = vcombine.high %v4176_v41, %v4184_v45  ;;  %v4200_v8 = vld [vmem:[#allocation2 + $0x3f8] sm:$0xff]  ;;  %v5968_v61 = vcombine.low %v4175_v0, %v4183_v49  ;;  %v5970_v55 = vcombine.low %v4176_v41, %v4184_v45 }
 0x2b7   : > { %5402 = vmatprep.subr.bf16.mxu1 %v5875_v42  ;;  %5342 = vmatpush1.bf16.msra.mxu0 %v5872_v23  ;;  %v4192_v51 = vld [vmem:[#allocation2 + $0x3b8] sm:$0xff]  ;;  %v5985_v48 = vcombine.high %v4191_v19, %v4199_v15  ;;  %v6001_v46 = vcombine.high %v4207_v36, %v4207_v36  ;;  %v6003_v62 = vcombine.high %v4208_v28, %v4208_v28 }
 0x2b8   : > { %5403 = vmatpush1.bf16.msra.mxu1 %v5874_v20  ;;  %5343 = vmatprep.subr.bf16.mxu0 %v5889_v43  ;;  %v5987_v58 = vcombine.high %v4192_v51, %v4200_v8  ;;  %v5984_v43 = vcombine.low %v4191_v19, %v4199_v15  ;;  %v5986_v35 = vcombine.low %v4192_v51, %v4200_v8  ;;  %v6727_v37 = vld [vmem:[#allocation6 + $0x10] ss:$8 sps:$4 sm:$0xff]  }
 0x2b9   : > { %5404 = vmatprep.subr.bf16.mxu1 %v5891_v34  ;;  %v6000_v23 = vcombine.low %v4207_v36, %v4207_v36  ;;  %v6002_v25 = vcombine.low %v4208_v28, %v4208_v28  ;;  %v4967_v20 = vand.u32 %v6001_v46, %v9145_v27  ;;  %v4973_v42 = vand.u32 %v6003_v62, %v9145_v27 }
 0x2bb   : > { %5344 = vmatpush1.bf16.msra.mxu0 %v5888_v5  ;;  %v4964_v34 = vand.u32 %v6000_v23, %v9145_v27  ;;  %v4970_v5 = vand.u32 %v6002_v25, %v9145_v27 }
 0x2bc   : > { %5405 = vmatpush1.bf16.msra.mxu1 %v5890_v16  ;;  %5345 = vmatprep.subr.bf16.mxu0 %v5905_v40  ;;  %v6726_v16 = vld [vmem:[#allocation6 + $0x14] ss:$8 sps:$4 sm:$0xff]  }
 0x2bd   : > { %5406 = vmatprep.subr.bf16.mxu1 %v5907_v50  ;;  %5272 = vmatmul.mubr.bf16.gmra.mrb[32].mxu0 %v10868_v53 }
 0x2be   : > { %5333 = vmatmul.mubr.bf16.gmra.mrb[32].mxu1 %v10868_v53  ;;  %6022 = vmatprep.mubr.msk.bf16.mxu0 %vm4913_vm10, %v6725_v44 }
 0x2bf   : > { %6025 = vmatprep.mubr.msk.bf16.mxu1 %vm4913_vm10, %v6725_v44  ;;  %5346 = vmatpush1.bf16.msra.mxu0 %v5904_v30 }
 0x2c0   : > { %5407 = vmatpush1.bf16.msra.mxu1 %v5906_v18  ;;  %5347 = vmatprep.subr.bf16.mxu0 %v5921_v26 }
 0x2c1   : > { %5408 = vmatprep.subr.bf16.mxu1 %v5923_v22 }
 0x2c3   : > { %5348 = vmatpush1.bf16.msra.mxu0 %v5920_v14 }
 0x2c4   : > { %5409 = vmatpush1.bf16.msra.mxu1 %v5922_v24  ;;  %5349 = vmatprep.subr.bf16.mxu0 %v5937_v2 }
 0x2c5   : > { %5410 = vmatprep.subr.bf16.mxu1 %v5939_v12 }
 0x2c7   : > { %5350 = vmatpush1.bf16.msra.mxu0 %v5936_v10 }
 0x2c8   : > { %5411 = vmatpush1.bf16.msra.mxu1 %v5938_v38  ;;  %5351 = vmatprep.subr.bf16.mxu0 %v5953_v3 }
 0x2c9   : > { %5412 = vmatprep.subr.bf16.mxu1 %v5955_v32 }
 0x2cb   : > { %5352 = vmatpush1.bf16.msra.mxu0 %v5952_v54  ;;  %v5009_v27 = vpop.f32.mrb[0].mxu0 }
 0x2cc   : > { %5413 = vmatpush1.bf16.msra.mxu1 %v5954_v52  ;;  %5353 = vmatprep.subr.bf16.mxu0 %v5969_v7  ;;  %5463 = vst [vmem:[%s10264_s25] sm:$0xff] %v5009_v27 }
 0x2cd   : > { %5414 = vmatprep.subr.bf16.mxu1 %v5971_v1 }
 0x2cf   : > { %5354 = vmatpush1.bf16.msra.mxu0 %v5968_v61 }
 0x2d0   : > { %5415 = vmatpush1.bf16.msra.mxu1 %v5970_v55  ;;  %5355 = vmatprep.subr.bf16.mxu0 %v5985_v48 }
 0x2d1   : > { %5416 = vmatprep.subr.bf16.mxu1 %v5987_v58 }
 0x2d3   : > { %5356 = vmatpush1.bf16.msra.mxu0 %v5984_v43 }
 0x2d4   : > { %5417 = vmatpush1.bf16.msra.mxu1 %v5986_v35  ;;  %5357 = vmatprep.subr.bf16.mxu0 %v4967_v20 }
 0x2d5   : > { %5418 = vmatprep.subr.bf16.mxu1 %v4973_v42 }
 0x2d7   : > { %5358 = vmatpush1.bf16.msra.mxu0 %v4964_v34 }
 0x2d8   : > { %5419 = vmatpush1.bf16.msra.mxu1 %v4970_v5 }
 0x2da   : > { %5374 = vmatmul.mubr.bf16.vlgmr.msra.gmra.mrb[36].mxu0 %v10822_v21 }
 0x2db   : > { %5435 = vmatmul.mubr.bf16.vlgmr.msra.gmra.mrb[36].mxu1 %v10822_v21  ;;  %6023 = vmatprep.mubr.msk.bf16.mxu0 %vm4913_vm10, %v6726_v16  ;;  %v5011_v21 = vpop.f32.mrb[1].mxu0 }
 0x2dc   : > { %6026 = vmatprep.mubr.msk.bf16.mxu1 %vm4913_vm10, %v6726_v16  ;;  %5464 = vst [vmem:[%s10264_s25 + $0x8] sm:$0xff] %v5011_v21  ;;  %v5013_v56 = vpop.f32.mrb[2].mxu0 }
 0x2dd   : > { %5479 = vst [vmem:[%s10264_s25 + $0x80] sm:$0xff] %v5013_v56  ;;  %v5015_v6 = vpop.f32.mrb[3].mxu0 }
 0x2de   : > { %5480 = vst [vmem:[%s10264_s25 + $0x88] sm:$0xff] %v5015_v6  ;;  %v5019_v13 = vpop.f32.mrb[4].mxu0 }
 0x2df   : > { %5495 = vst [vmem:[%s10264_s25 + $0x100] sm:$0xff] %v5019_v13  ;;  %v5021_v29 = vpop.f32.mrb[5].mxu0 }
 0x2e0   : > { %5496 = vst [vmem:[%s10264_s25 + $0x108] sm:$0xff] %v5021_v29  ;;  %v5023_v30 = vpop.f32.mrb[6].mxu0 }
 0x2e1   : > { %5511 = vst [vmem:[%s10264_s25 + $0x180] sm:$0xff] %v5023_v30  ;;  %v5025_v18 = vpop.f32.mrb[7].mxu0 }
 0x2e2   : > { %5384 = vmatmul.mubr.bf16.gmra.mrb[40].mxu0 %v6727_v37  ;;  %5512 = vst [vmem:[%s10264_s25 + $0x188] sm:$0xff] %v5025_v18 }
 0x2e3   : > { %5445 = vmatmul.mubr.bf16.gmra.mrb[40].mxu1 %v6727_v37  ;;  %6024 = vmatprep.mubr.msk.bf16.mxu0 %vm4913_vm10, %v9670_v9 }
 0x2e4   : > { %6027 = vmatprep.mubr.msk.bf16.mxu1 %vm4913_vm10, %v9670_v9  ;;  %v5070_v9 = vpop.f32.mrb[0].mxu1 }
 0x2e5   : > { %5465 = vst [vmem:[%s10264_s25 + $0x10] sm:$0xff] %v5070_v9  ;;  %v5072_v60 = vpop.f32.mrb[1].mxu1 }
 0x2e6   : > { %5466 = vst [vmem:[%s10264_s25 + $0x18] sm:$0xff] %v5072_v60  ;;  %v5074_v40 = vpop.f32.mrb[2].mxu1 }
 0x2e7   : > { %5481 = vst [vmem:[%s10264_s25 + $0x90] sm:$0xff] %v5074_v40  ;;  %v5076_v50 = vpop.f32.mrb[3].mxu1 }
 0x2e8   : > { %5482 = vst [vmem:[%s10264_s25 + $0x98] sm:$0xff] %v5076_v50  ;;  %v5080_v33 = vpop.f32.mrb[4].mxu1 }
 0x2e9   : > { %5497 = vst [vmem:[%s10264_s25 + $0x110] sm:$0xff] %v5080_v33  ;;  %v5082_v57 = vpop.f32.mrb[5].mxu1 }
 0x2ea   : > { %5394 = vmatmul.mubr.bf16.gmra.mrb[44].mxu0 %v10868_v53  ;;  %5498 = vst [vmem:[%s10264_s25 + $0x118] sm:$0xff] %v5082_v57 }
 0x2eb   : > { %5455 = vmatmul.mubr.bf16.gmra.mrb[44].mxu1 %v10868_v53  ;;  %v5084_v53 = vpop.f32.mrb[6].mxu1 }
 0x2ec   : > { %5513 = vst [vmem:[%s10264_s25 + $0x190] sm:$0xff] %v5084_v53  ;;  %v5086_v26 = vpop.f32.mrb[7].mxu1 }
 0x2ed   : > { %5514 = vst [vmem:[%s10264_s25 + $0x198] sm:$0xff] %v5086_v26 }
 0x31e   : > { %v5029_v22 = vpop.f32.mrb[8].mxu0  ;;  %v5090_v44 = vpop.f32.mrb[8].mxu1 }
 0x31f   : > { %5527 = vst [vmem:[%s10264_s25 + $0x200] sm:$0xff] %v5029_v22  ;;  %5529 = vst [vmem:[%s10264_s25 + $0x210] sm:$0xff] %v5090_v44  ;;  %v5031_v11 = vpop.f32.mrb[9].mxu0  ;;  %v5092_v31 = vpop.f32.mrb[9].mxu1 }
 0x320   : > { %5528 = vst [vmem:[%s10264_s25 + $0x208] sm:$0xff] %v5031_v11  ;;  %5530 = vst [vmem:[%s10264_s25 + $0x218] sm:$0xff] %v5092_v31  ;;  %v5033_v14 = vpop.f32.mrb[10].mxu0  ;;  %v5094_v24 = vpop.f32.mrb[10].mxu1 }
 0x321   : > { %v5034_v17 = vpop.f32.mrb[11].mxu0  ;;  %v5095_v63 = vpop.f32.mrb[11].mxu1 }
 0x32c   : > { %v5547_v3 = vpop.permute.xlu0 %5546 }
 0x32d   : > { %5549 = vst [vmem:[%s10264_s25 + $0x280] sm:$0xff] %v5547_v3  ;;  %5550 = vst [vmem:[%s10264_s25 + $0x288] sm:$0xff] %v5547_v3 }
 0x32e   : > { %5551 = vst [vmem:[%s10264_s25 + $0x290] sm:$0xff] %v5547_v3  ;;  %5552 = vst [vmem:[%s10264_s25 + $0x298] sm:$0xff] %v5547_v3 }
 0x32f   : > { %5553 = vst [vmem:[%s10264_s25 + $0x2a0] sm:$0xff] %v5547_v3  ;;  %5554 = vst [vmem:[%s10264_s25 + $0x2a8] sm:$0xff] %v5547_v3 }
 0x330   : > { %5555 = vst [vmem:[%s10264_s25 + $0x2b0] sm:$0xff] %v5547_v3  ;;  %5556 = vst [vmem:[%s10264_s25 + $0x2b8] sm:$0xff] %v5547_v3 }
 0x331   : > { %5557 = vst [vmem:[%s10264_s25 + $0x2c0] sm:$0xff] %v5547_v3  ;;  %5558 = vst [vmem:[%s10264_s25 + $0x2c8] sm:$0xff] %v5547_v3 }
 0x332   : > { %5559 = vst [vmem:[%s10264_s25 + $0x2d0] sm:$0xff] %v5547_v3  ;;  %5560 = vst [vmem:[%s10264_s25 + $0x2d8] sm:$0xff] %v5547_v3 }
 0x333   : > { %5561 = vst [vmem:[%s10264_s25 + $0x2e0] sm:$0xff] %v5547_v3  ;;  %5562 = vst [vmem:[%s10264_s25 + $0x2e8] sm:$0xff] %v5547_v3 }
 0x334   : > { %v5131_v2 = vpop.f32.mrb[12].mxu0  ;;  %5563 = vst [vmem:[%s10264_s25 + $0x2f0] sm:$0xff] %v5547_v3  ;;  %5564 = vst [vmem:[%s10264_s25 + $0x2f8] sm:$0xff] %v5547_v3 }
 0x335   : > { %5467 = vst [vmem:[%s10264_s25 + $0x20] sm:$0xff] %v5131_v2  ;;  %v5133_v12 = vpop.f32.mrb[13].mxu0  ;;  %v5192_v39 = vpop.f32.mrb[12].mxu1 }
 0x336   : > { %5468 = vst [vmem:[%s10264_s25 + $0x28] sm:$0xff] %v5133_v12  ;;  %5469 = vst [vmem:[%s10264_s25 + $0x30] sm:$0xff] %v5192_v39  ;;  %v5135_v4 = vpop.f32.mrb[14].mxu0  ;;  %v5194_v10 = vpop.f32.mrb[13].mxu1 }
 0x337   : > { %5483 = vst [vmem:[%s10264_s25 + $0xa0] sm:$0xff] %v5135_v4  ;;  %5470 = vst [vmem:[%s10264_s25 + $0x38] sm:$0xff] %v5194_v10  ;;  %v5137_v38 = vpop.f32.mrb[15].mxu0  ;;  %v5196_v47 = vpop.f32.mrb[14].mxu1 }
 0x338   : > { %5484 = vst [vmem:[%s10264_s25 + $0xa8] sm:$0xff] %v5137_v38  ;;  %5485 = vst [vmem:[%s10264_s25 + $0xb0] sm:$0xff] %v5196_v47  ;;  %v5198_v59 = vpop.f32.mrb[15].mxu1 }
 0x339   : > { %5486 = vst [vmem:[%s10264_s25 + $0xb8] sm:$0xff] %v5198_v59 }
 0x33f   : > { %v5141_v32 = vpop.f32.mrb[16].mxu0  ;;  %v5202_v49 = vpop.f32.mrb[16].mxu1 }
 0x340   : > { %5499 = vst [vmem:[%s10264_s25 + $0x120] sm:$0xff] %v5141_v32  ;;  %v5143_v41 = vpop.f32.mrb[17].mxu0  ;;  %5501 = vst [vmem:[%s10264_s25 + $0x130] sm:$0xff] %v5202_v49  ;;  %v5204_v45 = vpop.f32.mrb[17].mxu1 }
 0x341   : > { %5500 = vst [vmem:[%s10264_s25 + $0x128] sm:$0xff] %v5143_v41  ;;  %v5145_v54 = vpop.f32.mrb[18].mxu0  ;;  %5502 = vst [vmem:[%s10264_s25 + $0x138] sm:$0xff] %v5204_v45  ;;  %v5206_v52 = vpop.f32.mrb[18].mxu1 }
 0x342   : > { %5515 = vst [vmem:[%s10264_s25 + $0x1a0] sm:$0xff] %v5145_v54  ;;  %v5147_v0 = vpop.f32.mrb[19].mxu0  ;;  %5517 = vst [vmem:[%s10264_s25 + $0x1b0] sm:$0xff] %v5206_v52  ;;  %v5208_v7 = vpop.f32.mrb[19].mxu1 }
 0x343   : > { %5516 = vst [vmem:[%s10264_s25 + $0x1a8] sm:$0xff] %v5147_v0  ;;  %5518 = vst [vmem:[%s10264_s25 + $0x1b8] sm:$0xff] %v5208_v7 }
 0x347   : > { %v5151_v1 = vpop.f32.mrb[20].mxu0  ;;  %v5212_v15 = vpop.f32.mrb[20].mxu1 }
 0x348   : > { %5531 = vst [vmem:[%s10264_s25 + $0x220] sm:$0xff] %v5151_v1  ;;  %v5153_v8 = vpop.f32.mrb[21].mxu0  ;;  %5533 = vst [vmem:[%s10264_s25 + $0x230] sm:$0xff] %v5212_v15  ;;  %v5214_v36 = vpop.f32.mrb[21].mxu1 }
 0x349   : > { %5532 = vst [vmem:[%s10264_s25 + $0x228] sm:$0xff] %v5153_v8  ;;  %v5155_v28 = vpop.f32.mrb[22].mxu0  ;;  %5534 = vst [vmem:[%s10264_s25 + $0x238] sm:$0xff] %v5214_v36  ;;  %v5216_v61 = vpop.f32.mrb[22].mxu1 }
 0x34a   : > { %v5156_v55 = vpop.f32.mrb[23].mxu0  ;;  %v5217_v19 = vpop.f32.mrb[23].mxu1 }
 0x37e   : > { %v5253_v51 = vpop.f32.mrb[24].mxu0 }
 0x37f   : > { %5471 = vst [vmem:[%s10264_s25 + $0x40] sm:$0xff] %v5253_v51  ;;  %v5255_v48 = vpop.f32.mrb[25].mxu0 }
 0x380   : > { %v5314_v58 = vpop.f32.mrb[24].mxu1  ;;  %5472 = vst [vmem:[%s10264_s25 + $0x48] sm:$0xff] %v5255_v48  ;;  %v5257_v46 = vpop.f32.mrb[26].mxu0 }
 0x381   : > { %5473 = vst [vmem:[%s10264_s25 + $0x50] sm:$0xff] %v5314_v58  ;;  %v5316_v62 = vpop.f32.mrb[25].mxu1  ;;  %5487 = vst [vmem:[%s10264_s25 + $0xc0] sm:$0xff] %v5257_v46  ;;  %v5259_v43 = vpop.f32.mrb[27].mxu0 }
 0x382   : > { %5474 = vst [vmem:[%s10264_s25 + $0x58] sm:$0xff] %v5316_v62  ;;  %v5318_v35 = vpop.f32.mrb[26].mxu1  ;;  %5488 = vst [vmem:[%s10264_s25 + $0xc8] sm:$0xff] %v5259_v43 }
 0x383   : > { %5489 = vst [vmem:[%s10264_s25 + $0xd0] sm:$0xff] %v5318_v35  ;;  %v5320_v23 = vpop.f32.mrb[27].mxu1 }
 0x384   : > { %5490 = vst [vmem:[%s10264_s25 + $0xd8] sm:$0xff] %v5320_v23 }
 0x386   : > { %v5263_v25 = vpop.f32.mrb[28].mxu0 }
 0x387   : > { %5503 = vst [vmem:[%s10264_s25 + $0x140] sm:$0xff] %v5263_v25  ;;  %v5265_v42 = vpop.f32.mrb[29].mxu0 }
 0x388   : > { %v5324_v20 = vpop.f32.mrb[28].mxu1  ;;  %5504 = vst [vmem:[%s10264_s25 + $0x148] sm:$0xff] %v5265_v42  ;;  %v5267_v5 = vpop.f32.mrb[30].mxu0 }
 0x389   : > { %5505 = vst [vmem:[%s10264_s25 + $0x150] sm:$0xff] %v5324_v20  ;;  %v5326_v34 = vpop.f32.mrb[29].mxu1  ;;  %5519 = vst [vmem:[%s10264_s25 + $0x1c0] sm:$0xff] %v5267_v5  ;;  %v5269_v37 = vpop.f32.mrb[31].mxu0 }
 0x38a   : > { %5506 = vst [vmem:[%s10264_s25 + $0x158] sm:$0xff] %v5326_v34  ;;  %v5328_v16 = vpop.f32.mrb[30].mxu1  ;;  %5520 = vst [vmem:[%s10264_s25 + $0x1c8] sm:$0xff] %v5269_v37 }
 0x38b   : > { %5521 = vst [vmem:[%s10264_s25 + $0x1d0] sm:$0xff] %v5328_v16  ;;  %v5330_v27 = vpop.f32.mrb[31].mxu1 }
 0x38c   : > { %5522 = vst [vmem:[%s10264_s25 + $0x1d8] sm:$0xff] %v5330_v27 }
 0x390   : > { %v5273_v21 = vpop.f32.mrb[32].mxu0 }
 0x391   : > { %v5334_v56 = vpop.f32.mrb[32].mxu1  ;;  %5535 = vst [vmem:[%s10264_s25 + $0x240] sm:$0xff] %v5273_v21  ;;  %v5275_v6 = vpop.f32.mrb[33].mxu0 }
 0x392   : > { %5537 = vst [vmem:[%s10264_s25 + $0x250] sm:$0xff] %v5334_v56  ;;  %v5336_v9 = vpop.f32.mrb[33].mxu1  ;;  %5536 = vst [vmem:[%s10264_s25 + $0x248] sm:$0xff] %v5275_v6  ;;  %v5277_v60 = vpop.f32.mrb[34].mxu0 }
 0x393   : > { %5538 = vst [vmem:[%s10264_s25 + $0x258] sm:$0xff] %v5336_v9  ;;  %v5338_v40 = vpop.f32.mrb[34].mxu1  ;;  %v5278_v50 = vpop.f32.mrb[35].mxu0 }
 0x394   : > { %v5339_v13 = vpop.f32.mrb[35].mxu1 }
 0x3ad   : > { %v5375_v29 = vpop.f32.mrb[36].mxu0 }
 0x3ae   : > { %v5436_v30 = vpop.f32.mrb[36].mxu1  ;;  %5475 = vst [vmem:[%s10264_s25 + $0x60] sm:$0xff] %v5375_v29  ;;  %v5377_v18 = vpop.f32.mrb[37].mxu0 }
 0x3af   : > { %5477 = vst [vmem:[%s10264_s25 + $0x70] sm:$0xff] %v5436_v30  ;;  %v5438_v33 = vpop.f32.mrb[37].mxu1  ;;  %5476 = vst [vmem:[%s10264_s25 + $0x68] sm:$0xff] %v5377_v18  ;;  %v5379_v57 = vpop.f32.mrb[38].mxu0 }
 0x3b0   : > { %5478 = vst [vmem:[%s10264_s25 + $0x78] sm:$0xff] %v5438_v33  ;;  %v5440_v53 = vpop.f32.mrb[38].mxu1  ;;  %5491 = vst [vmem:[%s10264_s25 + $0xe0] sm:$0xff] %v5379_v57  ;;  %v5381_v26 = vpop.f32.mrb[39].mxu0 }
 0x3b1   : > { %5493 = vst [vmem:[%s10264_s25 + $0xf0] sm:$0xff] %v5440_v53  ;;  %v5442_v22 = vpop.f32.mrb[39].mxu1  ;;  %5492 = vst [vmem:[%s10264_s25 + $0xe8] sm:$0xff] %v5381_v26 }
 0x3b2   : > { %5494 = vst [vmem:[%s10264_s25 + $0xf8] sm:$0xff] %v5442_v22 }
 0x3b5   : > { %v5385_v44 = vpop.f32.mrb[40].mxu0 }
 0x3b6   : > { %v5446_v11 = vpop.f32.mrb[40].mxu1  ;;  %5507 = vst [vmem:[%s10264_s25 + $0x160] sm:$0xff] %v5385_v44  ;;  %v5387_v31 = vpop.f32.mrb[41].mxu0 }
 0x3b7   : > { %5509 = vst [vmem:[%s10264_s25 + $0x170] sm:$0xff] %v5446_v11  ;;  %v5448_v14 = vpop.f32.mrb[41].mxu1  ;;  %5508 = vst [vmem:[%s10264_s25 + $0x168] sm:$0xff] %v5387_v31  ;;  %v5389_v24 = vpop.f32.mrb[42].mxu0 }
 0x3b8   : > { %5510 = vst [vmem:[%s10264_s25 + $0x178] sm:$0xff] %v5448_v14  ;;  %v5450_v17 = vpop.f32.mrb[42].mxu1  ;;  %5523 = vst [vmem:[%s10264_s25 + $0x1e0] sm:$0xff] %v5389_v24  ;;  %v5391_v63 = vpop.f32.mrb[43].mxu0 }
 0x3b9   : > { %5525 = vst [vmem:[%s10264_s25 + $0x1f0] sm:$0xff] %v5450_v17  ;;  %v5452_v2 = vpop.f32.mrb[43].mxu1  ;;  %5524 = vst [vmem:[%s10264_s25 + $0x1e8] sm:$0xff] %v5391_v63 }
 0x3ba   : > { %5526 = vst [vmem:[%s10264_s25 + $0x1f8] sm:$0xff] %v5452_v2 }
 0x3bd   : > { %v5395_v12 = vpop.f32.mrb[44].mxu0 }
 0x3be   : > { %v5456_v39 = vpop.f32.mrb[44].mxu1  ;;  %5539 = vst [vmem:[%s10264_s25 + $0x260] sm:$0xff] %v5395_v12  ;;  %v5397_v4 = vpop.f32.mrb[45].mxu0 }
 0x3bf   : > { %5541 = vst [vmem:[%s10264_s25 + $0x270] sm:$0xff] %v5456_v39  ;;  %v5458_v10 = vpop.f32.mrb[45].mxu1  ;;  %5540 = vst [vmem:[%s10264_s25 + $0x268] sm:$0xff] %v5397_v4  ;;  %v5399_v38 = vpop.f32.mrb[46].mxu0 }
 0x3c0   : > { %5542 = vst [vmem:[%s10264_s25 + $0x278] sm:$0xff] %v5458_v10  ;;  %v5460_v47 = vpop.f32.mrb[46].mxu1  ;;  %v5400_v59 = vpop.f32.mrb[47].mxu0 }
 0x3c1   : > { %v5461_v3 = vpop.f32.mrb[47].mxu1 }
 0x3c2   : > { %6799 = shalt.err (!%p6796_p9)
}
 0x3c3   : > { %s6800_s26 = scalar_lea.hbm %s10365_s7, 12288  ;;  %s6804_s9 = scalar_lea.hbm %s10423_s3, 24576 }
 0x3c4   : > { %p6801_p1 = scmp.ne.s32.totalorder %s10365_s7, %s6800_s26  ;;  %p6805_p3 = scmp.lt.u32.totalorder %s10365_s7, %s10423_s3 }
 0x3c5   : > { %p6806_p4 = scmp.lt.u32.totalorder %s6804_s9, %s6800_s26  ;;  %p6808_p6 = scmp.lt.u32.totalorder %s6800_s26, %s10365_s7 }
 0x3c6   : > { %p6802_p2 = pnand %p6801_p1, %p7004_p10 }
 0x3c7   : > { %p6807_p11 = por %p6806_p4, %p6805_p3 }
 0x3c8   : > { %p6803_p7 = pneg %p6802_p2 }
 0x3c9   : > { %p6809_p8 = por %p6808_p6, %p6807_p11 }
 0x3cb   : > { %p6810_p12 = pnand %p6809_p8, %p6803_p7 }
 0x3cd   : > { %6813 = shalt.err (!%p6810_p12)
}
 0x3ce   : > { %s6890_s25 = smov 2048   ;;  %s6891_s30 = smov 128  }
 0x3cf   : > { %6166 = dma.vmem_to_hbm [thread:$0]  (%p7004_p10), %s10367_s20, 12288, %s10365_s7, %s5566_s15, %s6890_s25, %s6890_s25, %s6891_s30  }
 0x3d0 PF: > { %s5596_s22 = sand.u32 1, %s6852_s12   ;;  %p10869_p13 = scmp.ne.s32.totalorder %s10541_s23, 0 }
 0x3d1   : > { %p10870_p0 = scmp.ge.s32.totalorder %s6872_s17, 2  ;;  %s5597_s24 = scalar_lea.sflag [#allocation5], %s5596_s22 }
 0x3d3   : > { %p6177_p5 = pnand %p10870_p0, %p10869_p13 }
 0x3d5   : > { %6847 = dma.done.wait (!%p6177_p5), %s5597_s24, 12288  }
 0x3d6   : > { %6849 = vsyncadd (!%p6177_p5), %s5597_s24, 4294955008  ;;  %s20_s17 = sadd.s32 1, %s6872_s17   ;;  %s10871_s12 = smov %s6856_s13 }
 0x3d7   : > { %p17_p9 = scmp.ge.s32.totalorder %s20_s17, 4   ;;  %s10872_s13 = smov %s6860_s14 }
 0x3d8   : > { %s10873_s14 = smov %s7013_s5  ;;  %s10874_s15 = smov %s6868_s16 }
 0x3d9   : > { %s10875_s16 = smov %s10877_s28  ;;  %19 = sbr.rel (!%p17_p9) target bundleno = 7 (0x7), region = 85 }
 0x3e0   :  { %5602 = vsyncpa [#allocation4], 1 }
 0x3e1   :  { %5604 = vsyncpa [#allocation4 + $0x1], 1 }
 0x3e2   :  { %5605 = vsyncpa [#allocation7], 1 }
 0x3e3   :  { %5606 = vsyncpa [#allocation5], 1 }
 0x3e4   :  { %5608 = vsyncpa [#allocation5 + $0x1], 1 }

</bundles_post_ra>
